<compile_context>
chip_gen: v5e
topology: v5e:2x2
jax: 0.10.0
libtpu: 0.0.40
codegen_flags: <defaults>
</compile_context>

<pallas_src>
import jax
import jax.numpy as jnp
from jax import lax
from jax.experimental import pallas as pl
from jax.experimental.pallas import tpu as pltpu

# ---------------------------------------------------------------- config ----
B = 2                 # batch
C = 4                 # conv_slices
K = 3                 # kernel_size
KK = K * K
NC = 10               # num_classes
H = W = 16            # image_dim
H1, W1 = H - K + 1, W - K + 1      # after conv1: 14 x 14
H2, W2 = H1 - K + 1, W1 - K + 1    # after conv2: 12 x 12
HIDDEN = 512
INPUT_SIZE = C * H2 * W2           # 576, torch flatten order (c, h, w)

MAX_OFF = (K - 1) * W + (K - 1)    # 34 = largest tap shift in the flat frame
L2 = H2 * W                        # 192: conv2 frame (12 rows x 16 cols)
L1 = 256                           # conv1 frame (>= L2 + MAX_OFF = 226)
LX = 384                           # padded input frame (>= L1 + MAX_OFF = 290)
NCP = 128                          # lane-padded class dim
CB = C * B                         # 8 sublane rows (co-major, b-minor)


# ---------------------------------------------------------------- kernel ----
def nol_kernel(x_ref, w1_ref, b1_ref, w2_ref, b2_ref,
               wfc1_hbm, bfc1_ref, wfc2_hbm, bfc2_ref,
               out_ref, wfc1_vmem, wfc2_vmem, sem):
    # Kick off the big fc-weight DMAs immediately; they overlap the conv phase.
    wfc1_cp = pltpu.make_async_copy(wfc1_hbm, wfc1_vmem, sem.at[0])
    wfc2_cp = pltpu.make_async_copy(wfc2_hbm, wfc2_vmem, sem.at[1])
    wfc1_cp.start()
    wfc2_cp.start()

    x = x_ref[...]                 # (C*B, LX)  batch broadcast across co rows
    w1 = w1_ref[...]               # (KK, C*B, 1)
    w2 = w2_ref[...]               # (C*KK, C*B, 1)

    # ---- conv1 + ReLU: 9 taps, one VPU madd per tap on a full 8-row slab ----
    a1 = x[:, 0:L1] * w1[0]
    for t in range(1, KK):
        off = (t // K) * W + (t % K)
        a1 = a1 + x[:, off:off + L1] * w1[t]
    a1 = jnp.maximum(a1 + b1_ref[...], 0.0)                 # (C*B, L1) f32

    # ---- conv2 + ReLU: tile each input-channel batch pair across co once ----
    a2 = None
    for ci in range(C):
        a1c = jnp.concatenate([a1[ci * B:(ci + 1) * B, :]] * C, axis=0)
        for t in range(KK):
            off = (t // K) * W + (t % K)
            term = a1c[:, off:off + L2] * w2[ci * KK + t]
            a2 = term if a2 is None else a2 + term
    a2 = jnp.maximum(a2 + b2_ref[...], 0.0)                 # (C*B, L2) f32

    # ---- fc1: C MXU dots (M=B, K=192) against the now-resident bf16 weight --
    wfc1_cp.wait()
    y = None
    for co in range(C):
        a2_co = a2[co * B:(co + 1) * B, :].astype(jnp.bfloat16)
        part = jnp.dot(a2_co, wfc1_vmem[co],
                       preferred_element_type=jnp.float32)
        y = part if y is None else y + part
    y1 = jnp.maximum(y + bfc1_ref[...], 0.0)                # (B, HIDDEN) f32

    # ---- fc2 + softmax (eval mode) over lane-padded classes ----
    wfc2_cp.wait()
    logits = jnp.dot(y1.astype(jnp.bfloat16), wfc2_vmem[...],
                     preferred_element_type=jnp.float32) + bfc2_ref[...]
    m = jnp.max(logits, axis=-1, keepdims=True)
    e = jnp.exp(logits - m)
    out_ref[...] = e * pl.reciprocal(jnp.sum(e, axis=-1, keepdims=True),
                                     approx=True)           # (B, NCP)


# --------------------------------------------------------------- wrapper ----
def nol_nol_forward(x_nchw, params):
    """x_nchw: (B, 1, H, W) float32 -> softmax probabilities (B, NC)."""
    b = x_nchw.shape[0]
    cb = C * b

    # (B, 1, H, W) -> (B, H*W), zero-pad frame to LX lanes, broadcast over co.
    x_flat = x_nchw.reshape(b, H * W)
    x_pad = jnp.pad(x_flat, ((0, 0), (0, LX - H * W)))
    x_b = jnp.tile(x_pad, (C, 1))                           # (C*b, LX)

    # conv weights/biases as per-tap (C*b, 1) sublane columns (co-major, b-minor)
    w1_t = params["w1"].reshape(C, KK).T                    # (KK, C)
    w1_b = jnp.broadcast_to(w1_t[:, :, None], (KK, C, b)).reshape(KK, cb, 1)
    b1_b = jnp.broadcast_to(params["b1"][:, None], (C, b)).reshape(cb, 1)
    w2_t = jnp.transpose(params["w2"].reshape(C, C, KK), (1, 2, 0))  # (ci,t,co)
    w2_b = jnp.broadcast_to(w2_t.reshape(C * KK, C)[:, :, None],
                            (C * KK, C, b)).reshape(C * KK, cb, 1)
    b2_b = jnp.broadcast_to(params["b2"][:, None], (C, b)).reshape(cb, 1)

    # fc1 weight scattered into the column-padded 12x16 frame (192 rows/chan),
    # torch (c,h,w) flatten order; bf16 in HBM. Out-of-frame columns get zero.
    wfc1_chw = params["wfc1"].reshape(HIDDEN, C, H2, W2)
    wfc1_pad = jnp.pad(wfc1_chw, ((0, 0), (0, 0), (0, 0), (0, W - W2)))
    wfc1_r = jnp.transpose(wfc1_pad, (1, 2, 3, 0)).reshape(C, L2, HIDDEN)
    wfc1_r = wfc1_r.astype(jnp.bfloat16)
    bfc1_r = params["bfc1"].reshape(1, HIDDEN)

    # fc2 padded to 128 lanes (bf16); pad bias = -1e9 so softmax ignores pads.
    wfc2_p = jnp.pad(params["wfc2"].T,
                     ((0, 0), (0, NCP - NC))).astype(jnp.bfloat16)
    bfc2_p = jnp.pad(params["bfc2"].reshape(1, NC), ((0, 0), (0, NCP - NC)),
                     constant_values=-1e9)

    vmem = pl.BlockSpec(memory_space=pltpu.MemorySpace.VMEM)
    hbm = pl.BlockSpec(memory_space=pl.ANY)
    out_pad = pl.pallas_call(
        nol_kernel,
        out_shape=jax.ShapeDtypeStruct((b, NCP), jnp.float32),
        in_specs=[vmem, vmem, vmem, vmem, vmem, hbm, vmem, hbm, vmem],
        out_specs=vmem,
        scratch_shapes=[pltpu.VMEM((C, L2, HIDDEN), jnp.bfloat16),
                        pltpu.VMEM((HIDDEN, NCP), jnp.bfloat16),
                        pltpu.SemaphoreType.DMA((2,))],
    )(x_b, w1_b, b1_b, w2_b, b2_b, wfc1_r, bfc1_r, wfc2_p, bfc2_p)

    return out_pad[:, :NC]


# --------------------------------------------------- pure-JAX reference -----
def reference_forward(x_nchw, p):
    dn = ("NCHW", "OIHW", "NCHW")
    h = lax.conv_general_dilated(x_nchw, p["w1"], (1, 1), "VALID",
                                 dimension_numbers=dn,
                                 precision=lax.Precision.HIGHEST)
    h = jnp.maximum(h + p["b1"][None, :, None, None], 0.0)
    h = lax.conv_general_dilated(h, p["w2"], (1, 1), "VALID",
                                 dimension_numbers=dn,
                                 precision=lax.Precision.HIGHEST)
    h = jnp.maximum(h + p["b2"][None, :, None, None], 0.0)
    h = h.reshape(h.shape[0], -1)                      # (B, C*H2*W2), c-major
    h = jnp.maximum(jnp.dot(h, p["wfc1"].T, precision=lax.Precision.HIGHEST)
                    + p["bfc1"], 0.0)
    logits = jnp.dot(h, p["wfc2"].T, precision=lax.Precision.HIGHEST) + p["bfc2"]
    return jax.nn.softmax(logits, axis=1)


# ------------------------------------------------------------------ main ----
if __name__ == "__main__":
    key = jax.random.PRNGKey(0)
    ks = jax.random.split(key, 9)

    params = {
        "w1":   0.10 * jax.random.normal(ks[0], (C, 1, K, K), jnp.float32),
        "b1":   0.10 * jax.random.normal(ks[1], (C,), jnp.float32),
        "w2":   0.10 * jax.random.normal(ks[2], (C, C, K, K), jnp.float32),
        "b2":   0.10 * jax.random.normal(ks[3], (C,), jnp.float32),
        "wfc1": 0.05 * jax.random.normal(ks[4], (HIDDEN, INPUT_SIZE), jnp.float32),
        "bfc1": 0.05 * jax.random.normal(ks[5], (HIDDEN,), jnp.float32),
        "wfc2": 0.05 * jax.random.normal(ks[6], (NC, HIDDEN), jnp.float32),
        "bfc2": 0.05 * jax.random.normal(ks[7], (NC,), jnp.float32),
    }
    x = jax.random.normal(ks[8], (B, 1, H, W), jnp.float32)

    out = jax.block_until_ready(nol_nol_forward(x, params))
    # Note: kernel dots run bf16-on-MXU (same as previous default-precision
    # behavior); reference is HIGHEST-precision f32, so tolerance is 2e-3.
    ref = jax.block_until_ready(reference_forward(x, params))

    max_err = float(jnp.max(jnp.abs(out - ref)))
    if not bool(jnp.allclose(out, ref, atol=2e-3, rtol=2e-3)):
        raise AssertionError(f"kernel/reference mismatch, max abs err = {max_err}")

    print("KERNEL_OK")
</pallas_src>

<mosaic_0001>
module attributes {stable_mosaic.version = 11 : i64} {
  func.func @nol_kernel(%arg0: memref<8x384xf32, #tpu.memory_space<vmem>>, %arg1: memref<9x8x1xf32, #tpu.memory_space<vmem>>, %arg2: memref<8x1xf32, #tpu.memory_space<vmem>>, %arg3: memref<36x8x1xf32, #tpu.memory_space<vmem>>, %arg4: memref<8x1xf32, #tpu.memory_space<vmem>>, %arg5: memref<4x192x512xbf16, #tpu.memory_space<any>>, %arg6: memref<1x512xf32, #tpu.memory_space<vmem>>, %arg7: memref<512x128xbf16, #tpu.memory_space<any>>, %arg8: memref<1x128xf32, #tpu.memory_space<vmem>>, %arg9: memref<2x128xf32, #tpu.memory_space<vmem>>, %arg10: memref<4x192x512xbf16, #tpu.memory_space<vmem>>, %arg11: memref<512x128xbf16, #tpu.memory_space<vmem>>, %arg12: memref<2x!tpu.dma_semaphore, #tpu.memory_space<semaphore_mem>>) attributes {dimension_semantics = [], scalar_prefetch = 0 : i64, scratch_operands = 3 : i64, tpu.core_type = #tpu.core_type<tc>} {
    %c0_i32 = arith.constant 0 : i32
    %0 = tpu.memref_slice %arg12[%c0_i32] : memref<2x!tpu.dma_semaphore, #tpu.memory_space<semaphore_mem>> -> memref<1x!tpu.dma_semaphore, #tpu.memory_space<semaphore_mem>>
    %1 = tpu.memref_squeeze %0 : memref<1x!tpu.dma_semaphore, #tpu.memory_space<semaphore_mem>> -> memref<!tpu.dma_semaphore, #tpu.memory_space<semaphore_mem>>
    tpu.enqueue_dma source(%arg5 : memref<4x192x512xbf16, #tpu.memory_space<any>>) target(%arg10 : memref<4x192x512xbf16, #tpu.memory_space<vmem>>) target_semaphore(%1 : memref<!tpu.dma_semaphore, #tpu.memory_space<semaphore_mem>>)
    %c1_i32 = arith.constant 1 : i32
    %2 = tpu.memref_slice %arg12[%c1_i32] : memref<2x!tpu.dma_semaphore, #tpu.memory_space<semaphore_mem>> -> memref<1x!tpu.dma_semaphore, #tpu.memory_space<semaphore_mem>>
    %3 = tpu.memref_squeeze %2 : memref<1x!tpu.dma_semaphore, #tpu.memory_space<semaphore_mem>> -> memref<!tpu.dma_semaphore, #tpu.memory_space<semaphore_mem>>
    tpu.enqueue_dma source(%arg7 : memref<512x128xbf16, #tpu.memory_space<any>>) target(%arg11 : memref<512x128xbf16, #tpu.memory_space<vmem>>) target_semaphore(%3 : memref<!tpu.dma_semaphore, #tpu.memory_space<semaphore_mem>>)
    %c0 = arith.constant 0 : index
    %c0_0 = arith.constant 0 : index
    %4 = vector.load %arg0[%c0, %c0_0] : memref<8x384xf32, #tpu.memory_space<vmem>>, vector<8x384xf32>
    %c0_1 = arith.constant 0 : index
    %c0_2 = arith.constant 0 : index
    %c0_3 = arith.constant 0 : index
    %5 = vector.load %arg1[%c0_1, %c0_2, %c0_3] : memref<9x8x1xf32, #tpu.memory_space<vmem>>, vector<9x8x1xf32>
    %c0_4 = arith.constant 0 : index
    %c0_5 = arith.constant 0 : index
    %c0_6 = arith.constant 0 : index
    %6 = vector.load %arg3[%c0_4, %c0_5, %c0_6] : memref<36x8x1xf32, #tpu.memory_space<vmem>>, vector<36x8x1xf32>
    %7 = vector.extract_strided_slice %4 {offsets = [0, 0], sizes = [8, 256], strides = [1, 1]} : vector<8x384xf32> to vector<8x256xf32>
    %8 = vector.extract_strided_slice %5 {offsets = [0, 0, 0], sizes = [1, 8, 1], strides = [1, 1, 1]} : vector<9x8x1xf32> to vector<1x8x1xf32>
    %9 = vector.shape_cast %8 : vector<1x8x1xf32> to vector<8x1xf32>
    %10 = vector.broadcast %9 : vector<8x1xf32> to vector<8x256xf32>
    %11 = arith.mulf %7, %10 : vector<8x256xf32>
    %12 = vector.extract_strided_slice %4 {offsets = [0, 1], sizes = [8, 256], strides = [1, 1]} : vector<8x384xf32> to vector<8x256xf32>
    %13 = vector.extract_strided_slice %5 {offsets = [1, 0, 0], sizes = [1, 8, 1], strides = [1, 1, 1]} : vector<9x8x1xf32> to vector<1x8x1xf32>
    %14 = vector.shape_cast %13 : vector<1x8x1xf32> to vector<8x1xf32>
    %15 = vector.broadcast %14 : vector<8x1xf32> to vector<8x256xf32>
    %16 = arith.mulf %12, %15 : vector<8x256xf32>
    %17 = arith.addf %11, %16 : vector<8x256xf32>
    %18 = vector.extract_strided_slice %4 {offsets = [0, 2], sizes = [8, 256], strides = [1, 1]} : vector<8x384xf32> to vector<8x256xf32>
    %19 = vector.extract_strided_slice %5 {offsets = [2, 0, 0], sizes = [1, 8, 1], strides = [1, 1, 1]} : vector<9x8x1xf32> to vector<1x8x1xf32>
    %20 = vector.shape_cast %19 : vector<1x8x1xf32> to vector<8x1xf32>
    %21 = vector.broadcast %20 : vector<8x1xf32> to vector<8x256xf32>
    %22 = arith.mulf %18, %21 : vector<8x256xf32>
    %23 = arith.addf %17, %22 : vector<8x256xf32>
    %24 = vector.extract_strided_slice %4 {offsets = [0, 16], sizes = [8, 256], strides = [1, 1]} : vector<8x384xf32> to vector<8x256xf32>
    %25 = vector.extract_strided_slice %5 {offsets = [3, 0, 0], sizes = [1, 8, 1], strides = [1, 1, 1]} : vector<9x8x1xf32> to vector<1x8x1xf32>
    %26 = vector.shape_cast %25 : vector<1x8x1xf32> to vector<8x1xf32>
    %27 = vector.broadcast %26 : vector<8x1xf32> to vector<8x256xf32>
    %28 = arith.mulf %24, %27 : vector<8x256xf32>
    %29 = arith.addf %23, %28 : vector<8x256xf32>
    %30 = vector.extract_strided_slice %4 {offsets = [0, 17], sizes = [8, 256], strides = [1, 1]} : vector<8x384xf32> to vector<8x256xf32>
    %31 = vector.extract_strided_slice %5 {offsets = [4, 0, 0], sizes = [1, 8, 1], strides = [1, 1, 1]} : vector<9x8x1xf32> to vector<1x8x1xf32>
    %32 = vector.shape_cast %31 : vector<1x8x1xf32> to vector<8x1xf32>
    %33 = vector.broadcast %32 : vector<8x1xf32> to vector<8x256xf32>
    %34 = arith.mulf %30, %33 : vector<8x256xf32>
    %35 = arith.addf %29, %34 : vector<8x256xf32>
    %36 = vector.extract_strided_slice %4 {offsets = [0, 18], sizes = [8, 256], strides = [1, 1]} : vector<8x384xf32> to vector<8x256xf32>
    %37 = vector.extract_strided_slice %5 {offsets = [5, 0, 0], sizes = [1, 8, 1], strides = [1, 1, 1]} : vector<9x8x1xf32> to vector<1x8x1xf32>
    %38 = vector.shape_cast %37 : vector<1x8x1xf32> to vector<8x1xf32>
    %39 = vector.broadcast %38 : vector<8x1xf32> to vector<8x256xf32>
    %40 = arith.mulf %36, %39 : vector<8x256xf32>
    %41 = arith.addf %35, %40 : vector<8x256xf32>
    %42 = vector.extract_strided_slice %4 {offsets = [0, 32], sizes = [8, 256], strides = [1, 1]} : vector<8x384xf32> to vector<8x256xf32>
    %43 = vector.extract_strided_slice %5 {offsets = [6, 0, 0], sizes = [1, 8, 1], strides = [1, 1, 1]} : vector<9x8x1xf32> to vector<1x8x1xf32>
    %44 = vector.shape_cast %43 : vector<1x8x1xf32> to vector<8x1xf32>
    %45 = vector.broadcast %44 : vector<8x1xf32> to vector<8x256xf32>
    %46 = arith.mulf %42, %45 : vector<8x256xf32>
    %47 = arith.addf %41, %46 : vector<8x256xf32>
    %48 = vector.extract_strided_slice %4 {offsets = [0, 33], sizes = [8, 256], strides = [1, 1]} : vector<8x384xf32> to vector<8x256xf32>
    %49 = vector.extract_strided_slice %5 {offsets = [7, 0, 0], sizes = [1, 8, 1], strides = [1, 1, 1]} : vector<9x8x1xf32> to vector<1x8x1xf32>
    %50 = vector.shape_cast %49 : vector<1x8x1xf32> to vector<8x1xf32>
    %51 = vector.broadcast %50 : vector<8x1xf32> to vector<8x256xf32>
    %52 = arith.mulf %48, %51 : vector<8x256xf32>
    %53 = arith.addf %47, %52 : vector<8x256xf32>
    %54 = vector.extract_strided_slice %4 {offsets = [0, 34], sizes = [8, 256], strides = [1, 1]} : vector<8x384xf32> to vector<8x256xf32>
    %55 = vector.extract_strided_slice %5 {offsets = [8, 0, 0], sizes = [1, 8, 1], strides = [1, 1, 1]} : vector<9x8x1xf32> to vector<1x8x1xf32>
    %56 = vector.shape_cast %55 : vector<1x8x1xf32> to vector<8x1xf32>
    %57 = vector.broadcast %56 : vector<8x1xf32> to vector<8x256xf32>
    %58 = arith.mulf %54, %57 : vector<8x256xf32>
    %59 = arith.addf %53, %58 : vector<8x256xf32>
    %c0_7 = arith.constant 0 : index
    %c0_8 = arith.constant 0 : index
    %60 = vector.load %arg2[%c0_7, %c0_8] : memref<8x1xf32, #tpu.memory_space<vmem>>, vector<8x1xf32>
    %61 = vector.broadcast %60 : vector<8x1xf32> to vector<8x256xf32>
    %62 = arith.addf %59, %61 : vector<8x256xf32>
    %cst = arith.constant 0.000000e+00 : f32
    %63 = vector.broadcast %cst : f32 to vector<8x256xf32>
    %64 = arith.maximumf %62, %63 : vector<8x256xf32>
    %65 = vector.extract_strided_slice %64 {offsets = [0, 0], sizes = [2, 256], strides = [1, 1]} : vector<8x256xf32> to vector<2x256xf32>
    %66 = tpu.concatenate %65, %65, %65, %65 in 0 : vector<2x256xf32>, vector<2x256xf32>, vector<2x256xf32>, vector<2x256xf32> -> vector<8x256xf32>
    %67 = vector.extract_strided_slice %66 {offsets = [0, 0], sizes = [8, 192], strides = [1, 1]} : vector<8x256xf32> to vector<8x192xf32>
    %68 = vector.extract_strided_slice %6 {offsets = [0, 0, 0], sizes = [1, 8, 1], strides = [1, 1, 1]} : vector<36x8x1xf32> to vector<1x8x1xf32>
    %69 = vector.shape_cast %68 : vector<1x8x1xf32> to vector<8x1xf32>
    %70 = vector.broadcast %69 : vector<8x1xf32> to vector<8x192xf32>
    %71 = arith.mulf %67, %70 : vector<8x192xf32>
    %72 = vector.extract_strided_slice %66 {offsets = [0, 1], sizes = [8, 192], strides = [1, 1]} : vector<8x256xf32> to vector<8x192xf32>
    %73 = vector.extract_strided_slice %6 {offsets = [1, 0, 0], sizes = [1, 8, 1], strides = [1, 1, 1]} : vector<36x8x1xf32> to vector<1x8x1xf32>
    %74 = vector.shape_cast %73 : vector<1x8x1xf32> to vector<8x1xf32>
    %75 = vector.broadcast %74 : vector<8x1xf32> to vector<8x192xf32>
    %76 = arith.mulf %72, %75 : vector<8x192xf32>
    %77 = arith.addf %71, %76 : vector<8x192xf32>
    %78 = vector.extract_strided_slice %66 {offsets = [0, 2], sizes = [8, 192], strides = [1, 1]} : vector<8x256xf32> to vector<8x192xf32>
    %79 = vector.extract_strided_slice %6 {offsets = [2, 0, 0], sizes = [1, 8, 1], strides = [1, 1, 1]} : vector<36x8x1xf32> to vector<1x8x1xf32>
    %80 = vector.shape_cast %79 : vector<1x8x1xf32> to vector<8x1xf32>
    %81 = vector.broadcast %80 : vector<8x1xf32> to vector<8x192xf32>
    %82 = arith.mulf %78, %81 : vector<8x192xf32>
    %83 = arith.addf %77, %82 : vector<8x192xf32>
    %84 = vector.extract_strided_slice %66 {offsets = [0, 16], sizes = [8, 192], strides = [1, 1]} : vector<8x256xf32> to vector<8x192xf32>
    %85 = vector.extract_strided_slice %6 {offsets = [3, 0, 0], sizes = [1, 8, 1], strides = [1, 1, 1]} : vector<36x8x1xf32> to vector<1x8x1xf32>
    %86 = vector.shape_cast %85 : vector<1x8x1xf32> to vector<8x1xf32>
    %87 = vector.broadcast %86 : vector<8x1xf32> to vector<8x192xf32>
    %88 = arith.mulf %84, %87 : vector<8x192xf32>
    %89 = arith.addf %83, %88 : vector<8x192xf32>
    %90 = vector.extract_strided_slice %66 {offsets = [0, 17], sizes = [8, 192], strides = [1, 1]} : vector<8x256xf32> to vector<8x192xf32>
    %91 = vector.extract_strided_slice %6 {offsets = [4, 0, 0], sizes = [1, 8, 1], strides = [1, 1, 1]} : vector<36x8x1xf32> to vector<1x8x1xf32>
    %92 = vector.shape_cast %91 : vector<1x8x1xf32> to vector<8x1xf32>
    %93 = vector.broadcast %92 : vector<8x1xf32> to vector<8x192xf32>
    %94 = arith.mulf %90, %93 : vector<8x192xf32>
    %95 = arith.addf %89, %94 : vector<8x192xf32>
    %96 = vector.extract_strided_slice %66 {offsets = [0, 18], sizes = [8, 192], strides = [1, 1]} : vector<8x256xf32> to vector<8x192xf32>
    %97 = vector.extract_strided_slice %6 {offsets = [5, 0, 0], sizes = [1, 8, 1], strides = [1, 1, 1]} : vector<36x8x1xf32> to vector<1x8x1xf32>
    %98 = vector.shape_cast %97 : vector<1x8x1xf32> to vector<8x1xf32>
    %99 = vector.broadcast %98 : vector<8x1xf32> to vector<8x192xf32>
    %100 = arith.mulf %96, %99 : vector<8x192xf32>
    %101 = arith.addf %95, %100 : vector<8x192xf32>
    %102 = vector.extract_strided_slice %66 {offsets = [0, 32], sizes = [8, 192], strides = [1, 1]} : vector<8x256xf32> to vector<8x192xf32>
    %103 = vector.extract_strided_slice %6 {offsets = [6, 0, 0], sizes = [1, 8, 1], strides = [1, 1, 1]} : vector<36x8x1xf32> to vector<1x8x1xf32>
    %104 = vector.shape_cast %103 : vector<1x8x1xf32> to vector<8x1xf32>
    %105 = vector.broadcast %104 : vector<8x1xf32> to vector<8x192xf32>
    %106 = arith.mulf %102, %105 : vector<8x192xf32>
    %107 = arith.addf %101, %106 : vector<8x192xf32>
    %108 = vector.extract_strided_slice %66 {offsets = [0, 33], sizes = [8, 192], strides = [1, 1]} : vector<8x256xf32> to vector<8x192xf32>
    %109 = vector.extract_strided_slice %6 {offsets = [7, 0, 0], sizes = [1, 8, 1], strides = [1, 1, 1]} : vector<36x8x1xf32> to vector<1x8x1xf32>
    %110 = vector.shape_cast %109 : vector<1x8x1xf32> to vector<8x1xf32>
    %111 = vector.broadcast %110 : vector<8x1xf32> to vector<8x192xf32>
    %112 = arith.mulf %108, %111 : vector<8x192xf32>
    %113 = arith.addf %107, %112 : vector<8x192xf32>
    %114 = vector.extract_strided_slice %66 {offsets = [0, 34], sizes = [8, 192], strides = [1, 1]} : vector<8x256xf32> to vector<8x192xf32>
    %115 = vector.extract_strided_slice %6 {offsets = [8, 0, 0], sizes = [1, 8, 1], strides = [1, 1, 1]} : vector<36x8x1xf32> to vector<1x8x1xf32>
    %116 = vector.shape_cast %115 : vector<1x8x1xf32> to vector<8x1xf32>
    %117 = vector.broadcast %116 : vector<8x1xf32> to vector<8x192xf32>
    %118 = arith.mulf %114, %117 : vector<8x192xf32>
    %119 = arith.addf %113, %118 : vector<8x192xf32>
    %120 = vector.extract_strided_slice %64 {offsets = [2, 0], sizes = [2, 256], strides = [1, 1]} : vector<8x256xf32> to vector<2x256xf32>
    %121 = tpu.concatenate %120, %120, %120, %120 in 0 : vector<2x256xf32>, vector<2x256xf32>, vector<2x256xf32>, vector<2x256xf32> -> vector<8x256xf32>
    %122 = vector.extract_strided_slice %121 {offsets = [0, 0], sizes = [8, 192], strides = [1, 1]} : vector<8x256xf32> to vector<8x192xf32>
    %123 = vector.extract_strided_slice %6 {offsets = [9, 0, 0], sizes = [1, 8, 1], strides = [1, 1, 1]} : vector<36x8x1xf32> to vector<1x8x1xf32>
    %124 = vector.shape_cast %123 : vector<1x8x1xf32> to vector<8x1xf32>
    %125 = vector.broadcast %124 : vector<8x1xf32> to vector<8x192xf32>
    %126 = arith.mulf %122, %125 : vector<8x192xf32>
    %127 = arith.addf %119, %126 : vector<8x192xf32>
    %128 = vector.extract_strided_slice %121 {offsets = [0, 1], sizes = [8, 192], strides = [1, 1]} : vector<8x256xf32> to vector<8x192xf32>
    %129 = vector.extract_strided_slice %6 {offsets = [10, 0, 0], sizes = [1, 8, 1], strides = [1, 1, 1]} : vector<36x8x1xf32> to vector<1x8x1xf32>
    %130 = vector.shape_cast %129 : vector<1x8x1xf32> to vector<8x1xf32>
    %131 = vector.broadcast %130 : vector<8x1xf32> to vector<8x192xf32>
    %132 = arith.mulf %128, %131 : vector<8x192xf32>
    %133 = arith.addf %127, %132 : vector<8x192xf32>
    %134 = vector.extract_strided_slice %121 {offsets = [0, 2], sizes = [8, 192], strides = [1, 1]} : vector<8x256xf32> to vector<8x192xf32>
    %135 = vector.extract_strided_slice %6 {offsets = [11, 0, 0], sizes = [1, 8, 1], strides = [1, 1, 1]} : vector<36x8x1xf32> to vector<1x8x1xf32>
    %136 = vector.shape_cast %135 : vector<1x8x1xf32> to vector<8x1xf32>
    %137 = vector.broadcast %136 : vector<8x1xf32> to vector<8x192xf32>
    %138 = arith.mulf %134, %137 : vector<8x192xf32>
    %139 = arith.addf %133, %138 : vector<8x192xf32>
    %140 = vector.extract_strided_slice %121 {offsets = [0, 16], sizes = [8, 192], strides = [1, 1]} : vector<8x256xf32> to vector<8x192xf32>
    %141 = vector.extract_strided_slice %6 {offsets = [12, 0, 0], sizes = [1, 8, 1], strides = [1, 1, 1]} : vector<36x8x1xf32> to vector<1x8x1xf32>
    %142 = vector.shape_cast %141 : vector<1x8x1xf32> to vector<8x1xf32>
    %143 = vector.broadcast %142 : vector<8x1xf32> to vector<8x192xf32>
    %144 = arith.mulf %140, %143 : vector<8x192xf32>
    %145 = arith.addf %139, %144 : vector<8x192xf32>
    %146 = vector.extract_strided_slice %121 {offsets = [0, 17], sizes = [8, 192], strides = [1, 1]} : vector<8x256xf32> to vector<8x192xf32>
    %147 = vector.extract_strided_slice %6 {offsets = [13, 0, 0], sizes = [1, 8, 1], strides = [1, 1, 1]} : vector<36x8x1xf32> to vector<1x8x1xf32>
    %148 = vector.shape_cast %147 : vector<1x8x1xf32> to vector<8x1xf32>
    %149 = vector.broadcast %148 : vector<8x1xf32> to vector<8x192xf32>
    %150 = arith.mulf %146, %149 : vector<8x192xf32>
    %151 = arith.addf %145, %150 : vector<8x192xf32>
    %152 = vector.extract_strided_slice %121 {offsets = [0, 18], sizes = [8, 192], strides = [1, 1]} : vector<8x256xf32> to vector<8x192xf32>
    %153 = vector.extract_strided_slice %6 {offsets = [14, 0, 0], sizes = [1, 8, 1], strides = [1, 1, 1]} : vector<36x8x1xf32> to vector<1x8x1xf32>
    %154 = vector.shape_cast %153 : vector<1x8x1xf32> to vector<8x1xf32>
    %155 = vector.broadcast %154 : vector<8x1xf32> to vector<8x192xf32>
    %156 = arith.mulf %152, %155 : vector<8x192xf32>
    %157 = arith.addf %151, %156 : vector<8x192xf32>
    %158 = vector.extract_strided_slice %121 {offsets = [0, 32], sizes = [8, 192], strides = [1, 1]} : vector<8x256xf32> to vector<8x192xf32>
    %159 = vector.extract_strided_slice %6 {offsets = [15, 0, 0], sizes = [1, 8, 1], strides = [1, 1, 1]} : vector<36x8x1xf32> to vector<1x8x1xf32>
    %160 = vector.shape_cast %159 : vector<1x8x1xf32> to vector<8x1xf32>
    %161 = vector.broadcast %160 : vector<8x1xf32> to vector<8x192xf32>
    %162 = arith.mulf %158, %161 : vector<8x192xf32>
    %163 = arith.addf %157, %162 : vector<8x192xf32>
    %164 = vector.extract_strided_slice %121 {offsets = [0, 33], sizes = [8, 192], strides = [1, 1]} : vector<8x256xf32> to vector<8x192xf32>
    %165 = vector.extract_strided_slice %6 {offsets = [16, 0, 0], sizes = [1, 8, 1], strides = [1, 1, 1]} : vector<36x8x1xf32> to vector<1x8x1xf32>
    %166 = vector.shape_cast %165 : vector<1x8x1xf32> to vector<8x1xf32>
    %167 = vector.broadcast %166 : vector<8x1xf32> to vector<8x192xf32>
    %168 = arith.mulf %164, %167 : vector<8x192xf32>
    %169 = arith.addf %163, %168 : vector<8x192xf32>
    %170 = vector.extract_strided_slice %121 {offsets = [0, 34], sizes = [8, 192], strides = [1, 1]} : vector<8x256xf32> to vector<8x192xf32>
    %171 = vector.extract_strided_slice %6 {offsets = [17, 0, 0], sizes = [1, 8, 1], strides = [1, 1, 1]} : vector<36x8x1xf32> to vector<1x8x1xf32>
    %172 = vector.shape_cast %171 : vector<1x8x1xf32> to vector<8x1xf32>
    %173 = vector.broadcast %172 : vector<8x1xf32> to vector<8x192xf32>
    %174 = arith.mulf %170, %173 : vector<8x192xf32>
    %175 = arith.addf %169, %174 : vector<8x192xf32>
    %176 = vector.extract_strided_slice %64 {offsets = [4, 0], sizes = [2, 256], strides = [1, 1]} : vector<8x256xf32> to vector<2x256xf32>
    %177 = tpu.concatenate %176, %176, %176, %176 in 0 : vector<2x256xf32>, vector<2x256xf32>, vector<2x256xf32>, vector<2x256xf32> -> vector<8x256xf32>
    %178 = vector.extract_strided_slice %177 {offsets = [0, 0], sizes = [8, 192], strides = [1, 1]} : vector<8x256xf32> to vector<8x192xf32>
    %179 = vector.extract_strided_slice %6 {offsets = [18, 0, 0], sizes = [1, 8, 1], strides = [1, 1, 1]} : vector<36x8x1xf32> to vector<1x8x1xf32>
    %180 = vector.shape_cast %179 : vector<1x8x1xf32> to vector<8x1xf32>
    %181 = vector.broadcast %180 : vector<8x1xf32> to vector<8x192xf32>
    %182 = arith.mulf %178, %181 : vector<8x192xf32>
    %183 = arith.addf %175, %182 : vector<8x192xf32>
    %184 = vector.extract_strided_slice %177 {offsets = [0, 1], sizes = [8, 192], strides = [1, 1]} : vector<8x256xf32> to vector<8x192xf32>
    %185 = vector.extract_strided_slice %6 {offsets = [19, 0, 0], sizes = [1, 8, 1], strides = [1, 1, 1]} : vector<36x8x1xf32> to vector<1x8x1xf32>
    %186 = vector.shape_cast %185 : vector<1x8x1xf32> to vector<8x1xf32>
    %187 = vector.broadcast %186 : vector<8x1xf32> to vector<8x192xf32>
    %188 = arith.mulf %184, %187 : vector<8x192xf32>
    %189 = arith.addf %183, %188 : vector<8x192xf32>
    %190 = vector.extract_strided_slice %177 {offsets = [0, 2], sizes = [8, 192], strides = [1, 1]} : vector<8x256xf32> to vector<8x192xf32>
    %191 = vector.extract_strided_slice %6 {offsets = [20, 0, 0], sizes = [1, 8, 1], strides = [1, 1, 1]} : vector<36x8x1xf32> to vector<1x8x1xf32>
    %192 = vector.shape_cast %191 : vector<1x8x1xf32> to vector<8x1xf32>
    %193 = vector.broadcast %192 : vector<8x1xf32> to vector<8x192xf32>
    %194 = arith.mulf %190, %193 : vector<8x192xf32>
    %195 = arith.addf %189, %194 : vector<8x192xf32>
    %196 = vector.extract_strided_slice %177 {offsets = [0, 16], sizes = [8, 192], strides = [1, 1]} : vector<8x256xf32> to vector<8x192xf32>
    %197 = vector.extract_strided_slice %6 {offsets = [21, 0, 0], sizes = [1, 8, 1], strides = [1, 1, 1]} : vector<36x8x1xf32> to vector<1x8x1xf32>
    %198 = vector.shape_cast %197 : vector<1x8x1xf32> to vector<8x1xf32>
    %199 = vector.broadcast %198 : vector<8x1xf32> to vector<8x192xf32>
    %200 = arith.mulf %196, %199 : vector<8x192xf32>
    %201 = arith.addf %195, %200 : vector<8x192xf32>
    %202 = vector.extract_strided_slice %177 {offsets = [0, 17], sizes = [8, 192], strides = [1, 1]} : vector<8x256xf32> to vector<8x192xf32>
    %203 = vector.extract_strided_slice %6 {offsets = [22, 0, 0], sizes = [1, 8, 1], strides = [1, 1, 1]} : vector<36x8x1xf32> to vector<1x8x1xf32>
    %204 = vector.shape_cast %203 : vector<1x8x1xf32> to vector<8x1xf32>
    %205 = vector.broadcast %204 : vector<8x1xf32> to vector<8x192xf32>
    %206 = arith.mulf %202, %205 : vector<8x192xf32>
    %207 = arith.addf %201, %206 : vector<8x192xf32>
    %208 = vector.extract_strided_slice %177 {offsets = [0, 18], sizes = [8, 192], strides = [1, 1]} : vector<8x256xf32> to vector<8x192xf32>
    %209 = vector.extract_strided_slice %6 {offsets = [23, 0, 0], sizes = [1, 8, 1], strides = [1, 1, 1]} : vector<36x8x1xf32> to vector<1x8x1xf32>
    %210 = vector.shape_cast %209 : vector<1x8x1xf32> to vector<8x1xf32>
    %211 = vector.broadcast %210 : vector<8x1xf32> to vector<8x192xf32>
    %212 = arith.mulf %208, %211 : vector<8x192xf32>
    %213 = arith.addf %207, %212 : vector<8x192xf32>
    %214 = vector.extract_strided_slice %177 {offsets = [0, 32], sizes = [8, 192], strides = [1, 1]} : vector<8x256xf32> to vector<8x192xf32>
    %215 = vector.extract_strided_slice %6 {offsets = [24, 0, 0], sizes = [1, 8, 1], strides = [1, 1, 1]} : vector<36x8x1xf32> to vector<1x8x1xf32>
    %216 = vector.shape_cast %215 : vector<1x8x1xf32> to vector<8x1xf32>
    %217 = vector.broadcast %216 : vector<8x1xf32> to vector<8x192xf32>
    %218 = arith.mulf %214, %217 : vector<8x192xf32>
    %219 = arith.addf %213, %218 : vector<8x192xf32>
    %220 = vector.extract_strided_slice %177 {offsets = [0, 33], sizes = [8, 192], strides = [1, 1]} : vector<8x256xf32> to vector<8x192xf32>
    %221 = vector.extract_strided_slice %6 {offsets = [25, 0, 0], sizes = [1, 8, 1], strides = [1, 1, 1]} : vector<36x8x1xf32> to vector<1x8x1xf32>
    %222 = vector.shape_cast %221 : vector<1x8x1xf32> to vector<8x1xf32>
    %223 = vector.broadcast %222 : vector<8x1xf32> to vector<8x192xf32>
    %224 = arith.mulf %220, %223 : vector<8x192xf32>
    %225 = arith.addf %219, %224 : vector<8x192xf32>
    %226 = vector.extract_strided_slice %177 {offsets = [0, 34], sizes = [8, 192], strides = [1, 1]} : vector<8x256xf32> to vector<8x192xf32>
    %227 = vector.extract_strided_slice %6 {offsets = [26, 0, 0], sizes = [1, 8, 1], strides = [1, 1, 1]} : vector<36x8x1xf32> to vector<1x8x1xf32>
    %228 = vector.shape_cast %227 : vector<1x8x1xf32> to vector<8x1xf32>
    %229 = vector.broadcast %228 : vector<8x1xf32> to vector<8x192xf32>
    %230 = arith.mulf %226, %229 : vector<8x192xf32>
    %231 = arith.addf %225, %230 : vector<8x192xf32>
    %232 = vector.extract_strided_slice %64 {offsets = [6, 0], sizes = [2, 256], strides = [1, 1]} : vector<8x256xf32> to vector<2x256xf32>
    %233 = tpu.concatenate %232, %232, %232, %232 in 0 : vector<2x256xf32>, vector<2x256xf32>, vector<2x256xf32>, vector<2x256xf32> -> vector<8x256xf32>
    %234 = vector.extract_strided_slice %233 {offsets = [0, 0], sizes = [8, 192], strides = [1, 1]} : vector<8x256xf32> to vector<8x192xf32>
    %235 = vector.extract_strided_slice %6 {offsets = [27, 0, 0], sizes = [1, 8, 1], strides = [1, 1, 1]} : vector<36x8x1xf32> to vector<1x8x1xf32>
    %236 = vector.shape_cast %235 : vector<1x8x1xf32> to vector<8x1xf32>
    %237 = vector.broadcast %236 : vector<8x1xf32> to vector<8x192xf32>
    %238 = arith.mulf %234, %237 : vector<8x192xf32>
    %239 = arith.addf %231, %238 : vector<8x192xf32>
    %240 = vector.extract_strided_slice %233 {offsets = [0, 1], sizes = [8, 192], strides = [1, 1]} : vector<8x256xf32> to vector<8x192xf32>
    %241 = vector.extract_strided_slice %6 {offsets = [28, 0, 0], sizes = [1, 8, 1], strides = [1, 1, 1]} : vector<36x8x1xf32> to vector<1x8x1xf32>
    %242 = vector.shape_cast %241 : vector<1x8x1xf32> to vector<8x1xf32>
    %243 = vector.broadcast %242 : vector<8x1xf32> to vector<8x192xf32>
    %244 = arith.mulf %240, %243 : vector<8x192xf32>
    %245 = arith.addf %239, %244 : vector<8x192xf32>
    %246 = vector.extract_strided_slice %233 {offsets = [0, 2], sizes = [8, 192], strides = [1, 1]} : vector<8x256xf32> to vector<8x192xf32>
    %247 = vector.extract_strided_slice %6 {offsets = [29, 0, 0], sizes = [1, 8, 1], strides = [1, 1, 1]} : vector<36x8x1xf32> to vector<1x8x1xf32>
    %248 = vector.shape_cast %247 : vector<1x8x1xf32> to vector<8x1xf32>
    %249 = vector.broadcast %248 : vector<8x1xf32> to vector<8x192xf32>
    %250 = arith.mulf %246, %249 : vector<8x192xf32>
    %251 = arith.addf %245, %250 : vector<8x192xf32>
    %252 = vector.extract_strided_slice %233 {offsets = [0, 16], sizes = [8, 192], strides = [1, 1]} : vector<8x256xf32> to vector<8x192xf32>
    %253 = vector.extract_strided_slice %6 {offsets = [30, 0, 0], sizes = [1, 8, 1], strides = [1, 1, 1]} : vector<36x8x1xf32> to vector<1x8x1xf32>
    %254 = vector.shape_cast %253 : vector<1x8x1xf32> to vector<8x1xf32>
    %255 = vector.broadcast %254 : vector<8x1xf32> to vector<8x192xf32>
    %256 = arith.mulf %252, %255 : vector<8x192xf32>
    %257 = arith.addf %251, %256 : vector<8x192xf32>
    %258 = vector.extract_strided_slice %233 {offsets = [0, 17], sizes = [8, 192], strides = [1, 1]} : vector<8x256xf32> to vector<8x192xf32>
    %259 = vector.extract_strided_slice %6 {offsets = [31, 0, 0], sizes = [1, 8, 1], strides = [1, 1, 1]} : vector<36x8x1xf32> to vector<1x8x1xf32>
    %260 = vector.shape_cast %259 : vector<1x8x1xf32> to vector<8x1xf32>
    %261 = vector.broadcast %260 : vector<8x1xf32> to vector<8x192xf32>
    %262 = arith.mulf %258, %261 : vector<8x192xf32>
    %263 = arith.addf %257, %262 : vector<8x192xf32>
    %264 = vector.extract_strided_slice %233 {offsets = [0, 18], sizes = [8, 192], strides = [1, 1]} : vector<8x256xf32> to vector<8x192xf32>
    %265 = vector.extract_strided_slice %6 {offsets = [32, 0, 0], sizes = [1, 8, 1], strides = [1, 1, 1]} : vector<36x8x1xf32> to vector<1x8x1xf32>
    %266 = vector.shape_cast %265 : vector<1x8x1xf32> to vector<8x1xf32>
    %267 = vector.broadcast %266 : vector<8x1xf32> to vector<8x192xf32>
    %268 = arith.mulf %264, %267 : vector<8x192xf32>
    %269 = arith.addf %263, %268 : vector<8x192xf32>
    %270 = vector.extract_strided_slice %233 {offsets = [0, 32], sizes = [8, 192], strides = [1, 1]} : vector<8x256xf32> to vector<8x192xf32>
    %271 = vector.extract_strided_slice %6 {offsets = [33, 0, 0], sizes = [1, 8, 1], strides = [1, 1, 1]} : vector<36x8x1xf32> to vector<1x8x1xf32>
    %272 = vector.shape_cast %271 : vector<1x8x1xf32> to vector<8x1xf32>
    %273 = vector.broadcast %272 : vector<8x1xf32> to vector<8x192xf32>
    %274 = arith.mulf %270, %273 : vector<8x192xf32>
    %275 = arith.addf %269, %274 : vector<8x192xf32>
    %276 = vector.extract_strided_slice %233 {offsets = [0, 33], sizes = [8, 192], strides = [1, 1]} : vector<8x256xf32> to vector<8x192xf32>
    %277 = vector.extract_strided_slice %6 {offsets = [34, 0, 0], sizes = [1, 8, 1], strides = [1, 1, 1]} : vector<36x8x1xf32> to vector<1x8x1xf32>
    %278 = vector.shape_cast %277 : vector<1x8x1xf32> to vector<8x1xf32>
    %279 = vector.broadcast %278 : vector<8x1xf32> to vector<8x192xf32>
    %280 = arith.mulf %276, %279 : vector<8x192xf32>
    %281 = arith.addf %275, %280 : vector<8x192xf32>
    %282 = vector.extract_strided_slice %233 {offsets = [0, 34], sizes = [8, 192], strides = [1, 1]} : vector<8x256xf32> to vector<8x192xf32>
    %283 = vector.extract_strided_slice %6 {offsets = [35, 0, 0], sizes = [1, 8, 1], strides = [1, 1, 1]} : vector<36x8x1xf32> to vector<1x8x1xf32>
    %284 = vector.shape_cast %283 : vector<1x8x1xf32> to vector<8x1xf32>
    %285 = vector.broadcast %284 : vector<8x1xf32> to vector<8x192xf32>
    %286 = arith.mulf %282, %285 : vector<8x192xf32>
    %287 = arith.addf %281, %286 : vector<8x192xf32>
    %c0_9 = arith.constant 0 : index
    %c0_10 = arith.constant 0 : index
    %288 = vector.load %arg4[%c0_9, %c0_10] : memref<8x1xf32, #tpu.memory_space<vmem>>, vector<8x1xf32>
    %289 = vector.broadcast %288 : vector<8x1xf32> to vector<8x192xf32>
    %290 = arith.addf %287, %289 : vector<8x192xf32>
    %cst_11 = arith.constant 0.000000e+00 : f32
    %291 = vector.broadcast %cst_11 : f32 to vector<8x192xf32>
    %292 = arith.maximumf %290, %291 : vector<8x192xf32>
    %c0_i32_12 = arith.constant 0 : i32
    %293 = tpu.memref_slice %arg12[%c0_i32_12] : memref<2x!tpu.dma_semaphore, #tpu.memory_space<semaphore_mem>> -> memref<1x!tpu.dma_semaphore, #tpu.memory_space<semaphore_mem>>
    %294 = tpu.memref_squeeze %293 : memref<1x!tpu.dma_semaphore, #tpu.memory_space<semaphore_mem>> -> memref<!tpu.dma_semaphore, #tpu.memory_space<semaphore_mem>>
    tpu.wait_dma2 semaphore(%294 : memref<!tpu.dma_semaphore, #tpu.memory_space<semaphore_mem>>) src(%arg5 : memref<4x192x512xbf16, #tpu.memory_space<any>>) dst(%arg10 : memref<4x192x512xbf16, #tpu.memory_space<vmem>>)
    %295 = vector.extract_strided_slice %292 {offsets = [0, 0], sizes = [2, 192], strides = [1, 1]} : vector<8x192xf32> to vector<2x192xf32>
    %296 = arith.truncf %295 : vector<2x192xf32> to vector<2x192xbf16>
    %c0_13 = arith.constant 0 : index
    %c0_14 = arith.constant 0 : index
    %c0_15 = arith.constant 0 : index
    %297 = vector.load %arg10[%c0_13, %c0_14, %c0_15] : memref<4x192x512xbf16, #tpu.memory_space<vmem>>, vector<1x192x512xbf16>
    %298 = vector.shape_cast %297 : vector<1x192x512xbf16> to vector<192x512xbf16>
    %cst_16 = arith.constant dense<0.000000e+00> : vector<2x512xf32>
    %299 = tpu.matmul %296, %298, %cst_16 {dimension_numbers = #tpu.dot_dimension_numbers<[1], [0], [0], [1], [0, 0, 1, 1], [], []>} : vector<2x192xbf16>, vector<192x512xbf16>, vector<2x512xf32> -> vector<2x512xf32>
    %300 = vector.extract_strided_slice %292 {offsets = [2, 0], sizes = [2, 192], strides = [1, 1]} : vector<8x192xf32> to vector<2x192xf32>
    %301 = arith.truncf %300 : vector<2x192xf32> to vector<2x192xbf16>
    %c1 = arith.constant 1 : index
    %c0_17 = arith.constant 0 : index
    %c0_18 = arith.constant 0 : index
    %302 = vector.load %arg10[%c1, %c0_17, %c0_18] : memref<4x192x512xbf16, #tpu.memory_space<vmem>>, vector<1x192x512xbf16>
    %303 = vector.shape_cast %302 : vector<1x192x512xbf16> to vector<192x512xbf16>
    %cst_19 = arith.constant dense<0.000000e+00> : vector<2x512xf32>
    %304 = tpu.matmul %301, %303, %cst_19 {dimension_numbers = #tpu.dot_dimension_numbers<[1], [0], [0], [1], [0, 0, 1, 1], [], []>} : vector<2x192xbf16>, vector<192x512xbf16>, vector<2x512xf32> -> vector<2x512xf32>
    %305 = arith.addf %299, %304 : vector<2x512xf32>
    %306 = vector.extract_strided_slice %292 {offsets = [4, 0], sizes = [2, 192], strides = [1, 1]} : vector<8x192xf32> to vector<2x192xf32>
    %307 = arith.truncf %306 : vector<2x192xf32> to vector<2x192xbf16>
    %c2 = arith.constant 2 : index
    %c0_20 = arith.constant 0 : index
    %c0_21 = arith.constant 0 : index
    %308 = vector.load %arg10[%c2, %c0_20, %c0_21] : memref<4x192x512xbf16, #tpu.memory_space<vmem>>, vector<1x192x512xbf16>
    %309 = vector.shape_cast %308 : vector<1x192x512xbf16> to vector<192x512xbf16>
    %cst_22 = arith.constant dense<0.000000e+00> : vector<2x512xf32>
    %310 = tpu.matmul %307, %309, %cst_22 {dimension_numbers = #tpu.dot_dimension_numbers<[1], [0], [0], [1], [0, 0, 1, 1], [], []>} : vector<2x192xbf16>, vector<192x512xbf16>, vector<2x512xf32> -> vector<2x512xf32>
    %311 = arith.addf %305, %310 : vector<2x512xf32>
    %312 = vector.extract_strided_slice %292 {offsets = [6, 0], sizes = [2, 192], strides = [1, 1]} : vector<8x192xf32> to vector<2x192xf32>
    %313 = arith.truncf %312 : vector<2x192xf32> to vector<2x192xbf16>
    %c3 = arith.constant 3 : index
    %c0_23 = arith.constant 0 : index
    %c0_24 = arith.constant 0 : index
    %314 = vector.load %arg10[%c3, %c0_23, %c0_24] : memref<4x192x512xbf16, #tpu.memory_space<vmem>>, vector<1x192x512xbf16>
    %315 = vector.shape_cast %314 : vector<1x192x512xbf16> to vector<192x512xbf16>
    %cst_25 = arith.constant dense<0.000000e+00> : vector<2x512xf32>
    %316 = tpu.matmul %313, %315, %cst_25 {dimension_numbers = #tpu.dot_dimension_numbers<[1], [0], [0], [1], [0, 0, 1, 1], [], []>} : vector<2x192xbf16>, vector<192x512xbf16>, vector<2x512xf32> -> vector<2x512xf32>
    %317 = arith.addf %311, %316 : vector<2x512xf32>
    %c0_26 = arith.constant 0 : index
    %c0_27 = arith.constant 0 : index
    %318 = vector.load %arg6[%c0_26, %c0_27] : memref<1x512xf32, #tpu.memory_space<vmem>>, vector<1x512xf32>
    %319 = vector.broadcast %318 : vector<1x512xf32> to vector<2x512xf32>
    %320 = arith.addf %317, %319 : vector<2x512xf32>
    %cst_28 = arith.constant 0.000000e+00 : f32
    %321 = vector.broadcast %cst_28 : f32 to vector<2x512xf32>
    %322 = arith.maximumf %320, %321 : vector<2x512xf32>
    %c1_i32_29 = arith.constant 1 : i32
    %323 = tpu.memref_slice %arg12[%c1_i32_29] : memref<2x!tpu.dma_semaphore, #tpu.memory_space<semaphore_mem>> -> memref<1x!tpu.dma_semaphore, #tpu.memory_space<semaphore_mem>>
    %324 = tpu.memref_squeeze %323 : memref<1x!tpu.dma_semaphore, #tpu.memory_space<semaphore_mem>> -> memref<!tpu.dma_semaphore, #tpu.memory_space<semaphore_mem>>
    tpu.wait_dma2 semaphore(%324 : memref<!tpu.dma_semaphore, #tpu.memory_space<semaphore_mem>>) src(%arg7 : memref<512x128xbf16, #tpu.memory_space<any>>) dst(%arg11 : memref<512x128xbf16, #tpu.memory_space<vmem>>)
    %325 = arith.truncf %322 : vector<2x512xf32> to vector<2x512xbf16>
    %c0_30 = arith.constant 0 : index
    %c0_31 = arith.constant 0 : index
    %326 = vector.load %arg11[%c0_30, %c0_31] : memref<512x128xbf16, #tpu.memory_space<vmem>>, vector<512x128xbf16>
    %cst_32 = arith.constant dense<0.000000e+00> : vector<2x128xf32>
    %327 = tpu.matmul %325, %326, %cst_32 {dimension_numbers = #tpu.dot_dimension_numbers<[1], [0], [0], [1], [0, 0, 1, 1], [], []>} : vector<2x512xbf16>, vector<512x128xbf16>, vector<2x128xf32> -> vector<2x128xf32>
    %c0_33 = arith.constant 0 : index
    %c0_34 = arith.constant 0 : index
    %328 = vector.load %arg8[%c0_33, %c0_34] : memref<1x128xf32, #tpu.memory_space<vmem>>, vector<1x128xf32>
    %329 = vector.broadcast %328 : vector<1x128xf32> to vector<2x128xf32>
    %330 = arith.addf %327, %329 : vector<2x128xf32>
    %cst_35 = arith.constant dense<0xFF800000> : vector<2xf32>
    %331 = vector.multi_reduction <maximumf>, %330, %cst_35 [1] : vector<2x128xf32> to vector<2xf32>
    %332 = vector.shape_cast %331 : vector<2xf32> to vector<2x1xf32>
    %333 = vector.broadcast %332 : vector<2x1xf32> to vector<2x128xf32>
    %334 = arith.subf %330, %333 : vector<2x128xf32>
    %335 = math.exp %334 : vector<2x128xf32>
    %cst_36 = arith.constant dense<0.000000e+00> : vector<2xf32>
    %336 = vector.multi_reduction <add>, %335, %cst_36 [1] : vector<2x128xf32> to vector<2xf32>
    %337 = vector.shape_cast %336 : vector<2xf32> to vector<2x1xf32>
    %338 = tpu.reciprocal %337 {approx = true} : vector<2x1xf32> -> vector<2x1xf32>
    %339 = vector.broadcast %338 : vector<2x1xf32> to vector<2x128xf32>
    %340 = arith.mulf %335, %339 : vector<2x128xf32>
    %c0_37 = arith.constant 0 : index
    %c0_38 = arith.constant 0 : index
    %341 = vector.load %arg9[%c0_37, %c0_38] : memref<2x128xf32, #tpu.memory_space<vmem>>, vector<2x128xf32>
    tpu.vector_store %arg9[%c0_37, %c0_38], %340 {strides = array<i32>} : memref<2x128xf32, #tpu.memory_space<vmem>>, vector<2x128xf32>,
    return
  }
}

</mosaic_0001>

<bundles_post_ra>
// kernel: tpu_custom_call.1
= control target key start
LH: loop header
LB: loop body
LE: loop exit
PB: predicated region body
PF: predicated region fallthrough
CT: control target
= control target key end

     0   :  { %14 = vsyncpa [#allocation6], 0  ;;  %s4246_s16 = smov [#allocation2]   ;;  %v4247_v34 = vmov 0   ;;  %s5036_s0 = inlined_call_operand.vmem [shape: f32[8,384], index: 0, kind: input, shape index: {}]   ;;  %s5037_s1 = inlined_call_operand.vmem [shape: f32[9,8,1], index: 1, kind: input, shape index: {}]   ;;  %s5038_s2 = inlined_call_operand.vmem [shape: f32[8,1], index: 2, kind: input, shape index: {}]   ;;  %s5039_s3 = inlined_call_operand.vmem [shape: f32[36,8,1], index: 3, kind: input, shape index: {}]   ;;  %s5040_s4 = inlined_call_operand.vmem [shape: f32[8,1], index: 4, kind: input, shape index: {}]   ;;  %s5041_s5 = inlined_call_operand.hbm [shape: bf16[4,192,512], index: 5, kind: input, shape index: {}]   ;;  %s5042_s6 = inlined_call_operand.vmem [shape: f32[1,512], index: 6, kind: input, shape index: {}]   ;;  %s5043_s7 = inlined_call_operand.vmem [shape: bf16[512,128], index: 7, kind: input, shape index: {}]   ;;  %s5044_s8 = inlined_call_operand.vmem [shape: f32[1,128], index: 8, kind: input, shape index: {}]   ;;  %s5045_s9 = inlined_call_operand.hbm [shape: f32[2,128], index: 9, kind: output, shape index: {}]  }
   0x1   :  { %s37_s11 = sshll.u32 %s5041_s5, 4  ;;  %v54_v0 = vld [vmem:[%s5043_s7] sm:$0xff]  ;;  %v56_v1 = vld [vmem:[%s5043_s7 + $0x8] sm:$0xff]  ;;  %s39_s17 = sshll.u32 %s4246_s16, 4  ;;  %v58_v2 = vld [vmem:[%s5043_s7 + $0x10] sm:$0xff]  ;;  %4185 = vset.pattern.permute.xlu2 %v4247_v34  ;;  %4184 = vset.pattern.permute.xlu0 %v4247_v34  ;;  %s38_s11 = int_to_ptr.hbm [resolvable:$true] %s37_s11  ;;  %s40_s17 = int_to_ptr.vmem [resolvable:$true] %s39_s17 }
   0x2   :  { %55 = vst [vmem:[#allocation3 + $0xb0] sm:$0xff] %v54_v0  ;;  %v60_v3 = vld [vmem:[%s5043_s7 + $0x18] sm:$0xff]  ;;  %v62_v4 = vld [vmem:[%s5043_s7 + $0x20] sm:$0xff]  ;;  %42 = dma.hbm_to_vmem [thread:$0]  %s38_s11, 24576, %s40_s17, [#allocation4]  ;;  %v64_v5 = vld [vmem:[%s5043_s7 + $0x28] sm:$0xff]  ;;  %4186 = vset.pattern.permute.xlu1 %v4247_v34 }
   0x3   :  { %57 = vst [vmem:[#allocation3] sm:$0xff] %v56_v1  ;;  %v66_v6 = vld [vmem:[%s5043_s7 + $0x30] sm:$0xff]  ;;  %v68_v7 = vld [vmem:[%s5043_s7 + $0x38] sm:$0xff]  ;;  %v70_v8 = vld [vmem:[%s5043_s7 + $0x40] sm:$0xff] }
   0x4   :  { %59 = vst [vmem:[#allocation3 + $0xd8] sm:$0xff] %v58_v2  ;;  %v72_v9 = vld [vmem:[%s5043_s7 + $0x48] sm:$0xff]  ;;  %v74_v10 = vld [vmem:[%s5043_s7 + $0x50] sm:$0xff]  ;;  %v76_v11 = vld [vmem:[%s5043_s7 + $0x58] sm:$0xff] }
   0x5   :  { %61 = vst [vmem:[#allocation3 + $0x18] sm:$0xff] %v60_v3  ;;  %v78_v12 = vld [vmem:[%s5043_s7 + $0x60] sm:$0xff]  ;;  %v80_v13 = vld [vmem:[%s5043_s7 + $0x68] sm:$0xff]  ;;  %v82_v14 = vld [vmem:[%s5043_s7 + $0x70] sm:$0xff] }
   0x6   :  { %63 = vst [vmem:[#allocation3 + $0x50] sm:$0xff] %v62_v4  ;;  %v84_v15 = vld [vmem:[%s5043_s7 + $0x78] sm:$0xff]  ;;  %v86_v16 = vld [vmem:[%s5043_s7 + $0x80] sm:$0xff]  ;;  %v88_v17 = vld [vmem:[%s5043_s7 + $0x88] sm:$0xff] }
   0x7   :  { %65 = vst [vmem:[#allocation3 + $0x68] sm:$0xff] %v64_v5  ;;  %v90_v18 = vld [vmem:[%s5043_s7 + $0x90] sm:$0xff]  ;;  %v92_v19 = vld [vmem:[%s5043_s7 + $0x98] sm:$0xff]  ;;  %v94_v20 = vld [vmem:[%s5043_s7 + $0xa0] sm:$0xff] }
   0x8   :  { %67 = vst [vmem:[#allocation3 + $0x30] sm:$0xff] %v66_v6  ;;  %v96_v21 = vld [vmem:[%s5043_s7 + $0xa8] sm:$0xff]  ;;  %v98_v22 = vld [vmem:[%s5043_s7 + $0xb0] sm:$0xff]  ;;  %v100_v23 = vld [vmem:[%s5043_s7 + $0xb8] sm:$0xff] }
   0x9   :  { %69 = vst [vmem:[#allocation3 + $0x48] sm:$0xff] %v68_v7  ;;  %v102_v24 = vld [vmem:[%s5043_s7 + $0xc0] sm:$0xff]  ;;  %v104_v25 = vld [vmem:[%s5043_s7 + $0xc8] sm:$0xff]  ;;  %v106_v26 = vld [vmem:[%s5043_s7 + $0xd0] sm:$0xff] }
   0xa   :  { %71 = vst [vmem:[#allocation3 + $0x80] sm:$0xff] %v70_v8  ;;  %v108_v27 = vld [vmem:[%s5043_s7 + $0xd8] sm:$0xff]  ;;  %v110_v28 = vld [vmem:[%s5043_s7 + $0xe0] sm:$0xff]  ;;  %v112_v29 = vld [vmem:[%s5043_s7 + $0xe8] sm:$0xff] }
   0xb   :  { %73 = vst [vmem:[#allocation3 + $0x88] sm:$0xff] %v72_v9  ;;  %v114_v30 = vld [vmem:[%s5043_s7 + $0xf0] sm:$0xff]  ;;  %v116_v31 = vld [vmem:[%s5043_s7 + $0xf8] sm:$0xff]  ;;  %v127_v33 = vld [vmem:[%s5037_s1] sm:$0xff] }
   0xc   :  { %75 = vst [vmem:[#allocation3 + $0xe8] sm:$0xff] %v74_v10  ;;  %v129_v32 = vld [vmem:[%s5037_s1 + $0x10] sm:$0xff]  ;;  %174 = vperm.xlu0 %4184, %v127_v33   ;;  %v131_v35 = vld [vmem:[%s5037_s1 + $0x20] sm:$0xff] }
   0xd   :  { %77 = vst [vmem:[#allocation3 + $0xb8] sm:$0xff] %v76_v11  ;;  %205 = vperm.xlu2 %4185, %v129_v32   ;;  %253 = vperm.xlu1 %4186, %v131_v35  }
   0xe   :  { %79 = vst [vmem:[#allocation3 + $0x60] sm:$0xff] %v78_v12 }
   0xf   :  { %81 = vst [vmem:[#allocation3 + $0xf0] sm:$0xff] %v80_v13 }
  0x10   :  { %83 = vst [vmem:[#allocation3 + $0x8] sm:$0xff] %v82_v14 }
  0x11   :  { %85 = vst [vmem:[#allocation3 + $0x78] sm:$0xff] %v84_v15 }
  0x12   :  { %87 = vst [vmem:[#allocation3 + $0x38] sm:$0xff] %v86_v16 }
  0x13   :  { %89 = vst [vmem:[#allocation3 + $0x58] sm:$0xff] %v88_v17 }
  0x14   :  { %91 = vst [vmem:[#allocation3 + $0x40] sm:$0xff] %v90_v18 }
  0x15   :  { %93 = vst [vmem:[#allocation3 + $0xc8] sm:$0xff] %v92_v19 }
  0x16   :  { %95 = vst [vmem:[#allocation3 + $0xe0] sm:$0xff] %v94_v20 }
  0x17   :  { %97 = vst [vmem:[#allocation3 + $0x90] sm:$0xff] %v96_v21 }
  0x18   :  { %99 = vst [vmem:[#allocation3 + $0x70] sm:$0xff] %v98_v22 }
  0x19   :  { %101 = vst [vmem:[#allocation3 + $0xc0] sm:$0xff] %v100_v23 }
  0x1a   :  { %103 = vst [vmem:[#allocation3 + $0xa8] sm:$0xff] %v102_v24 }
  0x1b   :  { %105 = vst [vmem:[#allocation3 + $0xd0] sm:$0xff] %v104_v25 }
  0x1c   :  { %107 = vst [vmem:[#allocation3 + $0x10] sm:$0xff] %v106_v26 }
  0x1d   :  { %109 = vst [vmem:[#allocation3 + $0x28] sm:$0xff] %v108_v27 }
  0x1e   :  { %111 = vst [vmem:[#allocation3 + $0xa0] sm:$0xff] %v110_v28 }
  0x1f   :  { %113 = vst [vmem:[#allocation3 + $0xf8] sm:$0xff] %v112_v29 }
  0x20   :  { %115 = vst [vmem:[#allocation3 + $0x20] sm:$0xff] %v114_v30 }
  0x21   :  { %117 = vst [vmem:[#allocation3 + $0x98] sm:$0xff] %v116_v31 }
  0x22   :  { %123 = vsyncadd [#allocation4 + $0x1], 4096  ;;  %v132_v36 = vld [vmem:[%s5037_s1 + $0x28] sm:$0xff]  ;;  %v134_v38 = vld [vmem:[%s5037_s1 + $0x38] sm:$0xff]  ;;  %s4248_s19 = smov 126   ;;  %s4249_s22 = smov 127  }
  0x23   :  { %v128_v37 = vld [vmem:[%s5037_s1 + $0x8] sm:$0xff]  ;;  %277 = vperm.xlu2 %4185, %v132_v36   ;;  %325 = vperm.xlu1 %4186, %v134_v38   ;;  %v135_v39 = vld [vmem:[%s5037_s1 + $0x40] sm:$0xff]  ;;  %v130_v40 = vld [vmem:[%s5037_s1 + $0x18] sm:$0xff]  ;;  %s4250_s23 = smov 112   ;;  %s4252_s24 = smov 110   ;;  %vm196_vm0 = vcmask 1039360  }
  0x24   :  { %181 = vperm.xlu0 %4184, %v128_v37   ;;  %v136_v41 = vld [vmem:[%s5039_s3] sm:$0xff]  ;;  %v137_v42 = vld [vmem:[%s5039_s3 + $0x8] sm:$0xff]  ;;  %v133_v43 = vld [vmem:[%s5037_s1 + $0x30] sm:$0xff]  ;;  %s4253_s25 = smov 96   ;;  %s4254_s26 = smov 95   ;;  %vm220_vm1 = vcmask 1031168  }
  0x25   :  { %v138_v44 = vld [vmem:[%s5039_s3 + $0x10] sm:$0xff]  ;;  %v371_v45 = vld [vmem:[%s5038_s2] sm:$0xff]  ;;  %v139_v46 = vld [vmem:[%s5039_s3 + $0x18] sm:$0xff]  ;;  %s4255_s27 = smov 94   ;;  %vm244_vm2 = vcmask 916480   ;;  %vm268_vm3 = vcmask 908288  }
  0x26   :  { %v140_v47 = vld [vmem:[%s5039_s3 + $0x20] sm:$0xff]  ;;  %v4458_v51 = vld [vmem:[%s5036_s0 + $0x8] sm:$0xff]  ;;  %v126_v55 = vld [vmem:[%s5036_s0 + $0x10] sm:$0xff]  ;;  %vm292_vm4 = vcmask 900096   ;;  %vm316_vm5 = vcmask 785408   ;;  %vm340_vm6 = vcmask 777216  }
  0x27   :  { %v124_v49 = vld [vmem:[%s5036_s0] sm:$0xff]  ;;  %s4251_s0 = smov 111   ;;  %v146_v19 = vld [vmem:[%s5039_s3 + $0x50] sm:$0xff]  ;;  %v141_v22 = vld [vmem:[%s5039_s3 + $0x28] sm:$0xff]  ;;  %vm364_vm7 = vcmask 769024   ;;  %vm395_vm8 = vcmask 1041408  }
  0x28   :  { %v147_v23 = vld [vmem:[%s5039_s3 + $0x58] sm:$0xff]  ;;  %v142_v25 = vld [vmem:[%s5039_s3 + $0x30] sm:$0xff]  ;;  %v148_v26 = vld [vmem:[%s5039_s3 + $0x60] sm:$0xff]  ;;  %vm398_vm9 = vcmask 1043456   ;;  %vm401_vm10 = vcmask 1045504  }
  0x29   :  { %v155_v27 = vld [vmem:[%s5039_s3 + $0x98] sm:$0xff]  ;;  %v149_v30 = vld [vmem:[%s5039_s3 + $0x68] sm:$0xff]  ;;  %v156_v31 = vld [vmem:[%s5039_s3 + $0xa0] sm:$0xff] }
  0x2a   :  { %v143_v29 = vld [vmem:[%s5039_s3 + $0x38] sm:$0xff]  ;;  %v144_v33 = vld [vmem:[%s5039_s3 + $0x40] sm:$0xff]  ;;  %v150_v34 = vld [vmem:[%s5039_s3 + $0x70] sm:$0xff] }
  0x2b   :  { %349 = vperm.xlu2 %4185, %v135_v39   ;;  %406 = vperm.xlu1 %4186, %v136_v41   ;;  %v157_v35 = vld [vmem:[%s5039_s3 + $0xa8] sm:$0xff]  ;;  %v151_v38 = vld [vmem:[%s5039_s3 + $0x78] sm:$0xff]  ;;  %v158_v39 = vld [vmem:[%s5039_s3 + $0xb0] sm:$0xff] }
  0x2c   :  { %229 = vperm.xlu0 %4184, %v130_v40   ;;  %v145_v37 = vld [vmem:[%s5039_s3 + $0x48] sm:$0xff]  ;;  %v152_v41 = vld [vmem:[%s5039_s3 + $0x80] sm:$0xff] }
  0x33   :  { %413 = vperm.xlu2 %4185, %v137_v42   ;;  %v159_v42 = vld [vmem:[%s5039_s3 + $0xb8] sm:$0xff] }
  0x34   :  { %301 = vperm.xlu0 %4184, %v133_v43  }
  0x3b   :  { %431 = vperm.xlu2 %4185, %v138_v44  }
  0x3c   :  { %374 = vperm.xlu0 %4184, %v371_v45  }
  0x43   :  { %449 = vperm.xlu2 %4185, %v139_v46   ;;  %v153_v46 = vld [vmem:[%s5039_s3 + $0x88] sm:$0xff] }
  0x4b   :  { %467 = vperm.xlu2 %4185, %v140_v47  }
  0x67   :  { %v206_v48 = vpop.permute.xlu2 %205 }
  0x68   :  { %v208_v50 = vmul.f32 %v206_v48, %v124_v49  ;;  %v210_v59 = vmul.f32 %v206_v48, %v126_v55  ;;  %v209_v1 = vmul.f32 %v206_v48, %v4458_v51 }
  0x6a   :  { %214 = vrot.lane.b32.xlu0 %v208_v50, %s4248_s19 }
  0x7d   :  { %v278_v4 = vpop.permute.xlu2 %277 }
  0x7e   :  { %v175_v52 = vpop.permute.xlu0 %174  ;;  %v280_v5 = vmul.f32 %v278_v4, %v124_v49  ;;  %v282_v9 = vmul.f32 %v278_v4, %v126_v55  ;;  %v281_v14 = vmul.f32 %v278_v4, %v4458_v51 }
  0x7f   :  { %v4460_v53 = vmul.f32 %v175_v52, %v124_v49  ;;  %v4463_v54 = vmul.f32 %v175_v52, %v4458_v51  ;;  %v254_v63 = vpop.permute.xlu1 %253 }
  0x80   :  { %v257_v0 = vmul.f32 %v254_v63, %v4458_v51  ;;  %v256_v3 = vmul.f32 %v254_v63, %v124_v49  ;;  %v258_v8 = vmul.f32 %v254_v63, %v126_v55 }
  0x85   :  { %v350_v15 = vpop.permute.xlu2 %349 }
  0x86   :  { %v352_v16 = vmul.f32 %v350_v15, %v124_v49  ;;  %v354_v20 = vmul.f32 %v350_v15, %v126_v55  ;;  %v353_v24 = vmul.f32 %v350_v15, %v4458_v51 }
  0x8d   :  { %v4517_v28 = vpop.permute.xlu2 %413 }
  0x95   :  { %v326_v11 = vpop.permute.xlu1 %325  ;;  %v4528_v32 = vpop.permute.xlu2 %431 }
  0x96   :  { %v182_v56 = vpop.permute.xlu0 %181  ;;  %v329_v13 = vmul.f32 %v326_v11, %v4458_v51  ;;  %v328_v17 = vmul.f32 %v326_v11, %v124_v49  ;;  %v330_v21 = vmul.f32 %v326_v11, %v126_v55 }
  0x97   :  { %v184_v57 = vmul.f32 %v182_v56, %v124_v49  ;;  %v186_v58 = vmul.f32 %v182_v56, %v126_v55  ;;  %v185_v62 = vmul.f32 %v182_v56, %v4458_v51 }
  0x99   :  { %194 = vrot.lane.b32.xlu2 %v186_v58, %s4249_s22  ;;  %190 = vrot.lane.b32.xlu1 %v184_v57, %s4249_s22 }
  0x9d   :  { %v4539_v36 = vpop.permute.xlu2 %449  ;;  %v4560_v44 = vpop.permute.xlu1 %406 }
  0x9e   :  { %v230_v60 = vpop.permute.xlu0 %229 }
  0x9f   :  { %v234_v61 = vmul.f32 %v230_v60, %v126_v55  ;;  %v233_v2 = vmul.f32 %v230_v60, %v4458_v51  ;;  %v232_v6 = vmul.f32 %v230_v60, %v124_v49 }
  0xa1   :  { %218 = vrot.lane.b32.xlu2 %v210_v59, %s4248_s19  ;;  %242 = vrot.lane.b32.xlu0 %v234_v61, %s4250_s23 }
  0xa2   :  { %192 = vrot.lane.b32.xlu1 %v185_v62, %s4249_s22 }
  0xa5   :  { %v4550_v40 = vpop.permute.xlu2 %467 }
  0xa6   :  { %v302_v7 = vpop.permute.xlu0 %301 }
  0xa7   :  { %v306_v10 = vmul.f32 %v302_v7, %v126_v55  ;;  %v305_v12 = vmul.f32 %v302_v7, %v4458_v51  ;;  %v304_v18 = vmul.f32 %v302_v7, %v124_v49  ;;  %v154_v49 = vld [vmem:[%s5039_s3 + $0x90] sm:$0xff] }
  0xa9   :  { %240 = vrot.lane.b32.xlu2 %v233_v2, %s4250_s23  ;;  %264 = vrot.lane.b32.xlu0 %v257_v0, %s4251_s0 }
  0xaa   :  { %216 = vrot.lane.b32.xlu1 %v209_v1, %s4248_s19 }
  0xae   :  { %v4558_v43 = vpop.permute.xlu0 %374 }
  0xb1   :  { %262 = vrot.lane.b32.xlu2 %v256_v3, %s4251_s0  ;;  %286 = vrot.lane.b32.xlu0 %v280_v5, %s4252_s24 }
  0xb2   :  { %238 = vrot.lane.b32.xlu1 %v232_v6, %s4250_s23 }
  0xb9   :  { %290 = vrot.lane.b32.xlu2 %v282_v9, %s4252_s24  ;;  %314 = vrot.lane.b32.xlu0 %v306_v10, %s4253_s25 }
  0xba   :  { %266 = vrot.lane.b32.xlu1 %v258_v8, %s4251_s0 }
  0xc1   :  { %312 = vrot.lane.b32.xlu2 %v305_v12, %s4253_s25  ;;  %336 = vrot.lane.b32.xlu0 %v329_v13, %s4254_s26 }
  0xc2   :  { %288 = vrot.lane.b32.xlu1 %v281_v14, %s4252_s24 }
  0xc9   :  { %334 = vrot.lane.b32.xlu2 %v328_v17, %s4254_s26  ;;  %358 = vrot.lane.b32.xlu0 %v352_v16, %s4255_s27 }
  0xca   :  { %310 = vrot.lane.b32.xlu1 %v304_v18, %s4253_s25 }
  0xd1   :  { %362 = vrot.lane.b32.xlu2 %v354_v20, %s4255_s27  ;;  %572 = vperm.xlu0 %4184, %v146_v19  }
  0xd2   :  { %338 = vrot.lane.b32.xlu1 %v330_v21, %s4254_s26 }
  0xd9   :  { %485 = vperm.xlu2 %4185, %v141_v22   ;;  %590 = vperm.xlu0 %4184, %v147_v23  }
  0xda   :  { %360 = vrot.lane.b32.xlu1 %v353_v24, %s4255_s27 }
  0xdc   :  { %v215_v47 = vpop.permute.xlu0 %214 }
  0xe1   :  { %503 = vperm.xlu2 %4185, %v142_v25   ;;  %608 = vperm.xlu0 %4184, %v148_v26  }
  0xe2   :  { %731 = vperm.xlu1 %4186, %v155_v27  }
  0xe9   :  { %521 = vperm.xlu2 %4185, %v143_v29   ;;  %626 = vperm.xlu0 %4184, %v149_v30  }
  0xea   :  { %749 = vperm.xlu1 %4186, %v156_v31  }
  0xf1   :  { %539 = vperm.xlu2 %4185, %v144_v33   ;;  %644 = vperm.xlu0 %4184, %v150_v34  }
  0xf2   :  { %767 = vperm.xlu1 %4186, %v157_v35  }
  0xf3   :  { %v195_v45 = vpop.permute.xlu2 %194 }
  0xf9   :  { %563 = vperm.xlu2 %4185, %v145_v37   ;;  %662 = vperm.xlu0 %4184, %v151_v38  }
  0xfa   :  { %785 = vperm.xlu1 %4186, %v158_v39  }
  0xfb   :  { %v219_v50 = vpop.permute.xlu2 %218 }
 0x101   :  { %680 = vperm.xlu0 %4184, %v152_v41  }
 0x102   :  { %803 = vperm.xlu1 %4186, %v159_v42  }
 0x103   :  { %v241_v55 = vpop.permute.xlu2 %240 }
 0x109   :  { %698 = vperm.xlu0 %4184, %v153_v46  }
 0x10b   :  { %v191_v48 = vpop.permute.xlu1 %190  ;;  %v263_v59 = vpop.permute.xlu2 %262 }
 0x111   :  { %722 = vperm.xlu0 %4184, %v154_v49  }
 0x113   :  { %v243_v51 = vpop.permute.xlu0 %242  ;;  %v291_v63 = vpop.permute.xlu2 %290 }
 0x114   :  { %v193_v52 = vpop.permute.xlu1 %192  ;;  %v246_v15 = vsel %vm244_vm2, %v241_v55, %v243_v51 }
 0x115   :  { %v197_v3 = vsel %vm196_vm0, %v191_v48, %v193_v52  ;;  %v198_v4 = vsel %vm196_vm0, %v193_v52, %v195_v45 }
 0x116   :  { %v201_v8 = vadd.f32 %v197_v3, %v4460_v53  ;;  %v202_v9 = vadd.f32 %v198_v4, %v4463_v54 }
 0x11b   :  { %v265_v56 = vpop.permute.xlu0 %264  ;;  %v313_v2 = vpop.permute.xlu2 %312 }
 0x11c   :  { %v217_v57 = vpop.permute.xlu1 %216  ;;  %v269_v19 = vsel %vm268_vm3, %v263_v59, %v265_v56 }
 0x11d   :  { %v221_v5 = vsel %vm220_vm1, %v215_v47, %v217_v57  ;;  %v222_v6 = vsel %vm220_vm1, %v217_v57, %v219_v50 }
 0x11e   :  { %v225_v12 = vadd.f32 %v221_v5, %v201_v8  ;;  %v226_v13 = vadd.f32 %v222_v6, %v202_v9 }
 0x120   :  { %v250_v18 = vadd.f32 %v246_v15, %v226_v13 }
 0x123   :  { %v287_v58 = vpop.permute.xlu0 %286  ;;  %v335_v17 = vpop.permute.xlu2 %334 }
 0x124   :  { %v239_v60 = vpop.permute.xlu1 %238 }
 0x125   :  { %v245_v11 = vsel %vm244_vm2, %v239_v60, %v241_v55 }
 0x126   :  { %v249_v14 = vadd.f32 %v245_v11, %v225_v12 }
 0x128   :  { %v273_v22 = vadd.f32 %v269_v19, %v249_v14 }
 0x12b   :  { %v315_v61 = vpop.permute.xlu0 %314  ;;  %v363_v35 = vpop.permute.xlu2 %362 }
 0x12c   :  { %v267_v62 = vpop.permute.xlu1 %266  ;;  %v318_v29 = vsel %vm316_vm5, %v313_v2, %v315_v61 }
 0x12d   :  { %v270_v16 = vsel %vm268_vm3, %v265_v56, %v267_v62 }
 0x12e   :  { %v274_v21 = vadd.f32 %v270_v16, %v250_v18 }
 0x133   :  { %v337_v0 = vpop.permute.xlu0 %336 }
 0x134   :  { %v289_v1 = vpop.permute.xlu1 %288  ;;  %v341_v33 = vsel %vm340_vm6, %v335_v17, %v337_v0 }
 0x135   :  { %v293_v53 = vsel %vm292_vm4, %v287_v58, %v289_v1  ;;  %v294_v54 = vsel %vm292_vm4, %v289_v1, %v291_v63 }
 0x136   :  { %v297_v25 = vadd.f32 %v293_v53, %v273_v22  ;;  %v298_v26 = vadd.f32 %v294_v54, %v274_v21 }
 0x138   :  { %v322_v31 = vadd.f32 %v318_v29, %v298_v26 }
 0x13b   :  { %v359_v7 = vpop.permute.xlu0 %358 }
 0x13c   :  { %v311_v10 = vpop.permute.xlu1 %310 }
 0x13d   :  { %v317_v24 = vsel %vm316_vm5, %v311_v10, %v313_v2 }
 0x13e   :  { %v321_v27 = vadd.f32 %v317_v24, %v297_v25 }
 0x140   :  { %v345_v39 = vadd.f32 %v341_v33, %v321_v27 }
 0x143   :  { %v4580_v20 = vpop.permute.xlu0 %572 }
 0x144   :  { %v339_v23 = vpop.permute.xlu1 %338 }
 0x145   :  { %v342_v30 = vsel %vm340_vm6, %v337_v0, %v339_v23 }
 0x146   :  { %v346_v37 = vadd.f32 %v342_v30, %v322_v31 }
 0x14b   :  { %v591_v34 = vpop.permute.xlu0 %590 }
 0x14c   :  { %v361_v38 = vpop.permute.xlu1 %360 }
 0x14d   :  { %v365_v41 = vsel %vm364_vm7, %v359_v7, %v361_v38  ;;  %v366_v42 = vsel %vm364_vm7, %v361_v38, %v363_v35 }
 0x14e   :  { %v369_v45 = vadd.f32 %v365_v41, %v345_v39  ;;  %v370_v46 = vadd.f32 %v366_v42, %v346_v37  ;;  %v486_v41 = vpop.permute.xlu2 %485 }
 0x150   :  { %v377_v47 = vadd.f32 %v4558_v43, %v369_v45  ;;  %v378_v48 = vadd.f32 %v4558_v43, %v370_v46 }
 0x152   :  { %v379_v49 = vmax.f32 %v377_v47, 0.0  ;;  %v380_v50 = vmax.f32 %v378_v48, 0.0 }
 0x153   :  { %v609_v51 = vpop.permute.xlu0 %608 }
 0x154   :  { %v383_v52 = vrot.slane %v379_v49, 6  ;;  %v384_v55 = vrot.slane %v380_v50, 6  ;;  %v387_v56 = vrot.slane %v379_v49, 4  ;;  %v388_v57 = vrot.slane %v380_v50, 4 }
 0x155   :  { %v391_v58 = vrot.slane %v379_v49, 2  ;;  %v392_v59 = vrot.slane %v380_v50, 2 }
 0x156   :  { %v397_v60 = vsel %vm395_vm8, %v380_v50, %v384_v55  ;;  %v396_v61 = vsel %vm395_vm8, %v379_v49, %v383_v52  ;;  %v873_v62 = vsel %vm395_vm8, %v383_v52, %v387_v56  ;;  %v874_v43 = vsel %vm395_vm8, %v384_v55, %v388_v57 }
 0x157   :  { %v555_v63 = vsel %vm395_vm8, %v391_v58, %v379_v49  ;;  %v556_v0 = vsel %vm395_vm8, %v392_v59, %v380_v50  ;;  %v715_v1 = vsel %vm395_vm8, %v388_v57, %v392_v59  ;;  %v714_v2 = vsel %vm395_vm8, %v387_v56, %v391_v58 }
 0x158   :  { %v557_v3 = vsel %vm398_vm9, %v555_v63, %v383_v52  ;;  %v558_v4 = vsel %vm398_vm9, %v556_v0, %v384_v55  ;;  %v717_v5 = vsel %vm398_vm9, %v715_v1, %v380_v50  ;;  %v716_v6 = vsel %vm398_vm9, %v714_v2, %v379_v49 }
 0x159   :  { %v4603_v7 = vsel %vm401_vm10, %v557_v3, %v387_v56  ;;  %v4606_v8 = vsel %vm401_vm10, %v558_v4, %v388_v57  ;;  %v4609_v9 = vsel %vm401_vm10, %v717_v5, %v384_v55  ;;  %v4612_v10 = vsel %vm401_vm10, %v716_v6, %v383_v52 }
 0x15a   :  { %v4615_v11 = vmul.f32 %v609_v51, %v4603_v7  ;;  %v576_v12 = vmul.f32 %v4580_v20, %v4606_v8  ;;  %v400_v13 = vsel %vm398_vm9, %v397_v60, %v388_v57  ;;  %v399_v16 = vsel %vm398_vm9, %v396_v61, %v387_v56 }
 0x15b   :  { %v627_v14 = vpop.permute.xlu0 %626  ;;  %v4621_v15 = vsel %vm401_vm10, %v400_v13, %v392_v59  ;;  %v4631_v19 = vsel %vm401_vm10, %v399_v16, %v391_v58  ;;  %v4639_v54 = vmul.f32 %v4580_v20, %v4603_v7  ;;  %v4642_v21 = vmul.f32 %v591_v34, %v4603_v7 }
 0x15c   :  { %v4625_v17 = vmul.f32 %v627_v14, %v4603_v7  ;;  %581 = vrot.lane.b32.xlu2 %v576_v12, %s4249_s22  ;;  %v417_v18 = vmul.f32 %v4517_v28, %v4621_v15  ;;  %v416_v53 = vmul.f32 %v4517_v28, %v4631_v19  ;;  %v594_v22 = vmul.f32 %v591_v34, %v4606_v8 }
 0x15d   :  { %v875_v24 = vsel %vm398_vm9, %v873_v62, %v391_v58  ;;  %v876_v25 = vsel %vm398_vm9, %v874_v43, %v392_v59  ;;  %v435_v20 = vmul.f32 %v4528_v32, %v4621_v15  ;;  %v434_v29 = vmul.f32 %v4528_v32, %v4631_v19  ;;  %v732_v58 = vpop.permute.xlu1 %731 }
 0x15e   :  { %422 = vrot.lane.b32.xlu1 %v417_v18, %s4249_s22  ;;  %420 = vrot.lane.b32.xlu0 %v416_v53, %s4249_s22  ;;  %v4651_v26 = vsel %vm401_vm10, %v875_v24, %v379_v49  ;;  %v4654_v27 = vsel %vm401_vm10, %v876_v25, %v380_v50  ;;  %v612_v30 = vmul.f32 %v609_v51, %v4606_v8  ;;  %v504_v49 = vpop.permute.xlu2 %503 }
 0x15f   :  { %v453_v34 = vmul.f32 %v4539_v36, %v4621_v15  ;;  %v452_v35 = vmul.f32 %v4539_v36, %v4631_v19  ;;  %v630_v32 = vmul.f32 %v627_v14, %v4606_v8  ;;  %v471_v39 = vmul.f32 %v4550_v40, %v4621_v15 }
 0x160   :  { %v470_v42 = vmul.f32 %v4550_v40, %v4631_v19  ;;  %v489_v47 = vmul.f32 %v486_v41, %v4621_v15  ;;  %v488_v48 = vmul.f32 %v486_v41, %v4631_v19  ;;  %v507_v50 = vmul.f32 %v504_v49, %v4621_v15 }
 0x161   :  { %v506_v51 = vmul.f32 %v504_v49, %v4631_v19  ;;  %v734_v63 = vmul.f32 %v732_v58, %v4612_v10  ;;  %v735_v0 = vmul.f32 %v732_v58, %v4609_v9  ;;  %v162_v49 = vld [vmem:[%s5039_s3 + $0xd0] sm:$0xff] }
 0x163   :  { %v645_v23 = vpop.permute.xlu0 %644 }
 0x164   :  { %v4648_v28 = vmul.f32 %v645_v23, %v4603_v7  ;;  %599 = vrot.lane.b32.xlu2 %v594_v22, %s4248_s19  ;;  %v648_v36 = vmul.f32 %v645_v23, %v4606_v8  ;;  %v410_v22 = vmul.f32 %v4560_v44, %v4621_v15 }
 0x165   :  { %v750_v43 = vpop.permute.xlu1 %749 }
 0x166   :  { %440 = vrot.lane.b32.xlu1 %v435_v20, %s4248_s19  ;;  %438 = vrot.lane.b32.xlu0 %v434_v29, %s4248_s19  ;;  %v522_v52 = vpop.permute.xlu2 %521  ;;  %v752_v1 = vmul.f32 %v750_v43, %v4612_v10  ;;  %v753_v3 = vmul.f32 %v750_v43, %v4609_v9 }
 0x167   :  { %v525_v56 = vmul.f32 %v522_v52, %v4621_v15  ;;  %v524_v57 = vmul.f32 %v522_v52, %v4631_v19 }
 0x16b   :  { %v663_v31 = vpop.permute.xlu0 %662 }
 0x16c   :  { %v4665_v33 = vmul.f32 %v663_v31, %v4603_v7  ;;  %617 = vrot.lane.b32.xlu2 %v612_v30, %s4250_s23  ;;  %v666_v40 = vmul.f32 %v663_v31, %v4606_v8 }
 0x16d   :  { %v768_v2 = vpop.permute.xlu1 %767 }
 0x16e   :  { %458 = vrot.lane.b32.xlu1 %v453_v34, %s4250_s23  ;;  %456 = vrot.lane.b32.xlu0 %v452_v35, %s4250_s23  ;;  %v540_v60 = vpop.permute.xlu2 %539  ;;  %v770_v4 = vmul.f32 %v768_v2, %v4612_v10  ;;  %v771_v5 = vmul.f32 %v768_v2, %v4609_v9 }
 0x16f   :  { %v543_v61 = vmul.f32 %v540_v60, %v4621_v15  ;;  %v542_v62 = vmul.f32 %v540_v60, %v4631_v19 }
 0x173   :  { %v681_v37 = vpop.permute.xlu0 %680 }
 0x174   :  { %v4676_v38 = vmul.f32 %v681_v37, %v4603_v7  ;;  %635 = vrot.lane.b32.xlu2 %v630_v32, %s4251_s0  ;;  %v684_v55 = vmul.f32 %v681_v37, %v4606_v8  ;;  %v160_v32 = vld [vmem:[%s5039_s3 + $0xc0] sm:$0xff] }
 0x175   :  { %v786_v6 = vpop.permute.xlu1 %785 }
 0x176   :  { %476 = vrot.lane.b32.xlu1 %v471_v39, %s4251_s0  ;;  %474 = vrot.lane.b32.xlu0 %v470_v42, %s4251_s0  ;;  %v788_v12 = vmul.f32 %v786_v6, %v4612_v10  ;;  %v4731_v13 = vpop.permute.xlu2 %563  ;;  %v789_v14 = vmul.f32 %v786_v6, %v4609_v9  ;;  %v161_v42 = vld [vmem:[%s5039_s3 + $0xc8] sm:$0xff] }
 0x177   :  { %v169_v6 = vld [vmem:[%s5039_s3 + $0x108] sm:$0xff] }
 0x17b   :  { %v699_v45 = vpop.permute.xlu0 %698 }
 0x17c   :  { %v4687_v46 = vmul.f32 %v699_v45, %v4603_v7  ;;  %653 = vrot.lane.b32.xlu2 %v648_v36, %s4252_s24  ;;  %v702_v59 = vmul.f32 %v699_v45, %v4606_v8 }
 0x17d   :  { %v804_v16 = vpop.permute.xlu1 %803 }
 0x17e   :  { %494 = vrot.lane.b32.xlu1 %v489_v47, %s4252_s24  ;;  %492 = vrot.lane.b32.xlu0 %v488_v48, %s4252_s24  ;;  %v806_v18 = vmul.f32 %v804_v16, %v4612_v10 }
 0x184   :  { %671 = vrot.lane.b32.xlu2 %v666_v40, %s4253_s25 }
 0x186   :  { %512 = vrot.lane.b32.xlu1 %v507_v50, %s4253_s25  ;;  %510 = vrot.lane.b32.xlu0 %v506_v51, %s4253_s25 }
 0x18c   :  { %689 = vrot.lane.b32.xlu2 %v684_v55, %s4254_s26 }
 0x18e   :  { %530 = vrot.lane.b32.xlu1 %v525_v56, %s4254_s26  ;;  %528 = vrot.lane.b32.xlu0 %v524_v57, %s4254_s26  ;;  %v163_v57 = vld [vmem:[%s5039_s3 + $0xd8] sm:$0xff] }
 0x194   :  { %707 = vrot.lane.b32.xlu2 %v702_v59, %s4255_s27 }
 0x196   :  { %548 = vrot.lane.b32.xlu1 %v543_v61, %s4255_s27  ;;  %546 = vrot.lane.b32.xlu0 %v542_v62, %s4255_s27 }
 0x19c   :  { %738 = vrot.lane.b32.xlu2 %v734_v63, %s4249_s22  ;;  %v166_v63 = vld [vmem:[%s5039_s3 + $0xf0] sm:$0xff] }
 0x19e   :  { %579 = vrot.lane.b32.xlu1 %v4639_v54, %s4249_s22  ;;  %740 = vrot.lane.b32.xlu0 %v735_v0, %s4249_s22 }
 0x1a4   :  { %756 = vrot.lane.b32.xlu2 %v752_v1, %s4248_s19 }
 0x1a6   :  { %597 = vrot.lane.b32.xlu1 %v4642_v21, %s4248_s19  ;;  %758 = vrot.lane.b32.xlu0 %v753_v3, %s4248_s19 }
 0x1ac   :  { %774 = vrot.lane.b32.xlu2 %v770_v4, %s4250_s23 }
 0x1ae   :  { %615 = vrot.lane.b32.xlu1 %v4615_v11, %s4250_s23  ;;  %776 = vrot.lane.b32.xlu0 %v771_v5, %s4250_s23  ;;  %v807_v11 = vmul.f32 %v804_v16, %v4609_v9 }
 0x1b4   :  { %792 = vrot.lane.b32.xlu2 %v788_v12, %s4251_s0 }
 0x1b6   :  { %633 = vrot.lane.b32.xlu1 %v4625_v17, %s4251_s0  ;;  %794 = vrot.lane.b32.xlu0 %v789_v14, %s4251_s0  ;;  %v4739_v53 = vpop.permute.xlu2 %581  ;;  %v4750_v17 = vpop.permute.xlu0 %722  ;;  %v567_v14 = vmul.f32 %v4731_v13, %v4606_v8 }
 0x1bc   :  { %810 = vrot.lane.b32.xlu2 %v806_v18, %s4252_s24 }
 0x1be   :  { %651 = vrot.lane.b32.xlu1 %v4648_v28, %s4252_s24  ;;  %812 = vrot.lane.b32.xlu0 %v807_v11, %s4252_s24  ;;  %v4746_v54 = vpop.permute.xlu2 %599  ;;  %v409_v28 = vmul.f32 %v4560_v44, %v4631_v19 }
 0x1c6   :  { %669 = vrot.lane.b32.xlu1 %v4665_v33, %s4253_s25  ;;  %v4754_v21 = vpop.permute.xlu2 %617 }
 0x1ce   :  { %687 = vrot.lane.b32.xlu1 %v4676_v38, %s4254_s26  ;;  %v4763_v31 = vpop.permute.xlu2 %635 }
 0x1d0   :  { %v423_v23 = vpop.permute.xlu1 %422  ;;  %v421_v25 = vpop.permute.xlu0 %420 }
 0x1d1   :  { %v428_v24 = vadd.f32 %v423_v23, %v410_v22  ;;  %v424_v20 = vsel %vm196_vm0, %v421_v25, %v423_v23  ;;  %v566_v22 = vmul.f32 %v4731_v13, %v4603_v7 }
 0x1d2   :  { %v427_v29 = vadd.f32 %v424_v20, %v409_v28 }
 0x1d6   :  { %705 = vrot.lane.b32.xlu1 %v4687_v46, %s4255_s27  ;;  %v4770_v39 = vpop.permute.xlu2 %653 }
 0x1d8   :  { %v441_v30 = vpop.permute.xlu1 %440  ;;  %v439_v34 = vpop.permute.xlu0 %438 }
 0x1d9   :  { %v446_v33 = vadd.f32 %v441_v30, %v428_v24  ;;  %v442_v35 = vsel %vm220_vm1, %v439_v34, %v441_v30 }
 0x1da   :  { %v445_v15 = vadd.f32 %v442_v35, %v427_v29 }
 0x1de   :  { %821 = vperm.xlu1 %4186, %v160_v32   ;;  %v4779_v40 = vpop.permute.xlu2 %671 }
 0x1e0   :  { %v459_v44 = vpop.permute.xlu1 %458  ;;  %v457_v37 = vpop.permute.xlu0 %456 }
 0x1e1   :  { %v464_v19 = vadd.f32 %v459_v44, %v446_v33  ;;  %v460_v38 = vsel %vm244_vm2, %v457_v37, %v459_v44 }
 0x1e2   :  { %v463_v41 = vadd.f32 %v460_v38, %v445_v15 }
 0x1e6   :  { %839 = vperm.xlu1 %4186, %v161_v42   ;;  %v4785_v58 = vpop.permute.xlu2 %689 }
 0x1e8   :  { %v477_v36 = vpop.permute.xlu1 %476  ;;  %v475_v46 = vpop.permute.xlu0 %474 }
 0x1e9   :  { %v482_v45 = vadd.f32 %v477_v36, %v464_v19  ;;  %v478_v47 = vsel %vm268_vm3, %v475_v46, %v477_v36  ;;  %v726_v36 = vmul.f32 %v4750_v17, %v4609_v9 }
 0x1ea   :  { %v481_v48 = vadd.f32 %v478_v47, %v463_v41 }
 0x1ee   :  { %857 = vperm.xlu1 %4186, %v162_v49   ;;  %v4791_v1 = vpop.permute.xlu2 %707 }
 0x1f0   :  { %v495_v50 = vpop.permute.xlu1 %494  ;;  %v493_v52 = vpop.permute.xlu0 %492 }
 0x1f1   :  { %v500_v51 = vadd.f32 %v495_v50, %v482_v45  ;;  %v496_v55 = vsel %vm292_vm4, %v493_v52, %v495_v50 }
 0x1f2   :  { %v499_v56 = vadd.f32 %v496_v55, %v481_v48 }
 0x1f6   :  { %881 = vperm.xlu1 %4186, %v163_v57   ;;  %v739_v23 = vpop.permute.xlu2 %738 }
 0x1f8   :  { %v513_v59 = vpop.permute.xlu1 %512  ;;  %v511_v61 = vpop.permute.xlu0 %510 }
 0x1f9   :  { %v518_v60 = vadd.f32 %v513_v59, %v500_v51  ;;  %v514_v62 = vsel %vm316_vm5, %v511_v61, %v513_v59 }
 0x1fa   :  { %v517_v43 = vadd.f32 %v514_v62, %v499_v56 }
 0x1fe   :  { %926 = vperm.xlu1 %4186, %v166_v63   ;;  %v757_v13 = vpop.permute.xlu2 %756 }
 0x200   :  { %v531_v0 = vpop.permute.xlu1 %530  ;;  %v529_v3 = vpop.permute.xlu0 %528 }
 0x201   :  { %v536_v2 = vadd.f32 %v531_v0, %v518_v60  ;;  %v532_v4 = vsel %vm340_vm6, %v529_v3, %v531_v0 }
 0x202   :  { %v535_v5 = vadd.f32 %v532_v4, %v517_v43 }
 0x206   :  { %980 = vperm.xlu1 %4186, %v169_v6   ;;  %v775_v47 = vpop.permute.xlu2 %774 }
 0x208   :  { %v549_v12 = vpop.permute.xlu1 %548  ;;  %v547_v18 = vpop.permute.xlu0 %546 }
 0x209   :  { %v554_v16 = vadd.f32 %v549_v12, %v536_v2  ;;  %v550_v11 = vsel %vm364_vm7, %v547_v18, %v549_v12  ;;  %v725_v18 = vmul.f32 %v4750_v17, %v4612_v10 }
 0x20a   :  { %v553_v25 = vadd.f32 %v550_v11, %v535_v5 }
 0x20b   :  { %v569_v24 = vadd.f32 %v567_v14, %v554_v16 }
 0x20c   :  { %v568_v20 = vadd.f32 %v566_v22, %v553_v25 }
 0x20d   :  { %v587_v28 = vadd.f32 %v4739_v53, %v569_v24 }
 0x20e   :  { %v793_v59 = vpop.permute.xlu2 %792 }
 0x20f   :  { %v605_v29 = vadd.f32 %v4746_v54, %v587_v28 }
 0x210   :  { %v580_v30 = vpop.permute.xlu1 %579  ;;  %v741_v34 = vpop.permute.xlu0 %740 }
 0x211   :  { %v623_v33 = vadd.f32 %v4754_v21, %v605_v29  ;;  %v583_v8 = vsel %vm196_vm0, %v580_v30, %v4739_v53  ;;  %v742_v15 = vsel %vm196_vm0, %v739_v23, %v741_v34 }
 0x212   :  { %v586_v35 = vadd.f32 %v583_v8, %v568_v20  ;;  %v164_v8 = vld [vmem:[%s5039_s3 + $0xe0] sm:$0xff] }
 0x213   :  { %v641_v7 = vadd.f32 %v4763_v31, %v623_v33 }
 0x215   :  { %v659_v32 = vadd.f32 %v4770_v39, %v641_v7 }
 0x216   :  { %v811_v7 = vpop.permute.xlu2 %810 }
 0x217   :  { %v677_v44 = vadd.f32 %v4779_v40, %v659_v32 }
 0x218   :  { %v598_v19 = vpop.permute.xlu1 %597  ;;  %v759_v41 = vpop.permute.xlu0 %758 }
 0x219   :  { %v695_v37 = vadd.f32 %v4785_v58, %v677_v44  ;;  %v601_v38 = vsel %vm220_vm1, %v598_v19, %v4746_v54  ;;  %v760_v53 = vsel %vm220_vm1, %v757_v13, %v759_v41 }
 0x21a   :  { %v604_v42 = vadd.f32 %v601_v38, %v586_v35  ;;  %v170_v35 = vld [vmem:[%s5039_s3 + $0x110] sm:$0xff] }
 0x21b   :  { %v713_v45 = vadd.f32 %v4791_v1, %v695_v37 }
 0x21d   :  { %v728_v46 = vadd.f32 %v726_v36, %v713_v45 }
 0x21f   :  { %v746_v48 = vadd.f32 %v741_v34, %v728_v46  ;;  %v165_v34 = vld [vmem:[%s5039_s3 + $0xe8] sm:$0xff] }
 0x220   :  { %v616_v49 = vpop.permute.xlu1 %615  ;;  %v777_v52 = vpop.permute.xlu0 %776 }
 0x221   :  { %v764_v50 = vadd.f32 %v759_v41, %v746_v48  ;;  %v619_v51 = vsel %vm244_vm2, %v616_v49, %v4754_v21  ;;  %v778_v54 = vsel %vm244_vm2, %v775_v47, %v777_v52 }
 0x222   :  { %v622_v55 = vadd.f32 %v619_v51, %v604_v42 }
 0x223   :  { %v782_v56 = vadd.f32 %v777_v52, %v764_v50 }
 0x228   :  { %v634_v57 = vpop.permute.xlu1 %633  ;;  %v795_v61 = vpop.permute.xlu0 %794 }
 0x229   :  { %v637_v60 = vsel %vm268_vm3, %v634_v57, %v4763_v31  ;;  %v796_v43 = vsel %vm268_vm3, %v793_v59, %v795_v61  ;;  %v800_v63 = vadd.f32 %v795_v61, %v782_v56 }
 0x22a   :  { %v640_v62 = vadd.f32 %v637_v60, %v622_v55 }
 0x230   :  { %v652_v0 = vpop.permute.xlu1 %651  ;;  %v813_v44 = vpop.permute.xlu0 %812 }
 0x231   :  { %v655_v2 = vsel %vm292_vm4, %v652_v0, %v4770_v39  ;;  %v814_v38 = vsel %vm292_vm4, %v811_v7, %v813_v44  ;;  %v818_v41 = vadd.f32 %v813_v44, %v800_v63 }
 0x232   :  { %v658_v21 = vadd.f32 %v655_v2, %v640_v62 }
 0x238   :  { %v670_v3 = vpop.permute.xlu1 %669 }
 0x239   :  { %v673_v4 = vsel %vm316_vm5, %v670_v3, %v4779_v40 }
 0x23a   :  { %v676_v5 = vadd.f32 %v673_v4, %v658_v21 }
 0x240   :  { %v688_v6 = vpop.permute.xlu1 %687 }
 0x241   :  { %v691_v12 = vsel %vm340_vm6, %v688_v6, %v4785_v58 }
 0x242   :  { %v694_v31 = vadd.f32 %v691_v12, %v676_v5 }
 0x248   :  { %v706_v14 = vpop.permute.xlu1 %705 }
 0x249   :  { %v709_v16 = vsel %vm364_vm7, %v706_v14, %v4791_v1 }
 0x24a   :  { %v712_v11 = vadd.f32 %v709_v16, %v694_v31 }
 0x24c   :  { %v727_v39 = vadd.f32 %v725_v18, %v712_v11 }
 0x24e   :  { %v745_v22 = vadd.f32 %v742_v15, %v727_v39  ;;  %v171_v15 = vld [vmem:[%s5039_s3 + $0x118] sm:$0xff]  ;;  %v1032_v39 = vld [vmem:[%s5040_s4] sm:$0xff] }
 0x250   :  { %v763_v23 = vadd.f32 %v760_v53, %v745_v22  ;;  %v822_v24 = vpop.permute.xlu1 %821 }
 0x251   :  { %v824_v40 = vmul.f32 %v822_v24, %v4612_v10  ;;  %v825_v25 = vmul.f32 %v822_v24, %v4609_v9 }
 0x252   :  { %v781_v28 = vadd.f32 %v778_v54, %v763_v23 }
 0x253   :  { %828 = vrot.lane.b32.xlu2 %v824_v40, %s4253_s25  ;;  %830 = vrot.lane.b32.xlu0 %v825_v25, %s4253_s25 }
 0x254   :  { %v799_v58 = vadd.f32 %v796_v43, %v781_v28 }
 0x256   :  { %v817_v36 = vadd.f32 %v814_v38, %v799_v58 }
 0x258   :  { %v840_v20 = vpop.permute.xlu1 %839 }
 0x259   :  { %v842_v1 = vmul.f32 %v840_v20, %v4612_v10  ;;  %v843_v17 = vmul.f32 %v840_v20, %v4609_v9 }
 0x25b   :  { %846 = vrot.lane.b32.xlu2 %v842_v1, %s4254_s26  ;;  %848 = vrot.lane.b32.xlu0 %v843_v17, %s4254_s26 }
 0x260   :  { %v858_v29 = vpop.permute.xlu1 %857 }
 0x261   :  { %v860_v30 = vmul.f32 %v858_v29, %v4612_v10  ;;  %v861_v33 = vmul.f32 %v858_v29, %v4609_v9  ;;  %v167_v10 = vld [vmem:[%s5039_s3 + $0xf8] sm:$0xff]  ;;  %v168_v9 = vld [vmem:[%s5039_s3 + $0x100] sm:$0xff] }
 0x263   :  { %864 = vrot.lane.b32.xlu2 %v860_v30, %s4255_s27  ;;  %866 = vrot.lane.b32.xlu0 %v861_v33, %s4255_s27 }
 0x268   :  { %v882_v37 = vpop.permute.xlu1 %881 }
 0x269   :  { %v885_v60 = vmul.f32 %v882_v37, %v4654_v27  ;;  %v884_v63 = vmul.f32 %v882_v37, %v4651_v26 }
 0x26b   :  { %890 = vperm.xlu2 %4185, %v164_v8   ;;  %908 = vperm.xlu0 %4184, %v165_v34  }
 0x270   :  { %v927_v50 = vpop.permute.xlu1 %926 }
 0x271   :  { %v929_v52 = vmul.f32 %v927_v50, %v4651_v26  ;;  %v930_v18 = vmul.f32 %v927_v50, %v4654_v27 }
 0x273   :  { %944 = vperm.xlu2 %4185, %v167_v10   ;;  %962 = vperm.xlu0 %4184, %v168_v9  }
 0x278   :  { %v981_v3 = vpop.permute.xlu1 %980 }
 0x279   :  { %v983_v5 = vmul.f32 %v981_v3, %v4651_v26  ;;  %v984_v40 = vmul.f32 %v981_v3, %v4654_v27 }
 0x27b   :  { %998 = vperm.xlu2 %4185, %v170_v35   ;;  %1016 = vperm.xlu0 %4184, %v171_v15  }
 0x2ad   :  { %v829_v13 = vpop.permute.xlu2 %828 }
 0x2b5   :  { %v847_v32 = vpop.permute.xlu2 %846 }
 0x2bd   :  { %v865_v19 = vpop.permute.xlu2 %864 }
 0x2c5   :  { %v891_v42 = vpop.permute.xlu2 %890  ;;  %v831_v53 = vpop.permute.xlu0 %830 }
 0x2c6   :  { %v893_v45 = vmul.f32 %v891_v42, %v4651_v26  ;;  %v894_v46 = vmul.f32 %v891_v42, %v4654_v27  ;;  %v832_v47 = vsel %vm316_vm5, %v829_v13, %v831_v53  ;;  %v836_v48 = vadd.f32 %v831_v53, %v818_v41 }
 0x2c7   :  { %v835_v49 = vadd.f32 %v832_v47, %v817_v36 }
 0x2c8   :  { %899 = vrot.lane.b32.xlu2 %v894_v46, %s4249_s22  ;;  %897 = vrot.lane.b32.xlu1 %v893_v45, %s4249_s22 }
 0x2cd   :  { %v849_v51 = vpop.permute.xlu0 %848  ;;  %v945_v57 = vpop.permute.xlu2 %944 }
 0x2ce   :  { %v850_v55 = vsel %vm340_vm6, %v847_v32, %v849_v51  ;;  %v854_v54 = vadd.f32 %v849_v51, %v836_v48  ;;  %v948_v61 = vmul.f32 %v945_v57, %v4654_v27  ;;  %v947_v14 = vmul.f32 %v945_v57, %v4651_v26 }
 0x2cf   :  { %v853_v56 = vadd.f32 %v850_v55, %v835_v49 }
 0x2d0   :  { %933 = vrot.lane.b32.xlu2 %v929_v52, %s4250_s23 }
 0x2d5   :  { %v867_v59 = vpop.permute.xlu0 %866  ;;  %v999_v31 = vpop.permute.xlu2 %998 }
 0x2d6   :  { %v868_v62 = vsel %vm364_vm7, %v865_v19, %v867_v59  ;;  %v872_v43 = vadd.f32 %v867_v59, %v854_v54  ;;  %v1002_v16 = vmul.f32 %v999_v31, %v4654_v27  ;;  %v1001_v24 = vmul.f32 %v999_v31, %v4651_v26 }
 0x2d7   :  { %v871_v0 = vadd.f32 %v868_v62, %v853_v56 }
 0x2d8   :  { %953 = vrot.lane.b32.xlu2 %v948_v61, %s4251_s0  ;;  %v887_v2 = vadd.f32 %v885_v60, %v872_v43 }
 0x2d9   :  { %v886_v21 = vadd.f32 %v884_v63, %v871_v0 }
 0x2dd   :  { %v909_v4 = vpop.permute.xlu0 %908 }
 0x2de   :  { %v911_v6 = vmul.f32 %v909_v4, %v4651_v26  ;;  %v912_v12 = vmul.f32 %v909_v4, %v4654_v27 }
 0x2e0   :  { %987 = vrot.lane.b32.xlu2 %v983_v5, %s4253_s25  ;;  %917 = vrot.lane.b32.xlu1 %v912_v12, %s4248_s19 }
 0x2e1   :  { %915 = vrot.lane.b32.xlu0 %v911_v6, %s4248_s19 }
 0x2e5   :  { %v963_v11 = vpop.permute.xlu0 %962 }
 0x2e6   :  { %v966_v22 = vmul.f32 %v963_v11, %v4654_v27  ;;  %v965_v23 = vmul.f32 %v963_v11, %v4651_v26 }
 0x2e8   :  { %1007 = vrot.lane.b32.xlu2 %v1002_v16, %s4254_s26  ;;  %951 = vrot.lane.b32.xlu1 %v947_v14, %s4251_s0 }
 0x2e9   :  { %935 = vrot.lane.b32.xlu0 %v930_v18, %s4250_s23 }
 0x2ed   :  { %v1017_v25 = vpop.permute.xlu0 %1016 }
 0x2ee   :  { %v1020_v28 = vmul.f32 %v1017_v25, %v4654_v27  ;;  %v1019_v58 = vmul.f32 %v1017_v25, %v4651_v26 }
 0x2f0   :  { %1035 = vperm.xlu2 %4185, %v1032_v39   ;;  %971 = vrot.lane.b32.xlu1 %v966_v22, %s4252_s24 }
 0x2f1   :  { %969 = vrot.lane.b32.xlu0 %v965_v23, %s4252_s24 }
 0x2f8   :  { %1005 = vrot.lane.b32.xlu1 %v1001_v24, %s4254_s26 }
 0x2f9   :  { %989 = vrot.lane.b32.xlu0 %v984_v40, %s4253_s25 }
 0x300   :  { %1025 = vrot.lane.b32.xlu1 %v1020_v28, %s4255_s27 }
 0x301   :  { %1023 = vrot.lane.b32.xlu0 %v1019_v58, %s4255_s27 }
 0x322   :  { %v900_v20 = vpop.permute.xlu2 %899 }
 0x323   :  { %v905_v35 = vadd.f32 %v900_v20, %v887_v2 }
 0x32a   :  { %v934_v17 = vpop.permute.xlu2 %933 }
 0x332   :  { %v954_v33 = vpop.permute.xlu2 %953 }
 0x33a   :  { %v898_v1 = vpop.permute.xlu1 %897  ;;  %v988_v10 = vpop.permute.xlu2 %987 }
 0x33b   :  { %v901_v9 = vsel %vm196_vm0, %v898_v1, %v900_v20 }
 0x33c   :  { %v904_v26 = vadd.f32 %v901_v9, %v886_v21 }
 0x342   :  { %v1008_v41 = vpop.permute.xlu2 %1007 }
 0x34a   :  { %v1036_v60 = vpop.permute.xlu2 %1035 }
 0x352   :  { %v918_v29 = vpop.permute.xlu1 %917 }
 0x353   :  { %v916_v30 = vpop.permute.xlu0 %915  ;;  %v923_v7 = vadd.f32 %v918_v29, %v905_v35 }
 0x354   :  { %v919_v27 = vsel %vm220_vm1, %v916_v30, %v918_v29 }
 0x355   :  { %v922_v44 = vadd.f32 %v919_v27, %v904_v26 }
 0x35a   :  { %v952_v8 = vpop.permute.xlu1 %951 }
 0x35b   :  { %v936_v34 = vpop.permute.xlu0 %935  ;;  %v955_v42 = vsel %vm268_vm3, %v952_v8, %v954_v33 }
 0x35c   :  { %v937_v32 = vsel %vm244_vm2, %v934_v17, %v936_v34  ;;  %v941_v19 = vadd.f32 %v936_v34, %v923_v7 }
 0x35d   :  { %v940_v37 = vadd.f32 %v937_v32, %v922_v44 }
 0x35e   :  { %v959_v38 = vadd.f32 %v954_v33, %v941_v19 }
 0x35f   :  { %v958_v46 = vadd.f32 %v955_v42, %v940_v37 }
 0x362   :  { %v972_v15 = vpop.permute.xlu1 %971 }
 0x363   :  { %v970_v13 = vpop.permute.xlu0 %969  ;;  %v977_v45 = vadd.f32 %v972_v15, %v959_v38 }
 0x364   :  { %v973_v53 = vsel %vm292_vm4, %v970_v13, %v972_v15 }
 0x365   :  { %v976_v49 = vadd.f32 %v973_v53, %v958_v46 }
 0x36a   :  { %v1006_v36 = vpop.permute.xlu1 %1005 }
 0x36b   :  { %v990_v47 = vpop.permute.xlu0 %989  ;;  %v1009_v55 = vsel %vm340_vm6, %v1006_v36, %v1008_v41 }
 0x36c   :  { %v991_v48 = vsel %vm316_vm5, %v988_v10, %v990_v47  ;;  %v995_v50 = vadd.f32 %v990_v47, %v977_v45 }
 0x36d   :  { %v994_v51 = vadd.f32 %v991_v48, %v976_v49 }
 0x36e   :  { %v1013_v52 = vadd.f32 %v1008_v41, %v995_v50 }
 0x36f   :  { %v1012_v59 = vadd.f32 %v1009_v55, %v994_v51 }
 0x372   :  { %v1026_v54 = vpop.permute.xlu1 %1025 }
 0x373   :  { %v1031_v56 = vadd.f32 %v1026_v54, %v1013_v52  ;;  %v1024_v57 = vpop.permute.xlu0 %1023 }
 0x374   :  { %v1027_v61 = vsel %vm364_vm7, %v1024_v57, %v1026_v54 }
 0x375   :  { %v4913_v62 = vadd.f32 %v1036_v60, %v1031_v56  ;;  %v1030_v43 = vadd.f32 %v1027_v61, %v1012_v59 }
 0x377   :  { %v1041_v63 = vmax.f32 %v4913_v62, 0.0  ;;  %v4916_v0 = vadd.f32 %v1036_v60, %v1030_v43 }
 0x379   :  { %v1040_v2 = vmax.f32 %v4916_v0, 0.0 }
 0x37a   :  { %4240 = dma.done.wait [#allocation4], 24576 }
 0x37b   :  { %4241 = vsyncadd [#allocation4], 4294942720  ;;  %v3149_v21 = vld [vmem:[#allocation2 + $0x260] sm:$0xf]  ;;  %v4027_v3 = vld [vmem:[#allocation2 + $0x26c] sm:$0xf0]  ;;  %v4922_v54 = vpack.c.bf16 %v1041_v63, %v1041_v63 }
 0x37c   :  { %v3213_v4 = vld [vmem:[#allocation2 + $0x2e0] sm:$0xf]  ;;  %v3150_v5 = vor.u32 %v4027_v3, %v3149_v21  ;;  %v4043_v6 = vld [vmem:[#allocation2 + $0x2ec] sm:$0xf0]  ;;  %v4025_v12 = vld [vmem:[#allocation2 + $0x264] sm:$0xf] }
 0x37d   :  { %v3151_v31 = vld [vmem:[#allocation2 + $0x270] sm:$0xf0]  ;;  %v3214_v14 = vor.u32 %v4043_v6, %v3213_v4  ;;  %v4041_v18 = vld [vmem:[#allocation2 + $0x2e4] sm:$0xf]  ;;  %v3133_v39 = vld [vmem:[#allocation2 + $0x240] sm:$0xf] }
 0x37e   :  { %v3154_v16 = vor.u32 %v4025_v12, %v3151_v31  ;;  %v3215_v11 = vld [vmem:[#allocation2 + $0x2f0] sm:$0xf0]  ;;  %1395 = vmatpush.bf16.msra.mxu0 %v3150_v5  ;;  %v4023_v23 = vld [vmem:[#allocation2 + $0x24c] sm:$0xf0]  ;;  %v3197_v24 = vld [vmem:[#allocation2 + $0x2c0] sm:$0xf] }
 0x37f   :  { %v3218_v22 = vor.u32 %v4041_v18, %v3215_v11  ;;  %v4039_v40 = vld [vmem:[#allocation2 + $0x2cc] sm:$0xf0]  ;;  %1412 = vmatpush.bf16.msra.mxu1 %v3214_v14  ;;  %v3134_v25 = vor.u32 %v4023_v23, %v3133_v39  ;;  %v4021_v58 = vld [vmem:[#allocation2 + $0x244] sm:$0xf]  ;;  %v3135_v20 = vld [vmem:[#allocation2 + $0x250] sm:$0xf0] }
 0x380   :  { %1421 = vmatpush.bf16.msra.mxu2 %v3154_v16  ;;  %v3198_v28 = vor.u32 %v4039_v40, %v3197_v24  ;;  %v4037_v1 = vld [vmem:[#allocation2 + $0x2c4] sm:$0xf]  ;;  %v3138_v17 = vor.u32 %v4021_v58, %v3135_v20  ;;  %v3199_v29 = vld [vmem:[#allocation2 + $0x2d0] sm:$0xf0]  ;;  %v3117_v30 = vld [vmem:[#allocation2 + $0x220] sm:$0xf] }
 0x381   :  { %1438 = vmatpush.bf16.msra.mxu3 %v3218_v22  ;;  %v4019_v33 = vld [vmem:[#allocation2 + $0x22c] sm:$0xf0]  ;;  %v3202_v8 = vor.u32 %v4037_v1, %v3199_v29  ;;  %v3181_v34 = vld [vmem:[#allocation2 + $0x2a0] sm:$0xf]  ;;  %v4017_v9 = vld [vmem:[#allocation2 + $0x224] sm:$0xf] }
 0x382   :  { %v4035_v10 = vld [vmem:[#allocation2 + $0x2ac] sm:$0xf0]  ;;  %1396 = vmatpush.bf16.msra.mxu0 %v3134_v25  ;;  %v3118_v35 = vor.u32 %v4019_v33, %v3117_v30  ;;  %v3119_v27 = vld [vmem:[#allocation2 + $0x230] sm:$0xf0]  ;;  %v4033_v15 = vld [vmem:[#allocation2 + $0x2a4] sm:$0xf] }
 0x383   :  { %v3183_v26 = vld [vmem:[#allocation2 + $0x2b0] sm:$0xf0]  ;;  %1413 = vmatpush.bf16.msra.mxu1 %v3198_v28  ;;  %v3182_v7 = vor.u32 %v4035_v10, %v3181_v34  ;;  %v3122_v13 = vor.u32 %v4017_v9, %v3119_v27  ;;  %v3101_v32 = vld [vmem:[#allocation2 + $0x200] sm:$0xf]  ;;  %v4015_v44 = vld [vmem:[#allocation2 + $0x20c] sm:$0xf0] }
 0x384   :  { %1422 = vmatpush.bf16.msra.mxu2 %v3138_v17  ;;  %v3165_v19 = vld [vmem:[#allocation2 + $0x280] sm:$0xf]  ;;  %v3186_v37 = vor.u32 %v4033_v15, %v3183_v26  ;;  %v4031_v38 = vld [vmem:[#allocation2 + $0x28c] sm:$0xf0]  ;;  %v4013_v41 = vld [vmem:[#allocation2 + $0x204] sm:$0xf]  ;;  %v3102_v46 = vor.u32 %v4015_v44, %v3101_v32 }
 0x385   :  { %1439 = vmatpush.bf16.msra.mxu3 %v3202_v8  ;;  %v3103_v42 = vld [vmem:[#allocation2 + $0x210] sm:$0xf0]  ;;  %v4029_v53 = vld [vmem:[#allocation2 + $0x284] sm:$0xf]  ;;  %v3157_v45 = vld [vmem:[#allocation2 + $0x268] sm:$0xf]  ;;  %v3166_v50 = vor.u32 %v4031_v38, %v3165_v19 }
 0x386   :  { %v3167_v36 = vld [vmem:[#allocation2 + $0x290] sm:$0xf0]  ;;  %1397 = vmatpush.bf16.msra.mxu0 %v3118_v35  ;;  %v4028_v47 = vld [vmem:[#allocation2 + $0x274] sm:$0xf0]  ;;  %v3221_v48 = vld [vmem:[#allocation2 + $0x2e8] sm:$0xf]  ;;  %v3106_v51 = vor.u32 %v4013_v41, %v3103_v42 }
 0x387   :  { %v4044_v49 = vld [vmem:[#allocation2 + $0x2f4] sm:$0xf0]  ;;  %1414 = vmatpush.bf16.msra.mxu1 %v3182_v7  ;;  %v3085_v52 = vld [vmem:[#allocation2 + $0x1e0] sm:$0xf]  ;;  %v4011_v55 = vld [vmem:[#allocation2 + $0x1ec] sm:$0xf0]  ;;  %v3170_v56 = vor.u32 %v4029_v53, %v3167_v36  ;;  %v3158_v57 = vor.u32 %v4028_v47, %v3157_v45  ;;  %v4934_v45 = vpack.c.bf16 %v1040_v2, %v1040_v2 }
 0x388   :  { %1423 = vmatpush.bf16.msra.mxu2 %v3122_v13  ;;  %v4009_v59 = vld [vmem:[#allocation2 + $0x1e4] sm:$0xf]  ;;  %v3087_v60 = vld [vmem:[#allocation2 + $0x1f0] sm:$0xf0]  ;;  %v3222_v61 = vor.u32 %v4044_v49, %v3221_v48  ;;  %v3141_v43 = vld [vmem:[#allocation2 + $0x248] sm:$0xf]  ;;  %v3086_v3 = vor.u32 %v4011_v55, %v3085_v52 }
 0x389   :  { %1440 = vmatpush.bf16.msra.mxu3 %v3186_v37  ;;  %v4024_v21 = vld [vmem:[#allocation2 + $0x254] sm:$0xf0]  ;;  %v3205_v4 = vld [vmem:[#allocation2 + $0x2c8] sm:$0xf]  ;;  %v3090_v6 = vor.u32 %v4009_v59, %v3087_v60  ;;  %v3069_v12 = vld [vmem:[#allocation2 + $0x1c0] sm:$0xf] }
 0x38a   :  { %1398 = vmatpush.bf16.msra.mxu0 %v3102_v46  ;;  %v4040_v5 = vld [vmem:[#allocation2 + $0x2d4] sm:$0xf0]  ;;  %v4007_v62 = vld [vmem:[#allocation2 + $0x1cc] sm:$0xf0]  ;;  %v4925_v63 = vrot.slane %v4922_v54, 1  ;;  %v3142_v31 = vor.u32 %v4024_v21, %v3141_v43  ;;  %vm1391_vm11 = vcmask 523264  }
 0x38b   :  { %1415 = vmatpush.bf16.msra.mxu1 %v3166_v50  ;;  %v4005_v14 = vld [vmem:[#allocation2 + $0x1c4] sm:$0xf]  ;;  %v3071_v16 = vld [vmem:[#allocation2 + $0x1d0] sm:$0xf0]  ;;  %v3206_v18 = vor.u32 %v4040_v5, %v3205_v4  ;;  %v3125_v11 = vld [vmem:[#allocation2 + $0x228] sm:$0xf]  ;;  %v3070_v22 = vor.u32 %v4007_v62, %v3069_v12 }
 0x38c   :  { %1424 = vmatpush.bf16.msra.mxu2 %v3106_v51  ;;  %v4020_v39 = vld [vmem:[#allocation2 + $0x234] sm:$0xf0]  ;;  %v3189_v23 = vld [vmem:[#allocation2 + $0x2a8] sm:$0xf]  ;;  %v3074_v40 = vor.u32 %v4005_v14, %v3071_v16  ;;  %v3053_v25 = vld [vmem:[#allocation2 + $0x1a0] sm:$0xf] }
 0x38d   :  { %1441 = vmatpush.bf16.msra.mxu3 %v3170_v56  ;;  %v4036_v24 = vld [vmem:[#allocation2 + $0x2b4] sm:$0xf0]  ;;  %v4003_v28 = vld [vmem:[#allocation2 + $0x1ac] sm:$0xf0]  ;;  %v3126_v58 = vor.u32 %v4020_v39, %v3125_v11  ;;  %v4001_v20 = vld [vmem:[#allocation2 + $0x1a4] sm:$0xf] }
 0x38e   :  { %1399 = vmatpush.bf16.msra.mxu0 %v3086_v3  ;;  %3227 = vmatmul.msk.bf16.vlgmr.msra.gmra.mxu1 %vm1391_vm11, %v4925_v63  ;;  %v3055_v1 = vld [vmem:[#allocation2 + $0x1b0] sm:$0xf0]  ;;  %v3109_v17 = vld [vmem:[#allocation2 + $0x208] sm:$0xf]  ;;  %v3190_v29 = vor.u32 %v4036_v24, %v3189_v23  ;;  %v4016_v30 = vld [vmem:[#allocation2 + $0x214] sm:$0xf0]  ;;  %v3054_v34 = vor.u32 %v4003_v28, %v3053_v25 }
 0x38f   :  { %1447 = vmatpush.bf16.msrb.mxu1 %v3158_v57  ;;  %v3173_v33 = vld [vmem:[#allocation2 + $0x288] sm:$0xf]  ;;  %v4032_v8 = vld [vmem:[#allocation2 + $0x294] sm:$0xf0]  ;;  %v3345_v10 = vld [vmem:[#allocation2 + $0xe0] sm:$0xf]  ;;  %v3058_v27 = vor.u32 %v4001_v20, %v3055_v1  ;;  %v3110_v13 = vor.u32 %v4016_v30, %v3109_v17 }
 0x390   :  { %1425 = vmatpush.bf16.msra.mxu2 %v3090_v6  ;;  %3228 = vmatmul.msk.bf16.vlgmr.msra.gmra.mxu3 %vm1391_vm11, %v4925_v63  ;;  %v3979_v9 = vld [vmem:[#allocation2 + $0xec] sm:$0xf0]  ;;  %v3037_v35 = vld [vmem:[#allocation2 + $0x180] sm:$0xf]  ;;  %v3997_v26 = vld [vmem:[#allocation2 + $0x184] sm:$0xf]  ;;  %v3174_v37 = vor.u32 %v4032_v8, %v3173_v33 }
 0x391   :  { %1464 = vmatpush.bf16.msrb.mxu3 %v3222_v61  ;;  %v3999_v15 = vld [vmem:[#allocation2 + $0x18c] sm:$0xf0]  ;;  %v3039_v7 = vld [vmem:[#allocation2 + $0x190] sm:$0xf0]  ;;  %v3093_v32 = vld [vmem:[#allocation2 + $0x1e8] sm:$0xf]  ;;  %v3346_v53 = vor.u32 %v3979_v9, %v3345_v10 }
 0x392   :  { %1400 = vmatpush.bf16.msra.mxu0 %v3070_v22  ;;  %v4026_v44 = vld [vmem:[#allocation2 + $0x26c] sm:$0xf]  ;;  %v3159_v19 = vld [vmem:[#allocation2 + $0x278] sm:$0xf0]  ;;  %v4012_v38 = vld [vmem:[#allocation2 + $0x1f4] sm:$0xf0]  ;;  %v3038_v36 = vor.u32 %v3999_v15, %v3037_v35  ;;  %v3042_v46 = vor.u32 %v3997_v26, %v3039_v7 }
 0x393   :  { %1448 = vmatpush.bf16.msrb.mxu1 %v3142_v31  ;;  %v4042_v41 = vld [vmem:[#allocation2 + $0x2ec] sm:$0xf]  ;;  %v3223_v42 = vld [vmem:[#allocation2 + $0x2f8] sm:$0xf0]  ;;  %v3162_v47 = vor.u32 %v4026_v44, %v3159_v19  ;;  %v3329_v48 = vld [vmem:[#allocation2 + $0xc0] sm:$0xf]  ;;  %v3094_v50 = vor.u32 %v4012_v38, %v3093_v32 }
 0x394   :  { %1426 = vmatpush.bf16.msra.mxu2 %v3074_v40  ;;  %v3975_v49 = vld [vmem:[#allocation2 + $0xcc] sm:$0xf0]  ;;  %v3226_v51 = vor.u32 %v4042_v41, %v3223_v42  ;;  %v3077_v52 = vld [vmem:[#allocation2 + $0x1c8] sm:$0xf]  ;;  %v4022_v55 = vld [vmem:[#allocation2 + $0x24c] sm:$0xf] }
 0x395   :  { %1465 = vmatpush.bf16.msrb.mxu3 %v3206_v18  ;;  %v3143_v56 = vld [vmem:[#allocation2 + $0x258] sm:$0xf0]  ;;  %v4008_v57 = vld [vmem:[#allocation2 + $0x1d4] sm:$0xf0]  ;;  %v4038_v59 = vld [vmem:[#allocation2 + $0x2cc] sm:$0xf]  ;;  %v3330_v0 = vor.u32 %v3975_v49, %v3329_v48 }
 0x396   :  { %1401 = vmatpush.bf16.msra.mxu0 %v3054_v34  ;;  %v3207_v60 = vld [vmem:[#allocation2 + $0x2d8] sm:$0xf0]  ;;  %v4937_v2 = vrot.slane %v4934_v45, 1  ;;  %v3146_v61 = vor.u32 %v4022_v55, %v3143_v56  ;;  %v3313_v43 = vld [vmem:[#allocation2 + $0xa0] sm:$0xf]  ;;  %v3078_v3 = vor.u32 %v4008_v57, %v3077_v52 }
 0x397   :  { %1449 = vmatpush.bf16.msrb.mxu1 %v3126_v58  ;;  %v3971_v21 = vld [vmem:[#allocation2 + $0xac] sm:$0xf0]  ;;  %v3210_v4 = vor.u32 %v4038_v59, %v3207_v60  ;;  %v3061_v5 = vld [vmem:[#allocation2 + $0x1a8] sm:$0xf]  ;;  %v4018_v6 = vld [vmem:[#allocation2 + $0x22c] sm:$0xf] }
 0x398   :  { %1427 = vmatpush.bf16.msra.mxu2 %v3058_v27  ;;  %v3127_v12 = vld [vmem:[#allocation2 + $0x238] sm:$0xf0]  ;;  %v4004_v62 = vld [vmem:[#allocation2 + $0x1b4] sm:$0xf0]  ;;  %v4034_v31 = vld [vmem:[#allocation2 + $0x2ac] sm:$0xf]  ;;  %v3314_v16 = vor.u32 %v3971_v21, %v3313_v43 }
 0x399   :  { %1466 = vmatpush.bf16.msrb.mxu3 %v3190_v29  ;;  %v3191_v14 = vld [vmem:[#allocation2 + $0x2b8] sm:$0xf0]  ;;  %v3130_v18 = vor.u32 %v4018_v6, %v3127_v12  ;;  %v3297_v11 = vld [vmem:[#allocation2 + $0x80] sm:$0xf]  ;;  %v3967_v39 = vld [vmem:[#allocation2 + $0x8c] sm:$0xf0]  ;;  %v3062_v23 = vor.u32 %v4004_v62, %v3061_v5 }
 0x39a   :  { %1402 = vmatpush.bf16.msra.mxu0 %v3038_v36  ;;  %v3045_v22 = vld [vmem:[#allocation2 + $0x188] sm:$0xf]  ;;  %v3194_v24 = vor.u32 %v4034_v31, %v3191_v14  ;;  %v4000_v40 = vld [vmem:[#allocation2 + $0x194] sm:$0xf0]  ;;  %v4014_v25 = vld [vmem:[#allocation2 + $0x20c] sm:$0xf]  ;;  %v3298_v17 = vor.u32 %v3967_v39, %v3297_v11 }
 0x39b   :  { %1450 = vmatpush.bf16.msrb.mxu1 %v3110_v13  ;;  %v3111_v28 = vld [vmem:[#allocation2 + $0x218] sm:$0xf0]  ;;  %v4030_v58 = vld [vmem:[#allocation2 + $0x28c] sm:$0xf]  ;;  %v3409_v1 = vld [vmem:[#allocation2 + $0x160] sm:$0xf]  ;;  %v3046_v9 = vor.u32 %v4000_v40, %v3045_v22 }
 0x39c   :  { %1428 = vmatpush.bf16.msra.mxu2 %v3042_v46  ;;  %v3175_v20 = vld [vmem:[#allocation2 + $0x298] sm:$0xf0]  ;;  %v3995_v29 = vld [vmem:[#allocation2 + $0x16c] sm:$0xf0]  ;;  %v3977_v30 = vld [vmem:[#allocation2 + $0xe4] sm:$0xf]  ;;  %v3114_v8 = vor.u32 %v4014_v25, %v3111_v28 }
 0x39d   :  { %1467 = vmatpush.bf16.msrb.mxu3 %v3174_v37  ;;  %1403 = vmatmul.bf16.vlgmr.msra.gmra.mxu0 %v4937_v2  ;;  %v3347_v33 = vld [vmem:[#allocation2 + $0xf0] sm:$0xf0]  ;;  %v3281_v34 = vld [vmem:[#allocation2 + $0x60] sm:$0xf]  ;;  %v3963_v10 = vld [vmem:[#allocation2 + $0x6c] sm:$0xf0]  ;;  %v3178_v35 = vor.u32 %v4030_v58, %v3175_v20  ;;  %v3410_v26 = vor.u32 %v3995_v29, %v3409_v1 }
 0x39e   :  { %1473 = vmatpush.bf16.msrb.mxu0 %v3162_v47  ;;  %v4010_v27 = vld [vmem:[#allocation2 + $0x1ec] sm:$0xf]  ;;  %v3095_v15 = vld [vmem:[#allocation2 + $0x1f8] sm:$0xf0]  ;;  %v3350_v7 = vor.u32 %v3977_v30, %v3347_v33  ;;  %v3393_v13 = vld [vmem:[#allocation2 + $0x140] sm:$0xf]  ;;  %v3282_v32 = vor.u32 %v3963_v10, %v3281_v34 }
 0x39f   :  { %1451 = vmatpush.bf16.msrb.mxu1 %v3094_v50  ;;  %1429 = vmatmul.bf16.vlgmr.msra.gmra.mxu2 %v4937_v2  ;;  %v3991_v44 = vld [vmem:[#allocation2 + $0x14c] sm:$0xf0]  ;;  %v3973_v19 = vld [vmem:[#allocation2 + $0xc4] sm:$0xf]  ;;  %v3331_v37 = vld [vmem:[#allocation2 + $0xd0] sm:$0xf0]  ;;  %v3098_v38 = vor.u32 %v4010_v27, %v3095_v15 }
 0x3a0   :  { %1490 = vmatpush.bf16.msrb.mxu2 %v3226_v51  ;;  %3229 = vmatmul.msk.bf16.vlgmr.msrb.gmra.mxu3 %vm1391_vm11, %v4925_v63  ;;  %v3265_v41 = vld [vmem:[#allocation2 + $0x40] sm:$0xf]  ;;  %v3959_v42 = vld [vmem:[#allocation2 + $0x4c] sm:$0xf0]  ;;  %v3079_v36 = vld [vmem:[#allocation2 + $0x1d8] sm:$0xf0]  ;;  %v3394_v46 = vor.u32 %v3991_v44, %v3393_v13  ;;  %v3334_v47 = vor.u32 %v3973_v19, %v3331_v37 }
 0x3a1   :  { %1742 = vmatpush.bf16.msra.mxu3 %v3346_v53  ;;  %v4006_v53 = vld [vmem:[#allocation2 + $0x1cc] sm:$0xf]  ;;  %v3377_v48 = vld [vmem:[#allocation2 + $0x120] sm:$0xf]  ;;  %v3266_v49 = vor.u32 %v3959_v42, %v3265_v41  ;;  %v3987_v50 = vld [vmem:[#allocation2 + $0x12c] sm:$0xf0] }
 0x3a2   :  { %1474 = vmatpush.bf16.msrb.mxu0 %v3146_v61  ;;  %v3969_v51 = vld [vmem:[#allocation2 + $0xa4] sm:$0xf]  ;;  %v3315_v52 = vld [vmem:[#allocation2 + $0xb0] sm:$0xf0]  ;;  %v3082_v55 = vor.u32 %v4006_v53, %v3079_v36  ;;  %v3249_v56 = vld [vmem:[#allocation2 + $0x20] sm:$0xf] }
 0x3a3   :  { %1452 = vmatpush.bf16.msrb.mxu1 %v3078_v3  ;;  %v3955_v57 = vld [vmem:[#allocation2 + $0x2c] sm:$0xf0]  ;;  %v4002_v59 = vld [vmem:[#allocation2 + $0x1ac] sm:$0xf]  ;;  %v3063_v60 = vld [vmem:[#allocation2 + $0x1b8] sm:$0xf0]  ;;  %v3318_v61 = vor.u32 %v3969_v51, %v3315_v52 }
 0x3a4   :  { %1491 = vmatpush.bf16.msrb.mxu2 %v3210_v4  ;;  %v3233_v43 = vld [vmem:[#allocation2] sm:$0xf]  ;;  %v3951_v21 = vld [vmem:[#allocation2 + $0xc] sm:$0xf0]  ;;  %v3250_v4 = vor.u32 %v3955_v57, %v3249_v56  ;;  %v3965_v6 = vld [vmem:[#allocation2 + $0x84] sm:$0xf]  ;;  %v3066_v62 = vor.u32 %v4002_v59, %v3063_v60 }
 0x3a5   :  { %1743 = vmatpush.bf16.msra.mxu3 %v3330_v0  ;;  %v3378_v0 = vor.u32 %v3987_v50, %v3377_v48  ;;  %v3361_v3 = vld [vmem:[#allocation2 + $0x100] sm:$0xf]  ;;  %v3983_v5 = vld [vmem:[#allocation2 + $0x10c] sm:$0xf0]  ;;  %v3299_v12 = vld [vmem:[#allocation2 + $0x90] sm:$0xf0]  ;;  %v3234_v25 = vor.u32 %v3951_v21, %v3233_v43 }
 0x3a6   :  { %1475 = vmatpush.bf16.msrb.mxu0 %v3130_v18  ;;  %v3993_v31 = vld [vmem:[#allocation2 + $0x164] sm:$0xf]  ;;  %v3353_v14 = vld [vmem:[#allocation2 + $0xe8] sm:$0xf]  ;;  %v3411_v18 = vld [vmem:[#allocation2 + $0x170] sm:$0xf0]  ;;  %v3362_v22 = vor.u32 %v3983_v5, %v3361_v3 }
 0x3a7   :  { %1453 = vmatpush.bf16.msrb.mxu1 %v3062_v23  ;;  %v3998_v11 = vld [vmem:[#allocation2 + $0x18c] sm:$0xf]  ;;  %v3047_v39 = vld [vmem:[#allocation2 + $0x198] sm:$0xf0]  ;;  %v3302_v23 = vor.u32 %v3965_v6, %v3299_v12  ;;  %v3961_v58 = vld [vmem:[#allocation2 + $0x64] sm:$0xf] }
 0x3a8   :  { %1492 = vmatpush.bf16.msrb.mxu2 %v3194_v24  ;;  %v3978_v24 = vld [vmem:[#allocation2 + $0xec] sm:$0xf]  ;;  %v3355_v40 = vld [vmem:[#allocation2 + $0xf8] sm:$0xf0]  ;;  %v3283_v20 = vld [vmem:[#allocation2 + $0x70] sm:$0xf0]  ;;  %v3050_v1 = vor.u32 %v3998_v11, %v3047_v39 }
 0x3a9   :  { %1744 = vmatpush.bf16.msra.mxu3 %v3314_v16  ;;  %v3980_v16 = vld [vmem:[#allocation2 + $0xf4] sm:$0xf0]  ;;  %v3358_v30 = vor.u32 %v3978_v24, %v3355_v40  ;;  %v3989_v33 = vld [vmem:[#allocation2 + $0x144] sm:$0xf]  ;;  %v3286_v34 = vor.u32 %v3961_v58, %v3283_v20  ;;  %v3974_v10 = vld [vmem:[#allocation2 + $0xcc] sm:$0xf] }
 0x3aa   :  { %1476 = vmatpush.bf16.msrb.mxu0 %v3114_v8  ;;  %v3354_v28 = vor.u32 %v3980_v16, %v3353_v14  ;;  %v3976_v29 = vld [vmem:[#allocation2 + $0xd4] sm:$0xf0]  ;;  %v3395_v8 = vld [vmem:[#allocation2 + $0x150] sm:$0xf0]  ;;  %v3957_v27 = vld [vmem:[#allocation2 + $0x44] sm:$0xf] }
 0x3ab   :  { %1454 = vmatpush.bf16.msrb.mxu1 %v3046_v9  ;;  %v3339_v9 = vld [vmem:[#allocation2 + $0xd8] sm:$0xf0]  ;;  %v3267_v15 = vld [vmem:[#allocation2 + $0x50] sm:$0xf0]  ;;  %v3972_v13 = vld [vmem:[#allocation2 + $0xb4] sm:$0xf0] }
 0x3ac   :  { %1493 = vmatpush.bf16.msrb.mxu2 %v3178_v35  ;;  %v3985_v44 = vld [vmem:[#allocation2 + $0x124] sm:$0xf]  ;;  %v3379_v19 = vld [vmem:[#allocation2 + $0x130] sm:$0xf0]  ;;  %v3270_v37 = vor.u32 %v3957_v27, %v3267_v15  ;;  %v3323_v41 = vld [vmem:[#allocation2 + $0xb8] sm:$0xf0] }
 0x3ad   :  { %1745 = vmatpush.bf16.msra.mxu3 %v3298_v17  ;;  %v3337_v17 = vld [vmem:[#allocation2 + $0xc8] sm:$0xf]  ;;  %v3953_v53 = vld [vmem:[#allocation2 + $0x24] sm:$0xf]  ;;  %v3251_v36 = vld [vmem:[#allocation2 + $0x30] sm:$0xf0] }
 0x3ae   :  { %1477 = vmatpush.bf16.msrb.mxu0 %v3098_v38  ;;  %1455 = vmatmul.bf16.vlgmr.msrb.gmra.mxu1 %v4937_v2  ;;  %v3338_v35 = vor.u32 %v3976_v29, %v3337_v17  ;;  %v3970_v38 = vld [vmem:[#allocation2 + $0xac] sm:$0xf]  ;;  %v3968_v48 = vld [vmem:[#allocation2 + $0x94] sm:$0xf0]  ;;  %v3981_v50 = vld [vmem:[#allocation2 + $0x104] sm:$0xf] }
 0x3af   :  { %1759 = vmatpush.bf16.msra.mxu1 %v3410_v26  ;;  %3230 = vmatmul.msk.bf16.vlgmr.msrb.gmra.mxu2 %vm1391_vm11, %v4925_v63  ;;  %v3414_v63 = vor.u32 %v3993_v31, %v3411_v18  ;;  %v3398_v26 = vor.u32 %v3989_v33, %v3395_v8  ;;  %v3363_v51 = vld [vmem:[#allocation2 + $0x110] sm:$0xf0]  ;;  %v3417_v52 = vld [vmem:[#allocation2 + $0x168] sm:$0xf]  ;;  %v3996_v56 = vld [vmem:[#allocation2 + $0x174] sm:$0xf0] }
 0x3b0   :  { %1768 = vmatpush.bf16.msra.mxu2 %v3350_v7  ;;  %v3321_v7 = vld [vmem:[#allocation2 + $0xa8] sm:$0xf]  ;;  %v3966_v57 = vld [vmem:[#allocation2 + $0x8c] sm:$0xf]  ;;  %v3307_v59 = vld [vmem:[#allocation2 + $0x98] sm:$0xf0]  ;;  %v3366_v43 = vor.u32 %v3981_v50, %v3363_v51  ;;  %v3418_v5 = vor.u32 %v3996_v56, %v3417_v52 }
 0x3b1   :  { %1746 = vmatpush.bf16.msra.mxu3 %v3282_v32  ;;  %v3342_v32 = vor.u32 %v3974_v10, %v3339_v9  ;;  %v3322_v42 = vor.u32 %v3972_v13, %v3321_v7  ;;  %v3964_v21 = vld [vmem:[#allocation2 + $0x74] sm:$0xf0]  ;;  %v3994_v3 = vld [vmem:[#allocation2 + $0x16c] sm:$0xf]  ;;  %v3310_v6 = vor.u32 %v3966_v57, %v3307_v59  ;;  %v3291_v11 = vld [vmem:[#allocation2 + $0x78] sm:$0xf0] }
 0x3b2   :  { %1478 = vmatpush.bf16.msrb.mxu0 %v3082_v55  ;;  %v3254_v55 = vor.u32 %v3953_v53, %v3251_v36  ;;  %v3992_v31 = vld [vmem:[#allocation2 + $0x154] sm:$0xf0]  ;;  %v3962_v18 = vld [vmem:[#allocation2 + $0x6c] sm:$0xf]  ;;  %v3273_v39 = vld [vmem:[#allocation2 + $0x48] sm:$0xf] }
 0x3b3   :  { %1760 = vmatpush.bf16.msra.mxu1 %v3394_v46  ;;  %v3382_v46 = vor.u32 %v3985_v44, %v3379_v19  ;;  %v3403_v24 = vld [vmem:[#allocation2 + $0x158] sm:$0xf0]  ;;  %v3988_v58 = vld [vmem:[#allocation2 + $0x134] sm:$0xf0]  ;;  %v3257_v29 = vld [vmem:[#allocation2 + $0x28] sm:$0xf] }
 0x3b4   :  { %1769 = vmatpush.bf16.msra.mxu2 %v3334_v47  ;;  %v3305_v47 = vld [vmem:[#allocation2 + $0x88] sm:$0xf]  ;;  %v3275_v17 = vld [vmem:[#allocation2 + $0x58] sm:$0xf0]  ;;  %v3986_v33 = vld [vmem:[#allocation2 + $0x12c] sm:$0xf] }
 0x3b5   :  { %1747 = vmatpush.bf16.msra.mxu3 %v3266_v49  ;;  %v3326_v49 = vor.u32 %v3970_v38, %v3323_v41  ;;  %v3306_v60 = vor.u32 %v3968_v48, %v3305_v47  ;;  %v3387_v8 = vld [vmem:[#allocation2 + $0x138] sm:$0xf0]  ;;  %v3369_v10 = vld [vmem:[#allocation2 + $0x108] sm:$0xf]  ;;  %v3984_v9 = vld [vmem:[#allocation2 + $0x114] sm:$0xf0] }
 0x3b6   :  { %1479 = vmatpush.bf16.msrb.mxu0 %v3066_v62  ;;  %v3401_v62 = vld [vmem:[#allocation2 + $0x148] sm:$0xf]  ;;  %v3541_v27 = vld [vmem:[#allocation2 + $0x3e0] sm:$0xf]  ;;  %v4075_v15 = vld [vmem:[#allocation2 + $0x3ec] sm:$0xf0]  ;;  %v3390_v13 = vor.u32 %v3986_v33, %v3387_v8 }
 0x3b7   :  { %1761 = vmatpush.bf16.msra.mxu1 %v3378_v0  ;;  %v3235_v0 = vld [vmem:[#allocation2 + $0x10] sm:$0xf0]  ;;  %v3402_v40 = vor.u32 %v3992_v31, %v3401_v62  ;;  %v3241_v44 = vld [vmem:[#allocation2 + $0x8] sm:$0xf]  ;;  %v3952_v19 = vld [vmem:[#allocation2 + $0x14] sm:$0xf0]  ;;  %v3542_v47 = vor.u32 %v4075_v15, %v3541_v27 }
 0x3b8   :  { %1770 = vmatpush.bf16.msra.mxu2 %v3318_v61  ;;  %v3289_v61 = vld [vmem:[#allocation2 + $0x68] sm:$0xf]  ;;  %v3371_v38 = vld [vmem:[#allocation2 + $0x118] sm:$0xf0]  ;;  %v4073_v41 = vld [vmem:[#allocation2 + $0x3e4] sm:$0xf] }
 0x3b9   :  { %1748 = vmatpush.bf16.msra.mxu3 %v3250_v4  ;;  %v3419_v4 = vld [vmem:[#allocation2 + $0x178] sm:$0xf0]  ;;  %v3290_v14 = vor.u32 %v3964_v21, %v3289_v61  ;;  %v3543_v53 = vld [vmem:[#allocation2 + $0x3f0] sm:$0xf0]  ;;  %v3605_v36 = vld [vmem:[#allocation2 + $0x460] sm:$0xf] }
 0x3ba   :  { %1480 = vmatpush.bf16.msrb.mxu0 %v3050_v1  ;;  %v3422_v16 = vor.u32 %v3994_v3, %v3419_v4  ;;  %v3958_v1 = vld [vmem:[#allocation2 + $0x4c] sm:$0xf]  ;;  %v3525_v51 = vld [vmem:[#allocation2 + $0x3c0] sm:$0xf]  ;;  %v4071_v52 = vld [vmem:[#allocation2 + $0x3cc] sm:$0xf0] }
 0x3bb   :  { %1762 = vmatpush.bf16.msra.mxu1 %v3362_v22  ;;  %v3960_v22 = vld [vmem:[#allocation2 + $0x54] sm:$0xf0]  ;;  %v3950_v57 = vld [vmem:[#allocation2 + $0xc] sm:$0xf]  ;;  %v3243_v59 = vld [vmem:[#allocation2 + $0x18] sm:$0xf0] }
 0x3bc   :  { %1771 = vmatpush.bf16.msra.mxu2 %v3302_v23  ;;  %v3990_v23 = vld [vmem:[#allocation2 + $0x14c] sm:$0xf]  ;;  %v3274_v20 = vor.u32 %v3960_v22, %v3273_v39  ;;  %v3527_v61 = vld [vmem:[#allocation2 + $0x3d0] sm:$0xf0]  ;;  %v3589_v21 = vld [vmem:[#allocation2 + $0x440] sm:$0xf]  ;;  %v3246_v4 = vor.u32 %v3950_v57, %v3243_v59 }
 0x3bd   :  { %1749 = vmatpush.bf16.msra.mxu3 %v3234_v25  ;;  %1481 = vmatmul.bf16.vlgmr.msrb.gmra.mxu0 %v4937_v2  ;;  %v3949_v2 = vld [vmem:[#allocation2 + $0x4] sm:$0xf]  ;;  %v3294_v25 = vor.u32 %v3962_v18, %v3291_v11  ;;  %v4087_v3 = vld [vmem:[#allocation2 + $0x44c] sm:$0xf0]  ;;  %v3511_v11 = vld [vmem:[#allocation2 + $0x3b0] sm:$0xf0] }
 0x3be   :  { %1820 = vmatpush.bf16.msra.mxu0 %v3358_v30  ;;  %3423 = vmatmul.msk.bf16.vlgmr.msra.gmra.mxu1 %vm1391_vm11, %v4922_v54  ;;  %v3238_v12 = vor.u32 %v3949_v2, %v3235_v0  ;;  %v3956_v30 = vld [vmem:[#allocation2 + $0x34] sm:$0xf0]  ;;  %v3607_v2 = vld [vmem:[#allocation2 + $0x470] sm:$0xf0]  ;;  %v4069_v0 = vld [vmem:[#allocation2 + $0x3c4] sm:$0xf] }
 0x3bf   :  { %1794 = vmatpush.bf16.msrb.mxu1 %v3354_v28  ;;  %v3385_v28 = vld [vmem:[#allocation2 + $0x128] sm:$0xf]  ;;  %v3258_v7 = vor.u32 %v3956_v30, %v3257_v29  ;;  %v4067_v62 = vld [vmem:[#allocation2 + $0x3ac] sm:$0xf0]  ;;  %v4085_v31 = vld [vmem:[#allocation2 + $0x444] sm:$0xf] }
 0x3c0   :  { %1750 = vmatmul.bf16.vlgmr.msra.gmra.mxu3 %v4934_v45  ;;  %1772 = vmatpush.bf16.msra.mxu2 %v3286_v34  ;;  %v3386_v34 = vor.u32 %v3988_v58, %v3385_v28  ;;  %v4065_v18 = vld [vmem:[#allocation2 + $0x3a4] sm:$0xf]  ;;  %v3573_v39 = vld [vmem:[#allocation2 + $0x420] sm:$0xf]  ;;  %v4083_v22 = vld [vmem:[#allocation2 + $0x42c] sm:$0xf0] }
 0x3c1   :  { %1785 = vmatpush.bf16.msrb.mxu3 %v3414_v63  ;;  %v3406_v63 = vor.u32 %v3990_v23, %v3403_v24  ;;  %v4063_v28 = vld [vmem:[#allocation2 + $0x38c] sm:$0xf0]  ;;  %v4081_v58 = vld [vmem:[#allocation2 + $0x424] sm:$0xf]  ;;  %v3557_v29 = vld [vmem:[#allocation2 + $0x400] sm:$0xf] }
 0x3c2   :  { %1821 = vmatpush.bf16.msra.mxu0 %v3342_v32  ;;  %v3259_v32 = vld [vmem:[#allocation2 + $0x38] sm:$0xf0]  ;;  %v4079_v30 = vld [vmem:[#allocation2 + $0x40c] sm:$0xf0]  ;;  %v3549_v8 = vld [vmem:[#allocation2 + $0x3e8] sm:$0xf] }
 0x3c3   :  { %1795 = vmatpush.bf16.msrb.mxu1 %v3338_v35  ;;  %v3278_v35 = vor.u32 %v3958_v1, %v3275_v17  ;;  %v4061_v1 = vld [vmem:[#allocation2 + $0x384] sm:$0xf]  ;;  %v3495_v17 = vld [vmem:[#allocation2 + $0x390] sm:$0xf0]  ;;  %v4059_v27 = vld [vmem:[#allocation2 + $0x36c] sm:$0xf0] }
 0x3c4   :  { %1773 = vmatpush.bf16.msra.mxu2 %v3270_v37  ;;  %v3982_v37 = vld [vmem:[#allocation2 + $0x10c] sm:$0xf]  ;;  %v4077_v15 = vld [vmem:[#allocation2 + $0x404] sm:$0xf]  ;;  %v3517_v57 = vld [vmem:[#allocation2 + $0x3a8] sm:$0xf] }
 0x3c5   :  { %1786 = vmatpush.bf16.msrb.mxu3 %v3398_v26  ;;  %v3954_v26 = vld [vmem:[#allocation2 + $0x2c] sm:$0xf]  ;;  %v3374_v50 = vor.u32 %v3982_v37, %v3371_v38  ;;  %v3551_v37 = vld [vmem:[#allocation2 + $0x3f8] sm:$0xf0]  ;;  %v4068_v59 = vld [vmem:[#allocation2 + $0x3b4] sm:$0xf0] }
 0x3c6   :  { %1822 = vmatpush.bf16.msra.mxu0 %v3326_v49  ;;  %v3262_v48 = vor.u32 %v3954_v26, %v3259_v32  ;;  %v3242_v49 = vor.u32 %v3952_v19, %v3241_v44  ;;  %v3558_v26 = vor.u32 %v4079_v30, %v3557_v29  ;;  %v3479_v32 = vld [vmem:[#allocation2 + $0x370] sm:$0xf0]  ;;  %v4074_v19 = vld [vmem:[#allocation2 + $0x3ec] sm:$0xf]  ;;  %v4967_v30 = vrot.slane %v4934_v45, 2 }
 0x3c7   :  { %1796 = vmatpush.bf16.msrb.mxu1 %v3322_v42  ;;  %v3370_v42 = vor.u32 %v3984_v9, %v3369_v10  ;;  %v3498_v9 = vor.u32 %v4061_v1, %v3495_v17  ;;  %v3485_v1 = vld [vmem:[#allocation2 + $0x368] sm:$0xf]  ;;  %v4060_v17 = vld [vmem:[#allocation2 + $0x374] sm:$0xf0] }
 0x3c8   :  { %1774 = vmatpush.bf16.msra.mxu2 %v3254_v55  ;;  %v3546_v55 = vor.u32 %v4073_v41, %v3543_v53  ;;  %v3533_v41 = vld [vmem:[#allocation2 + $0x3c8] sm:$0xf] }
 0x3c9   :  { %1787 = vmatpush.bf16.msrb.mxu3 %v3382_v46  ;;  %v4091_v46 = vld [vmem:[#allocation2 + $0x46c] sm:$0xf0] }
 0x3ca   :  { %1823 = vmatpush.bf16.msra.mxu0 %v3310_v6  ;;  %v3606_v56 = vor.u32 %v4091_v46, %v3605_v36  ;;  %v3530_v6 = vor.u32 %v4069_v0, %v3527_v61  ;;  %v3461_v46 = vld [vmem:[#allocation2 + $0x340] sm:$0xf]  ;;  %v4051_v61 = vld [vmem:[#allocation2 + $0x32c] sm:$0xf0] }
 0x3cb   :  { %1797 = vmatpush.bf16.msrb.mxu1 %v3306_v60  ;;  %v4089_v60 = vld [vmem:[#allocation2 + $0x464] sm:$0xf]  ;;  %v3445_v0 = vld [vmem:[#allocation2 + $0x320] sm:$0xf] }
 0x3cc   :  { %1775 = vmatpush.bf16.msra.mxu2 %v3238_v12  ;;  %v3509_v12 = vld [vmem:[#allocation2 + $0x3a0] sm:$0xf] }
 0x3cd   :  { %1788 = vmatpush.bf16.msrb.mxu3 %v3366_v43  ;;  %v3526_v43 = vor.u32 %v4071_v52, %v3525_v51  ;;  %v3510_v23 = vor.u32 %v4067_v62, %v3509_v12  ;;  %v4070_v52 = vld [vmem:[#allocation2 + $0x3cc] sm:$0xf]  ;;  %v3446_v12 = vor.u32 %v4051_v61, %v3445_v0  ;;  %v3429_v62 = vld [vmem:[#allocation2 + $0x300] sm:$0xf]  ;;  %v3455_v61 = vld [vmem:[#allocation2 + $0x338] sm:$0xf0] }
 0x3ce   :  { %1824 = vmatpush.bf16.msra.mxu0 %v3294_v25  ;;  %v3493_v25 = vld [vmem:[#allocation2 + $0x380] sm:$0xf] }
 0x3cf   :  { %1798 = vmatpush.bf16.msrb.mxu1 %v3290_v14  ;;  %1776 = vmatmul.bf16.vlgmr.msra.gmra.mxu2 %v4934_v45  ;;  %v3590_v14 = vor.u32 %v4087_v3, %v3589_v21  ;;  %v3494_v33 = vor.u32 %v4063_v28, %v3493_v25  ;;  %v4049_v21 = vld [vmem:[#allocation2 + $0x324] sm:$0xf]  ;;  %v3447_v3 = vld [vmem:[#allocation2 + $0x330] sm:$0xf0]  ;;  %v3503_v28 = vld [vmem:[#allocation2 + $0x398] sm:$0xf0] }
 0x3d0   :  { %1837 = vmatpush.bf16.msrb.mxu2 %v3422_v16  ;;  %3424 = vmatmul.msk.bf16.vlgmr.msrb.gmra.mxu3 %vm1391_vm11, %v4922_v54  ;;  %v3591_v16 = vld [vmem:[#allocation2 + $0x450] sm:$0xf0] }
 0x3d1   :  { %1811 = vmatpush.bf16.msra.mxu3 %v3418_v5  ;;  %v3610_v5 = vor.u32 %v4089_v60, %v3607_v2  ;;  %v3594_v24 = vor.u32 %v4085_v31, %v3591_v16  ;;  %v4960_v60 = vrot.slane %v4922_v54, 2  ;;  %v3501_v31 = vld [vmem:[#allocation2 + $0x388] sm:$0xf]  ;;  %v3450_v16 = vor.u32 %v4049_v21, %v3447_v3  ;;  %v3567_v21 = vld [vmem:[#allocation2 + $0x418] sm:$0xf0] }
 0x3d2   :  { %1825 = vmatpush.bf16.msra.mxu0 %v3278_v35  ;;  %v3477_v35 = vld [vmem:[#allocation2 + $0x360] sm:$0xf]  ;;  %v3437_v3 = vld [vmem:[#allocation2 + $0x308] sm:$0xf] }
 0x3d3   :  { %1799 = vmatpush.bf16.msrb.mxu1 %v3274_v20  ;;  %v3574_v20 = vor.u32 %v4083_v22, %v3573_v39  ;;  %v3478_v38 = vor.u32 %v4059_v27, %v3477_v35  ;;  %v4092_v39 = vld [vmem:[#allocation2 + $0x474] sm:$0xf0]  ;;  %v4058_v35 = vld [vmem:[#allocation2 + $0x36c] sm:$0xf]  ;;  %v3486_v27 = vor.u32 %v4060_v17, %v3485_v1  ;;  %v3785_v1 = vld [vmem:[#allocation2 + $0x5c0] sm:$0xf] }
 0x3d4   :  { %1838 = vmatpush.bf16.msrb.mxu2 %v3406_v63  ;;  %v3575_v63 = vld [vmem:[#allocation2 + $0x430] sm:$0xf0]  ;;  %v4135_v17 = vld [vmem:[#allocation2 + $0x5cc] sm:$0xf0] }
 0x3d5   :  { %1812 = vmatpush.bf16.msra.mxu3 %v3402_v40  ;;  %v3514_v40 = vor.u32 %v4065_v18, %v3511_v11  ;;  %v3578_v10 = vor.u32 %v4081_v58, %v3575_v63  ;;  %v4047_v18 = vld [vmem:[#allocation2 + $0x30c] sm:$0xf0]  ;;  %v3613_v11 = vld [vmem:[#allocation2 + $0x468] sm:$0xf]  ;;  %v4090_v58 = vld [vmem:[#allocation2 + $0x46c] sm:$0xf] }
 0x3d6   :  { %1826 = vmatpush.bf16.msra.mxu0 %v3262_v48  ;;  %v3554_v48 = vor.u32 %v4074_v19, %v3551_v37  ;;  %v3430_v63 = vor.u32 %v4047_v18, %v3429_v62  ;;  %v3614_v29 = vor.u32 %v4092_v39, %v3613_v11  ;;  %v3801_v62 = vld [vmem:[#allocation2 + $0x5e0] sm:$0xf] }
 0x3d7   :  { %1800 = vmatpush.bf16.msrb.mxu1 %v3258_v7  ;;  %v3559_v7 = vld [vmem:[#allocation2 + $0x410] sm:$0xf0]  ;;  %v3721_v18 = vld [vmem:[#allocation2 + $0x540] sm:$0xf] }
 0x3d8   :  { %1839 = vmatpush.bf16.msrb.mxu2 %v3390_v13  ;;  %v4057_v13 = vld [vmem:[#allocation2 + $0x364] sm:$0xf]  ;;  %v3562_v53 = vor.u32 %v4077_v15, %v3559_v7  ;;  %v3487_v15 = vld [vmem:[#allocation2 + $0x378] sm:$0xf0] }
 0x3d9   :  { %1813 = vmatpush.bf16.msra.mxu3 %v3386_v34  ;;  %v4076_v34 = vld [vmem:[#allocation2 + $0x3f4] sm:$0xf0]  ;;  %v3482_v36 = vor.u32 %v4057_v13, %v3479_v32  ;;  %v3599_v7 = vld [vmem:[#allocation2 + $0x458] sm:$0xf0]  ;;  %v3469_v13 = vld [vmem:[#allocation2 + $0x348] sm:$0xf]  ;;  %v3490_v19 = vor.u32 %v4058_v35, %v3487_v15  ;;  %v3786_v35 = vor.u32 %v4135_v17, %v3785_v1 }
 0x3da   :  { %1827 = vmatpush.bf16.msra.mxu0 %v3246_v4  ;;  %v3550_v44 = vor.u32 %v4076_v34, %v3549_v8  ;;  %v3518_v4 = vor.u32 %v4068_v59, %v3517_v57  ;;  %v4056_v32 = vld [vmem:[#allocation2 + $0x354] sm:$0xf0]  ;;  %v3737_v57 = vld [vmem:[#allocation2 + $0x560] sm:$0xf]  ;;  %v4123_v59 = vld [vmem:[#allocation2 + $0x56c] sm:$0xf0] }
 0x3db   :  { %1801 = vmatpush.bf16.msrb.mxu1 %v3242_v49  ;;  %v4053_v49 = vld [vmem:[#allocation2 + $0x344] sm:$0xf]  ;;  %v3787_v15 = vld [vmem:[#allocation2 + $0x5d0] sm:$0xf0] }
 0x3dc   :  { %1840 = vmatpush.bf16.msrb.mxu2 %v3374_v50  ;;  %v3463_v50 = vld [vmem:[#allocation2 + $0x350] sm:$0xf0]  ;;  %v4097_v17 = vld [vmem:[#allocation2 + $0x4a4] sm:$0xf] }
 0x3dd   :  { %1814 = vmatpush.bf16.msra.mxu3 %v3370_v42  ;;  %1828 = vmatmul.bf16.vlgmr.msra.gmra.mxu0 %v4934_v45  ;;  %v4072_v42 = vld [vmem:[#allocation2 + $0x3d4] sm:$0xf0]  ;;  %v3466_v2 = vor.u32 %v4053_v49, %v3463_v50 }
 0x3de   :  { %1802 = vmatmul.bf16.vlgmr.msrb.gmra.mxu1 %v4934_v45  ;;  %2184 = vmatpush.bf16.msrb.mxu0 %v3610_v5  ;;  %v3534_v51 = vor.u32 %v4072_v42, %v3533_v41  ;;  %v4066_v5 = vld [vmem:[#allocation2 + $0x3ac] sm:$0xf]  ;;  %v4084_v41 = vld [vmem:[#allocation2 + $0x434] sm:$0xf0] }
 0x3df   :  { %2158 = vmatpush.bf16.msra.mxu1 %v3606_v56  ;;  %3426 = vmatmul.msk.bf16.vlgmr.msrb.gmra.mxu2 %vm1391_vm11, %v4922_v54  ;;  %v4054_v42 = vld [vmem:[#allocation2 + $0x34c] sm:$0xf]  ;;  %v4052_v49 = vld [vmem:[#allocation2 + $0x334] sm:$0xf0] }
 0x3e0   :  { %2167 = vmatpush.bf16.msra.mxu2 %v3546_v55  ;;  %3425 = vmatmul.msk.bf16.vlgmr.msra.gmra.mxu3 %vm1391_vm11, %v4922_v54  ;;  %v3535_v55 = vld [vmem:[#allocation2 + $0x3d8] sm:$0xf0] }
 0x3e1   :  { %2141 = vmatpush.bf16.msrb.mxu3 %v3542_v47  ;;  %v4055_v47 = vld [vmem:[#allocation2 + $0x34c] sm:$0xf0] }
 0x3e2   :  { %2185 = vmatpush.bf16.msrb.mxu0 %v3594_v24  ;;  %v3462_v56 = vor.u32 %v4055_v47, %v3461_v46  ;;  %v3431_v24 = vld [vmem:[#allocation2 + $0x310] sm:$0xf0]  ;;  %v4082_v46 = vld [vmem:[#allocation2 + $0x42c] sm:$0xf]  ;;  %v3583_v47 = vld [vmem:[#allocation2 + $0x438] sm:$0xf0] }
 0x3e3   :  { %2159 = vmatpush.bf16.msra.mxu1 %v3590_v14  ;;  %v4064_v14 = vld [vmem:[#allocation2 + $0x394] sm:$0xf0] }
 0x3e4   :  { %2168 = vmatpush.bf16.msra.mxu2 %v3530_v6  ;;  %v3519_v6 = vld [vmem:[#allocation2 + $0x3b8] sm:$0xf0]  ;;  %v3502_v25 = vor.u32 %v4064_v14, %v3501_v31  ;;  %v4139_v31 = vld [vmem:[#allocation2 + $0x5ec] sm:$0xf0]  ;;  %v3738_v14 = vor.u32 %v4123_v59, %v3737_v57 }
 0x3e5   :  { %2142 = vmatpush.bf16.msrb.mxu3 %v3526_v43  ;;  %v3538_v43 = vor.u32 %v4070_v52, %v3535_v55  ;;  %v3522_v22 = vor.u32 %v4066_v5, %v3519_v6  ;;  %v4080_v52 = vld [vmem:[#allocation2 + $0x414] sm:$0xf0]  ;;  %v4121_v5 = vld [vmem:[#allocation2 + $0x564] sm:$0xf]  ;;  %v4107_v57 = vld [vmem:[#allocation2 + $0x4ec] sm:$0xf0] }
 0x3e6   :  { %2186 = vmatpush.bf16.msrb.mxu0 %v3578_v10  ;;  %v3597_v10 = vld [vmem:[#allocation2 + $0x448] sm:$0xf] }
 0x3e7   :  { %2160 = vmatpush.bf16.msra.mxu1 %v3574_v20  ;;  %v3615_v20 = vld [vmem:[#allocation2 + $0x478] sm:$0xf0] }
 0x3e8   :  { %2169 = vmatpush.bf16.msra.mxu2 %v3514_v40  ;;  %v4062_v40 = vld [vmem:[#allocation2 + $0x38c] sm:$0xf]  ;;  %v3618_v34 = vor.u32 %v4090_v58, %v3615_v20  ;;  %v3803_v58 = vld [vmem:[#allocation2 + $0x5f0] sm:$0xf0]  ;;  %v4117_v20 = vld [vmem:[#allocation2 + $0x544] sm:$0xf] }
 0x3e9   :  { %2143 = vmatpush.bf16.msrb.mxu3 %v3510_v23  ;;  %v4045_v23 = vld [vmem:[#allocation2 + $0x304] sm:$0xf]  ;;  %v3506_v8 = vor.u32 %v4062_v40, %v3503_v28 }
 0x3ea   :  { %2187 = vmatpush.bf16.msrb.mxu0 %v3562_v53  ;;  %v3470_v53 = vor.u32 %v4056_v32, %v3469_v13  ;;  %v4137_v28 = vld [vmem:[#allocation2 + $0x5e4] sm:$0xf]  ;;  %v3769_v13 = vld [vmem:[#allocation2 + $0x5a0] sm:$0xf]  ;;  %v4131_v32 = vld [vmem:[#allocation2 + $0x5ac] sm:$0xf0] }
 0x3eb   :  { %2161 = vmatpush.bf16.msra.mxu1 %v3558_v26  ;;  %v4086_v26 = vld [vmem:[#allocation2 + $0x44c] sm:$0xf] }
 0x3ec   :  { %2170 = vmatpush.bf16.msra.mxu2 %v3498_v9  ;;  %v4088_v9 = vld [vmem:[#allocation2 + $0x454] sm:$0xf0]  ;;  %v3602_v37 = vor.u32 %v4086_v26, %v3599_v7  ;;  %v4113_v26 = vld [vmem:[#allocation2 + $0x524] sm:$0xf]  ;;  %v3707_v7 = vld [vmem:[#allocation2 + $0x530] sm:$0xf0] }
 0x3ed   :  { %2144 = vmatpush.bf16.msrb.mxu3 %v3494_v33  ;;  %3620 = vmatmul.msk.bf16.vlgmr.msrb.gmra.mxu0 %vm1391_vm11, %v4960_v60  ;;  %v3434_v33 = vor.u32 %v4045_v23, %v3431_v24  ;;  %v4046_v23 = vld [vmem:[#allocation2 + $0x30c] sm:$0xf]  ;;  %v3439_v24 = vld [vmem:[#allocation2 + $0x318] sm:$0xf0] }
 0x3ee   :  { %2219 = vmatpush.bf16.msra.mxu0 %v3554_v48  ;;  %3619 = vmatmul.msk.bf16.vlgmr.msra.gmra.mxu1 %vm1391_vm11, %v4960_v60  ;;  %v3453_v48 = vld [vmem:[#allocation2 + $0x328] sm:$0xf] }
 0x3ef   :  { %2193 = vmatpush.bf16.msrb.mxu1 %v3550_v44  ;;  %v3598_v44 = vor.u32 %v4088_v9, %v3597_v10  ;;  %v3454_v0 = vor.u32 %v4052_v49, %v3453_v48  ;;  %v4115_v10 = vld [vmem:[#allocation2 + $0x52c] sm:$0xf0]  ;;  %v3753_v48 = vld [vmem:[#allocation2 + $0x580] sm:$0xf] }
 0x3f0   :  { %2171 = vmatpush.bf16.msra.mxu2 %v3482_v36  ;;  %v3471_v36 = vld [vmem:[#allocation2 + $0x358] sm:$0xf0]  ;;  %v4127_v49 = vld [vmem:[#allocation2 + $0x58c] sm:$0xf0] }
 0x3f1   :  { %2145 = vmatpush.bf16.msrb.mxu3 %v3478_v38  ;;  %v3581_v38 = vld [vmem:[#allocation2 + $0x428] sm:$0xf]  ;;  %v3474_v55 = vor.u32 %v4054_v42, %v3471_v36  ;;  %v3770_v42 = vor.u32 %v4131_v32, %v3769_v13  ;;  %v3771_v36 = vld [vmem:[#allocation2 + $0x5b0] sm:$0xf0] }
 0x3f2   :  { %2220 = vmatpush.bf16.msra.mxu0 %v3538_v43  ;;  %v3582_v50 = vor.u32 %v4084_v41, %v3581_v38  ;;  %v4078_v43 = vld [vmem:[#allocation2 + $0x40c] sm:$0xf]  ;;  %v4111_v38 = vld [vmem:[#allocation2 + $0x50c] sm:$0xf0]  ;;  %v3710_v41 = vor.u32 %v4113_v26, %v3707_v7 }
 0x3f3   :  { %2194 = vmatpush.bf16.msrb.mxu1 %v3534_v51  ;;  %v3565_v51 = vld [vmem:[#allocation2 + $0x408] sm:$0xf]  ;;  %v3570_v11 = vor.u32 %v4078_v43, %v3567_v21  ;;  %v3675_v21 = vld [vmem:[#allocation2 + $0x4f0] sm:$0xf0]  ;;  %v4095_v26 = vld [vmem:[#allocation2 + $0x48c] sm:$0xf0] }
 0x3f4   :  { %2172 = vmatpush.bf16.msra.mxu2 %v3466_v2  ;;  %v4050_v2 = vld [vmem:[#allocation2 + $0x32c] sm:$0xf]  ;;  %v3566_v6 = vor.u32 %v4080_v52, %v3565_v51  ;;  %v3745_v51 = vld [vmem:[#allocation2 + $0x568] sm:$0xf]  ;;  %v4124_v52 = vld [vmem:[#allocation2 + $0x574] sm:$0xf0] }
 0x3f5   :  { %2146 = vmatpush.bf16.msrb.mxu3 %v3462_v56  ;;  %v3586_v56 = vor.u32 %v4082_v46, %v3583_v47  ;;  %v4109_v46 = vld [vmem:[#allocation2 + $0x504] sm:$0xf]  ;;  %v3691_v47 = vld [vmem:[#allocation2 + $0x510] sm:$0xf0]  ;;  %v3746_v43 = vor.u32 %v4124_v52, %v3745_v51 }
 0x3f6   :  { %2221 = vmatpush.bf16.msra.mxu0 %v3522_v22  ;;  %v4119_v22 = vld [vmem:[#allocation2 + $0x54c] sm:$0xf0]  ;;  %v3694_v59 = vor.u32 %v4109_v46, %v3691_v47  ;;  %v3681_v46 = vld [vmem:[#allocation2 + $0x4e8] sm:$0xf]  ;;  %v4108_v47 = vld [vmem:[#allocation2 + $0x4f4] sm:$0xf0] }
 0x3f7   :  { %2195 = vmatpush.bf16.msrb.mxu1 %v3518_v4  ;;  %v4048_v4 = vld [vmem:[#allocation2 + $0x314] sm:$0xf0] }
 0x3f8   :  { %2173 = vmatpush.bf16.msra.mxu2 %v3450_v16  ;;  %v3458_v16 = vor.u32 %v4050_v2, %v3455_v61  ;;  %v3438_v39 = vor.u32 %v4048_v4, %v3437_v3  ;;  %v3754_v2 = vor.u32 %v4127_v49, %v3753_v48  ;;  %v4105_v61 = vld [vmem:[#allocation2 + $0x4e4] sm:$0xf]  ;;  %v4122_v3 = vld [vmem:[#allocation2 + $0x56c] sm:$0xf]  ;;  %v3747_v4 = vld [vmem:[#allocation2 + $0x578] sm:$0xf0] }
 0x3f9   :  { %2147 = vmatpush.bf16.msrb.mxu3 %v3446_v12  ;;  %v3739_v12 = vld [vmem:[#allocation2 + $0x570] sm:$0xf0]  ;;  %v4138_v49 = vld [vmem:[#allocation2 + $0x5ec] sm:$0xf] }
 0x3fa   :  { %2222 = vmatpush.bf16.msra.mxu0 %v3506_v8  ;;  %v3742_v40 = vor.u32 %v4121_v5, %v3739_v12  ;;  %v3806_v8 = vor.u32 %v4137_v28, %v3803_v58  ;;  %v4116_v28 = vld [vmem:[#allocation2 + $0x534] sm:$0xf0]  ;;  %v3641_v58 = vld [vmem:[#allocation2 + $0x4a0] sm:$0xf] }
 0x3fb   :  { %2196 = vmatpush.bf16.msrb.mxu1 %v3502_v25  ;;  %v3802_v25 = vor.u32 %v4139_v31, %v3801_v62  ;;  %v3657_v62 = vld [vmem:[#allocation2 + $0x4c0] sm:$0xf]  ;;  %v4103_v31 = vld [vmem:[#allocation2 + $0x4cc] sm:$0xf0] }
 0x3fc   :  { %2174 = vmatpush.bf16.msra.mxu2 %v3434_v33  ;;  %v3442_v33 = vor.u32 %v4046_v23, %v3439_v24  ;;  %v3731_v23 = vld [vmem:[#allocation2 + $0x558] sm:$0xf0] }
 0x3fd   :  { %2148 = vmatpush.bf16.msrb.mxu3 %v3430_v63  ;;  %v3723_v63 = vld [vmem:[#allocation2 + $0x550] sm:$0xf0] }
 0x3fe   :  { %2223 = vmatpush.bf16.msra.mxu0 %v3490_v19  ;;  %v3726_v9 = vor.u32 %v4117_v20, %v3723_v63  ;;  %v4099_v20 = vld [vmem:[#allocation2 + $0x4ac] sm:$0xf0] }
 0x3ff   :  { %2197 = vmatpush.bf16.msrb.mxu1 %v3486_v27  ;;  %2175 = vmatmul.bf16.vlgmr.msra.gmra.mxu2 %v4967_v30  ;;  %v4133_v27 = vld [vmem:[#allocation2 + $0x5c4] sm:$0xf] }
 0x400   :  { %2236 = vmatpush.bf16.msrb.mxu2 %v3618_v34  ;;  %2149 = vmatmul.bf16.vlgmr.msrb.gmra.mxu3 %v4967_v30  ;;  %v3705_v34 = vld [vmem:[#allocation2 + $0x520] sm:$0xf]  ;;  %v3790_v19 = vor.u32 %v4133_v27, %v3787_v15  ;;  %v4980_v27 = vrot.slane %v4922_v54, 3 }
 0x401   :  { %2210 = vmatpush.bf16.msra.mxu3 %v3614_v29  ;;  %v3722_v29 = vor.u32 %v4119_v22, %v3721_v18  ;;  %v4101_v18 = vld [vmem:[#allocation2 + $0x4c4] sm:$0xf]  ;;  %v4118_v22 = vld [vmem:[#allocation2 + $0x54c] sm:$0xf]  ;;  %v3625_v15 = vld [vmem:[#allocation2 + $0x480] sm:$0xf] }
 0x402   :  { %2224 = vmatpush.bf16.msra.mxu0 %v3474_v55  ;;  %v3734_v1 = vor.u32 %v4118_v22, %v3731_v23  ;;  %v3626_v54 = vor.u32 %v4095_v26, %v3625_v15  ;;  %v4130_v23 = vld [vmem:[#allocation2 + $0x5ac] sm:$0xf] }
 0x403   :  { %2198 = vmatpush.bf16.msrb.mxu1 %v3470_v53  ;;  %v4129_v53 = vld [vmem:[#allocation2 + $0x5a4] sm:$0xf] }
 0x404   :  { %2237 = vmatpush.bf16.msrb.mxu2 %v3602_v37  ;;  %v3689_v37 = vld [vmem:[#allocation2 + $0x500] sm:$0xf]  ;;  %v3774_v55 = vor.u32 %v4129_v53, %v3771_v36  ;;  %v3699_v53 = vld [vmem:[#allocation2 + $0x518] sm:$0xf0] }
 0x405   :  { %2211 = vmatpush.bf16.msra.mxu3 %v3598_v44  ;;  %v3706_v44 = vor.u32 %v4115_v10, %v3705_v34  ;;  %v3715_v34 = vld [vmem:[#allocation2 + $0x538] sm:$0xf0]  ;;  %v3642_v10 = vor.u32 %v4099_v20, %v3641_v58  ;;  %v4128_v58 = vld [vmem:[#allocation2 + $0x594] sm:$0xf0] }
 0x406   :  { %2225 = vmatpush.bf16.msra.mxu0 %v3458_v16  ;;  %v3750_v16 = vor.u32 %v4122_v3, %v3747_v4  ;;  %v4134_v3 = vld [vmem:[#allocation2 + $0x5cc] sm:$0xf]  ;;  %v3795_v4 = vld [vmem:[#allocation2 + $0x5d8] sm:$0xf0] }
 0x407   :  { %2199 = vmatpush.bf16.msrb.mxu1 %v3454_v0  ;;  %v3755_v0 = vld [vmem:[#allocation2 + $0x590] sm:$0xf0] }
 0x408   :  { %2238 = vmatpush.bf16.msrb.mxu2 %v3586_v56  ;;  %v3673_v56 = vld [vmem:[#allocation2 + $0x4e0] sm:$0xf] }
 0x409   :  { %2212 = vmatpush.bf16.msra.mxu3 %v3582_v50  ;;  %v3690_v50 = vor.u32 %v4111_v38, %v3689_v37  ;;  %v3674_v5 = vor.u32 %v4107_v57, %v3673_v56  ;;  %v4140_v37 = vld [vmem:[#allocation2 + $0x5f4] sm:$0xf0]  ;;  %v4989_v57 = vrot.slane %v4934_v45, 3 }
 0x40a   :  { %2226 = vmatpush.bf16.msra.mxu0 %v3442_v33  ;;  %v3643_v33 = vld [vmem:[#allocation2 + $0x4b0] sm:$0xf0]  ;;  %v4136_v56 = vld [vmem:[#allocation2 + $0x5d4] sm:$0xf0] }
 0x40b   :  { %2200 = vmatpush.bf16.msrb.mxu1 %v3438_v39  ;;  %v3659_v39 = vld [vmem:[#allocation2 + $0x4d0] sm:$0xf0]  ;;  %v4977_v24 = vpop.f32.mrf.mxu1  ;;  %v3646_v7 = vor.u32 %v4097_v17, %v3643_v33  ;;  %v3633_v17 = vld [vmem:[#allocation2 + $0x488] sm:$0xf] }
 0x40c   :  { %2239 = vmatpush.bf16.msrb.mxu2 %v3570_v11  ;;  %v3662_v63 = vor.u32 %v4101_v18, %v3659_v39  ;;  %v3798_v18 = vor.u32 %v4134_v3, %v3795_v4  ;;  %v4100_v39 = vld [vmem:[#allocation2 + $0x4b4] sm:$0xf0] }
 0x40d   :  { %2213 = vmatpush.bf16.msra.mxu3 %v3566_v6  ;;  %2227 = vmatmul.bf16.vlgmr.msra.gmra.mxu0 %v4967_v30  ;;  %v4120_v6 = vld [vmem:[#allocation2 + $0x554] sm:$0xf0] }
 0x40e   :  { %2587 = vmatpush.bf16.msrb.mxu0 %v3806_v8  ;;  %2201 = vmatmul.bf16.vlgmr.msrb.gmra.mxu1 %v4967_v30  ;;  %v3729_v30 = vld [vmem:[#allocation2 + $0x548] sm:$0xf]  ;;  %v4114_v8 = vld [vmem:[#allocation2 + $0x52c] sm:$0xf] }
 0x40f   :  { %2561 = vmatpush.bf16.msra.mxu1 %v3802_v25  ;;  %3622 = vmatmul.msk.bf16.vlgmr.msrb.gmra.mxu2 %vm1391_vm11, %v4960_v60  ;;  %v3730_v11 = vor.u32 %v4120_v6, %v3729_v30  ;;  %v3713_v25 = vld [vmem:[#allocation2 + $0x528] sm:$0xf]  ;;  %v3718_v13 = vor.u32 %v4114_v8, %v3715_v34  ;;  %v4126_v34 = vld [vmem:[#allocation2 + $0x58c] sm:$0xf] }
 0x410   :  { %2570 = vmatpush.bf16.msra.mxu2 %v3742_v40  ;;  %3621 = vmatmul.msk.bf16.vlgmr.msra.gmra.mxu3 %vm1391_vm11, %v4960_v60  ;;  %v4125_v60 = vld [vmem:[#allocation2 + $0x584] sm:$0xf]  ;;  %v3658_v40 = vor.u32 %v4103_v31, %v3657_v62  ;;  %v3777_v6 = vld [vmem:[#allocation2 + $0x5a8] sm:$0xf]  ;;  %v4102_v31 = vld [vmem:[#allocation2 + $0x4cc] sm:$0xf] }
 0x411   :  { %2544 = vmatpush.bf16.msrb.mxu3 %v3738_v14  ;;  %v3758_v12 = vor.u32 %v4125_v60, %v3755_v0  ;;  %v3678_v14 = vor.u32 %v4105_v61, %v3675_v21  ;;  %v3683_v60 = vld [vmem:[#allocation2 + $0x4f8] sm:$0xf0]  ;;  %v3665_v61 = vld [vmem:[#allocation2 + $0x4c8] sm:$0xf] }
 0x412   :  { %2588 = vmatpush.bf16.msrb.mxu0 %v3790_v19  ;;  %v3809_v19 = vld [vmem:[#allocation2 + $0x5e8] sm:$0xf] }
 0x413   :  { %2562 = vmatpush.bf16.msra.mxu1 %v3786_v35  ;;  %v4112_v35 = vld [vmem:[#allocation2 + $0x514] sm:$0xf0]  ;;  %v4982_v32 = vpop.f32.mrf.mxu3  ;;  %v1419_v36 = vpop.f32.mrf.mxu1  ;;  %v3810_v48 = vor.u32 %v4140_v37, %v3809_v19 }
 0x414   :  { %2571 = vmatpush.bf16.msra.mxu2 %v3726_v9  ;;  %v3697_v9 = vld [vmem:[#allocation2 + $0x508] sm:$0xf] }
 0x415   :  { %2545 = vmatpush.bf16.msrb.mxu3 %v3722_v29  ;;  %v3714_v29 = vor.u32 %v4116_v28, %v3713_v25  ;;  %v3698_v38 = vor.u32 %v4112_v35, %v3697_v9  ;;  %v3761_v28 = vld [vmem:[#allocation2 + $0x588] sm:$0xf] }
 0x416   :  { %2589 = vmatpush.bf16.msrb.mxu0 %v3774_v55  ;;  %v3793_v55 = vld [vmem:[#allocation2 + $0x5c8] sm:$0xf]  ;;  %v3762_v8 = vor.u32 %v4128_v58, %v3761_v28 }
 0x417   :  { %2563 = vmatpush.bf16.msra.mxu1 %v3770_v42  ;;  %v4110_v42 = vld [vmem:[#allocation2 + $0x50c] sm:$0xf]  ;;  %v3794_v21 = vor.u32 %v4136_v56, %v3793_v55 }
 0x418   :  { %2572 = vmatpush.bf16.msra.mxu2 %v3710_v41  ;;  %v3627_v41 = vld [vmem:[#allocation2 + $0x490] sm:$0xf0]  ;;  %v3702_v52 = vor.u32 %v4110_v42, %v3699_v53 }
 0x419   :  { %2546 = vmatpush.bf16.msrb.mxu3 %v3706_v44  ;;  %v4093_v44 = vld [vmem:[#allocation2 + $0x484] sm:$0xf] }
 0x41a   :  { %2590 = vmatpush.bf16.msrb.mxu0 %v3758_v12  ;;  %v3630_v51 = vor.u32 %v4093_v44, %v3627_v41  ;;  %v4132_v12 = vld [vmem:[#allocation2 + $0x5b4] sm:$0xf0]  ;;  %v1404_v62 = vpop.f32.mrf.mxu0  ;;  %v3635_v44 = vld [vmem:[#allocation2 + $0x498] sm:$0xf0] }
 0x41b   :  { %2564 = vmatpush.bf16.msra.mxu1 %v3754_v2  ;;  %v4106_v2 = vld [vmem:[#allocation2 + $0x4ec] sm:$0xf]  ;;  %v1445_v30 = vpop.f32.mrf.mxu3  ;;  %v3778_v22 = vor.u32 %v4132_v12, %v3777_v6 }
 0x41c   :  { %2573 = vmatpush.bf16.msra.mxu2 %v3694_v59  ;;  %v3682_v59 = vor.u32 %v4108_v47, %v3681_v46 }
 0x41d   :  { %2547 = vmatpush.bf16.msrb.mxu3 %v3690_v50  ;;  %3816 = vmatmul.msk.bf16.vlgmr.msrb.gmra.mxu0 %vm1391_vm11, %v4980_v27  ;;  %v3811_v50 = vld [vmem:[#allocation2 + $0x5f8] sm:$0xf0] }
 0x41e   :  { %2622 = vmatpush.bf16.msra.mxu0 %v3750_v16  ;;  %3815 = vmatmul.msk.bf16.vlgmr.msra.gmra.mxu1 %vm1391_vm11, %v4980_v27  ;;  %v3814_v0 = vor.u32 %v4138_v49, %v3811_v50  ;;  %v1418_v16 = vadd.f32 %v4977_v24, %v1404_v62 }
 0x41f   :  { %2596 = vmatpush.bf16.msrb.mxu1 %v3746_v43  ;;  %v4104_v43 = vld [vmem:[#allocation2 + $0x4d4] sm:$0xf0] }
 0x420   :  { %2574 = vmatpush.bf16.msra.mxu2 %v3678_v14  ;;  %v3666_v45 = vor.u32 %v4104_v43, %v3665_v61  ;;  %v3667_v14 = vld [vmem:[#allocation2 + $0x4d8] sm:$0xf0] }
 0x421   :  { %2548 = vmatpush.bf16.msrb.mxu3 %v3674_v5  ;;  %v3686_v5 = vor.u32 %v4106_v2, %v3683_v60  ;;  %v3670_v25 = vor.u32 %v4102_v31, %v3667_v14 }
 0x422   :  { %2623 = vmatpush.bf16.msra.mxu0 %v3734_v1  ;;  %v3651_v1 = vld [vmem:[#allocation2 + $0x4b8] sm:$0xf0]  ;;  %v1430_v33 = vpop.f32.mrf.mxu2  ;;  %v1406_v26 = vpop.f32.mrf.mxu0 }
 0x423   :  { %2597 = vmatpush.bf16.msrb.mxu1 %v3730_v11  ;;  %v3649_v11 = vld [vmem:[#allocation2 + $0x4a8] sm:$0xf]  ;;  %v1444_v9 = vadd.f32 %v4982_v32, %v1430_v33  ;;  %v1469_v15 = vpop.f32.mrf.mxu3  ;;  %v2652_v26 = vld [vmem:[%s5042_s6] sm:$0xf] }
 0x424   :  { %2575 = vmatpush.bf16.msra.mxu2 %v3662_v63  ;;  %v3650_v20 = vor.u32 %v4100_v39, %v3649_v11  ;;  %v4098_v63 = vld [vmem:[#allocation2 + $0x4ac] sm:$0xf] }
 0x425   :  { %2549 = vmatpush.bf16.msrb.mxu3 %v3658_v40  ;;  %v3779_v40 = vld [vmem:[#allocation2 + $0x5b8] sm:$0xf0]  ;;  %v3654_v35 = vor.u32 %v4098_v63, %v3651_v1 }
 0x426   :  { %2624 = vmatpush.bf16.msra.mxu0 %v3718_v13  ;;  %v3782_v24 = vor.u32 %v4130_v23, %v3779_v40  ;;  %v4094_v13 = vld [vmem:[#allocation2 + $0x48c] sm:$0xf] }
 0x427   :  { %2598 = vmatpush.bf16.msrb.mxu1 %v3714_v29  ;;  %v4096_v29 = vld [vmem:[#allocation2 + $0x494] sm:$0xf0]  ;;  %v3638_v37 = vor.u32 %v4094_v13, %v3635_v44  ;;  %v2654_v44 = vperm.slane %v2652_v26, 0 }
 0x428   :  { %2576 = vmatpush.bf16.msra.mxu2 %v3646_v7  ;;  %v3634_v7 = vor.u32 %v4096_v29, %v3633_v17 }
 0x429   :  { %2550 = vmatpush.bf16.msrb.mxu3 %v3642_v10  ;;  %v3763_v10 = vld [vmem:[#allocation2 + $0x598] sm:$0xf0] }
 0x42a   :  { %2625 = vmatpush.bf16.msra.mxu0 %v3702_v52  ;;  %v3766_v19 = vor.u32 %v4126_v34, %v3763_v10  ;;  %v1432_v41 = vpop.f32.mrf.mxu2 }
 0x42b   :  { %2599 = vmatpush.bf16.msrb.mxu1 %v3698_v38  ;;  %v1456_v38 = vpop.f32.mrf.mxu1  ;;  %v1471_v32 = vpop.f32.mrf.mxu3  ;;  %v2655_v41 = vperm.slane %v2652_v26, 1 }
 0x42c   :  { %2577 = vmatpush.bf16.msra.mxu2 %v3630_v51  ;;  %v1470_v42 = vadd.f32 %v1469_v15, %v1456_v38 }
 0x42d   :  { %2551 = vmatpush.bf16.msrb.mxu3 %v3626_v54 }
 0x42e   :  { %2626 = vmatpush.bf16.msra.mxu0 %v3686_v5 }
 0x42f   :  { %2600 = vmatpush.bf16.msrb.mxu1 %v3682_v59  ;;  %2578 = vmatmul.bf16.vlgmr.msra.gmra.mxu2 %v4989_v57 }
 0x430   :  { %2552 = vmatmul.bf16.vlgmr.msrb.gmra.mxu3 %v4989_v57  ;;  %2639 = vmatpush.bf16.msrb.mxu2 %v3814_v0 }
 0x431   :  { %2613 = vmatpush.bf16.msra.mxu3 %v3810_v48 }
 0x432   :  { %2627 = vmatpush.bf16.msra.mxu0 %v3670_v25  ;;  %v1495_v36 = vpop.f32.mrf.mxu2 }
 0x433   :  { %2601 = vmatpush.bf16.msrb.mxu1 %v3666_v45  ;;  %v1458_v53 = vpop.f32.mrf.mxu1 }
 0x434   :  { %2640 = vmatpush.bf16.msrb.mxu2 %v3798_v18 }
 0x435   :  { %2614 = vmatpush.bf16.msra.mxu3 %v3794_v21 }
 0x436   :  { %2628 = vmatpush.bf16.msra.mxu0 %v3654_v35 }
 0x437   :  { %2602 = vmatpush.bf16.msrb.mxu1 %v3650_v20 }
 0x438   :  { %2641 = vmatpush.bf16.msrb.mxu2 %v3782_v24 }
 0x439   :  { %2615 = vmatpush.bf16.msra.mxu3 %v3778_v22 }
 0x43a   :  { %2629 = vmatpush.bf16.msra.mxu0 %v3638_v37  ;;  %v1482_v54 = vpop.f32.mrf.mxu0  ;;  %v1497_v48 = vpop.f32.mrf.mxu2 }
 0x43b   :  { %2603 = vmatpush.bf16.msrb.mxu1 %v3634_v7  ;;  %v1764_v46 = vpop.f32.mrf.mxu1  ;;  %v1496_v47 = vadd.f32 %v1495_v36, %v1482_v54 }
 0x43c   :  { %2642 = vmatpush.bf16.msrb.mxu2 %v3766_v19 }
 0x43d   :  { %2616 = vmatpush.bf16.msra.mxu3 %v3762_v8  ;;  %2630 = vmatmul.bf16.vlgmr.msra.gmra.mxu0 %v4989_v57 }
 0x43e   :  { %2604 = vmatmul.bf16.vlgmr.msrb.gmra.mxu1 %v4989_v57 }
 0x43f   :  { %3818 = vmatmul.msk.bf16.vlgmr.msrb.gmra.mxu2 %vm1391_vm11, %v4980_v27 }
 0x440   :  { %3817 = vmatmul.msk.bf16.vlgmr.msra.gmra.mxu3 %vm1391_vm11, %v4980_v27 }
 0x442   :  { %v1484_v52 = vpop.f32.mrf.mxu0 }
 0x443   :  { %v1751_v49 = vpop.f32.mrf.mxu3  ;;  %v1766_v55 = vpop.f32.mrf.mxu1 }
 0x444   :  { %v1752_v50 = vadd.f32 %v1751_v49, %v1418_v16 }
 0x446   :  { %v1765_v51 = vadd.f32 %v1764_v46, %v1752_v50 }
 0x44b   :  { %v1753_v56 = vpop.f32.mrf.mxu3 }
 0x452   :  { %v1777_v59 = vpop.f32.mrf.mxu2 }
 0x453   :  { %v1778_v2 = vadd.f32 %v1777_v59, %v1444_v9  ;;  %v1790_v60 = vpop.f32.mrf.mxu3  ;;  %v2656_v59 = vperm.slane %v2652_v26, 2 }
 0x455   :  { %v1791_v0 = vadd.f32 %v1790_v60, %v1778_v2 }
 0x45a   :  { %v1779_v43 = vpop.f32.mrf.mxu2  ;;  %v1829_v21 = vpop.f32.mrf.mxu0 }
 0x45b   :  { %v1803_v57 = vpop.f32.mrf.mxu1  ;;  %v1792_v27 = vpop.f32.mrf.mxu3  ;;  %v1830_v3 = vadd.f32 %v1829_v21, %v1496_v47  ;;  %v2657_v43 = vperm.slane %v2652_v26, 3 }
 0x45c   :  { %v1804_v61 = vadd.f32 %v1803_v57, %v1470_v42 }
 0x462   :  { %v1842_v5 = vpop.f32.mrf.mxu2  ;;  %v1831_v62 = vpop.f32.mrf.mxu0 }
 0x463   :  { %v1805_v4 = vpop.f32.mrf.mxu1  ;;  %v1816_v30 = vpop.f32.mrf.mxu3  ;;  %v1843_v6 = vadd.f32 %v1842_v5, %v1830_v3 }
 0x464   :  { %v1817_v12 = vadd.f32 %v1816_v30, %v1804_v61 }
 0x46a   :  { %v1844_v45 = vpop.f32.mrf.mxu2  ;;  %v2189_v16 = vpop.f32.mrf.mxu0 }
 0x46b   :  { %v2163_v31 = vpop.f32.mrf.mxu1  ;;  %v1818_v14 = vpop.f32.mrf.mxu3 }
 0x472   :  { %v2191_v11 = vpop.f32.mrf.mxu0 }
 0x473   :  { %v2165_v18 = vpop.f32.mrf.mxu1 }
 0x482   :  { %v2176_v23 = vpop.f32.mrf.mxu2 }
 0x483   :  { %v2150_v39 = vpop.f32.mrf.mxu3  ;;  %v2190_v40 = vadd.f32 %v2189_v16, %v2176_v23 }
 0x484   :  { %v2164_v22 = vadd.f32 %v2163_v31, %v2150_v39 }
 0x485   :  { %v2246_v28 = vadd.f32 %v2190_v40, %v1791_v0 }
 0x486   :  { %v2245_v25 = vadd.f32 %v2164_v22, %v1765_v51 }
 0x48a   :  { %v2178_v20 = vpop.f32.mrf.mxu2  ;;  %v2228_v1 = vpop.f32.mrf.mxu0 }
 0x48b   :  { %v2152_v58 = vpop.f32.mrf.mxu3  ;;  %v2202_v63 = vpop.f32.mrf.mxu1 }
 0x492   :  { %v2241_v17 = vpop.f32.mrf.mxu2  ;;  %v2230_v33 = vpop.f32.mrf.mxu0 }
 0x493   :  { %v2215_v24 = vpop.f32.mrf.mxu3  ;;  %v2204_v29 = vpop.f32.mrf.mxu1  ;;  %v2242_v51 = vadd.f32 %v2241_v17, %v2228_v1 }
 0x494   :  { %v2216_v50 = vadd.f32 %v2215_v24, %v2202_v63 }
 0x495   :  { %v2248_v0 = vadd.f32 %v2242_v51, %v1843_v6 }
 0x496   :  { %v2247_v55 = vadd.f32 %v2216_v50, %v1817_v12 }
 0x49a   :  { %v2243_v34 = vpop.f32.mrf.mxu2  ;;  %v2592_v9 = vpop.f32.mrf.mxu0 }
 0x49b   :  { %v2217_v8 = vpop.f32.mrf.mxu3  ;;  %v2566_v10 = vpop.f32.mrf.mxu1 }
 0x4a2   :  { %v2594_v15 = vpop.f32.mrf.mxu0 }
 0x4a3   :  { %v2568_v35 = vpop.f32.mrf.mxu1 }
 0x4b2   :  { %v2579_v19 = vpop.f32.mrf.mxu2 }
 0x4b3   :  { %v2553_v7 = vpop.f32.mrf.mxu3  ;;  %v2593_v38 = vadd.f32 %v2592_v9, %v2579_v19 }
 0x4b4   :  { %v2567_v13 = vadd.f32 %v2566_v10, %v2553_v7 }
 0x4b5   :  { %v2649_v32 = vadd.f32 %v2593_v38, %v2246_v28 }
 0x4b6   :  { %v2648_v37 = vadd.f32 %v2567_v13, %v2245_v25 }
 0x4b7   :  { %v5007_v36 = vadd.f32 %v2655_v41, %v2649_v32 }
 0x4b8   :  { %v5004_v42 = vadd.f32 %v2654_v44, %v2648_v37 }
 0x4b9   :  { %v2667_v46 = vmax.f32 %v5007_v36, 0.0 }
 0x4ba   :  { %v2666_v53 = vmax.f32 %v5004_v42, 0.0  ;;  %v2581_v48 = vpop.f32.mrf.mxu2  ;;  %v2631_v49 = vpop.f32.mrf.mxu0 }
 0x4bb   :  { %v2555_v54 = vpop.f32.mrf.mxu3  ;;  %v2605_v47 = vpop.f32.mrf.mxu1 }
 0x4c2   :  { %v2644_v60 = vpop.f32.mrf.mxu2  ;;  %v2633_v27 = vpop.f32.mrf.mxu0 }
 0x4c3   :  { %v2618_v52 = vpop.f32.mrf.mxu3  ;;  %v2607_v2 = vpop.f32.mrf.mxu1  ;;  %v2645_v61 = vadd.f32 %v2644_v60, %v2631_v49 }
 0x4c4   :  { %v2619_v56 = vadd.f32 %v2618_v52, %v2605_v47 }
 0x4c5   :  { %v2651_v3 = vadd.f32 %v2645_v61, %v2248_v0 }
 0x4c6   :  { %v2650_v57 = vadd.f32 %v2619_v56, %v2247_v55 }
 0x4c7   :  { %v5013_v5 = vadd.f32 %v2657_v43, %v2651_v3 }
 0x4c8   :  { %v5010_v21 = vadd.f32 %v2656_v59, %v2650_v57 }
 0x4c9   :  { %v2669_v62 = vmax.f32 %v5013_v5, 0.0 }
 0x4ca   :  { %v2668_v4 = vmax.f32 %v5010_v21, 0.0  ;;  %v2646_v12 = vpop.f32.mrf.mxu2 }
 0x4cb   :  { %v2620_v30 = vpop.f32.mrf.mxu3 }
 0x4cc   :  { %4242 = dma.done.wait [#allocation4 + $0x1], 4096 }
 0x4cd   :  { %4243 = vsyncadd [#allocation4 + $0x1], 4294963200  ;;  %v4148_v45 = vld [vmem:[#allocation3 + $0x48] sm:$0xff]  ;;  %v4156_v31 = vld [vmem:[#allocation3 + $0x78] sm:$0xff]  ;;  %v2674_v37 = vpack.c.bf16 %v2666_v53, %v2666_v53  ;;  %v2675_v38 = vpack.c.bf16 %v2667_v46, %v2667_v46  ;;  %v2676_v41 = vpack.c.bf16 %v2668_v4, %v2668_v4  ;;  %v2677_v32 = vpack.c.bf16 %v2669_v62, %v2669_v62  ;;  %s3009_s26 = sshll.u32 %s5045_s9, 4  ;;  %s3010_s26 = int_to_ptr.hbm [resolvable:$true] %s3009_s26 }
 0x4ce   :  { %v4164_v6 = vld [vmem:[#allocation3 + $0xc0] sm:$0xff]  ;;  %2938 = vmatpush.bf16.msrb.mxu3 %v4148_v45  ;;  %2951 = vmatpush.bf16.msra.mxu1 %v4156_v31  ;;  %v4147_v14 = vld [vmem:[#allocation3 + $0x30] sm:$0xff]  ;;  %v4155_v16 = vld [vmem:[#allocation3 + $0x8] sm:$0xff] }
 0x4cf   :  { %v4172_v18 = vld [vmem:[#allocation3 + $0x98] sm:$0xff]  ;;  %2964 = vmatpush.bf16.msra.mxu2 %v4164_v6  ;;  %v4163_v11 = vld [vmem:[#allocation3 + $0x70] sm:$0xff]  ;;  %v4171_v39 = vld [vmem:[#allocation3 + $0x20] sm:$0xff] }
 0x4d0   :  { %2977 = vmatpush.bf16.msrb.mxu0 %v4172_v18  ;;  %v4146_v22 = vld [vmem:[#allocation3 + $0x68] sm:$0xff]  ;;  %v4154_v23 = vld [vmem:[#allocation3 + $0xf0] sm:$0xff]  ;;  %v4170_v25 = vld [vmem:[#allocation3 + $0xf8] sm:$0xff] }
 0x4d1   :  { %v4162_v40 = vld [vmem:[#allocation3 + $0x90] sm:$0xff]  ;;  %v4153_v58 = vld [vmem:[#allocation3 + $0x60] sm:$0xff]  ;;  %v4144_v1 = vld [vmem:[#allocation3 + $0x18] sm:$0xff] }
 0x4d2   :  { %2939 = vmatpush.bf16.msrb.mxu3 %v4147_v14  ;;  %2952 = vmatpush.bf16.msra.mxu1 %v4155_v16  ;;  %v4145_v28 = vld [vmem:[#allocation3 + $0x50] sm:$0xff]  ;;  %v4161_v20 = vld [vmem:[#allocation3 + $0xe0] sm:$0xff]  ;;  %v4152_v24 = vld [vmem:[#allocation3 + $0xb8] sm:$0xff] }
 0x4d3   :  { %2965 = vmatpush.bf16.msra.mxu2 %v4163_v11  ;;  %v4169_v63 = vld [vmem:[#allocation3 + $0xa0] sm:$0xff]  ;;  %v4160_v17 = vld [vmem:[#allocation3 + $0xc8] sm:$0xff]  ;;  %v4143_v33 = vld [vmem:[#allocation3 + $0xd8] sm:$0xff] }
 0x4d4   :  { %2978 = vmatpush.bf16.msrb.mxu0 %v4171_v39  ;;  %v4168_v29 = vld [vmem:[#allocation3 + $0x28] sm:$0xff]  ;;  %v4159_v34 = vld [vmem:[#allocation3 + $0x40] sm:$0xff]  ;;  %v4167_v10 = vld [vmem:[#allocation3 + $0x10] sm:$0xff] }
 0x4d5   :  { %v4151_v8 = vld [vmem:[#allocation3 + $0xe8] sm:$0xff]  ;;  %v4142_v9 = vld [vmem:[#allocation3] sm:$0xff]  ;;  %v4158_v15 = vld [vmem:[#allocation3 + $0x58] sm:$0xff] }
 0x4d6   :  { %2940 = vmatpush.bf16.msrb.mxu3 %v4146_v22  ;;  %2953 = vmatpush.bf16.msra.mxu1 %v4154_v23  ;;  %v4150_v35 = vld [vmem:[#allocation3 + $0x88] sm:$0xff]  ;;  %v4166_v26 = vld [vmem:[#allocation3 + $0xd0] sm:$0xff]  ;;  %v4149_v13 = vld [vmem:[#allocation3 + $0x80] sm:$0xff] }
 0x4d7   :  { %2966 = vmatpush.bf16.msra.mxu2 %v4162_v40  ;;  %v4141_v7 = vld [vmem:[#allocation3 + $0xb0] sm:$0xff]  ;;  %v4157_v44 = vld [vmem:[#allocation3 + $0x38] sm:$0xff]  ;;  %v4165_v19 = vld [vmem:[#allocation3 + $0xa8] sm:$0xff] }
 0x4d8   :  { %2979 = vmatpush.bf16.msrb.mxu0 %v4170_v25  ;;  %v4187_v36 = vld [vmem:[%s5044_s8] ss:$0 sm:$0xff]  ;;  %s4256_s8 = smov [#allocation5]  }
 0x4d9   :  { %s3007_s0 = sshll.u32 %s4256_s8, 4  ;;  %s3008_s0 = int_to_ptr.vmem [resolvable:$true] %s3007_s0 }
 0x4da   :  { %2941 = vmatpush.bf16.msrb.mxu3 %v4145_v28  ;;  %2954 = vmatpush.bf16.msra.mxu1 %v4153_v58 }
 0x4db   :  { %2967 = vmatpush.bf16.msra.mxu2 %v4161_v20 }
 0x4dc   :  { %2980 = vmatpush.bf16.msrb.mxu0 %v4169_v63 }
 0x4de   :  { %2942 = vmatpush.bf16.msrb.mxu3 %v4144_v1  ;;  %2955 = vmatpush.bf16.msra.mxu1 %v4152_v24 }
 0x4df   :  { %2968 = vmatpush.bf16.msra.mxu2 %v4160_v17 }
 0x4e0   :  { %2981 = vmatpush.bf16.msrb.mxu0 %v4168_v29 }
 0x4e2   :  { %2943 = vmatpush.bf16.msrb.mxu3 %v4143_v33  ;;  %2956 = vmatpush.bf16.msra.mxu1 %v4151_v8 }
 0x4e3   :  { %2969 = vmatpush.bf16.msra.mxu2 %v4159_v34 }
 0x4e4   :  { %2982 = vmatpush.bf16.msrb.mxu0 %v4167_v10 }
 0x4e6   :  { %2944 = vmatpush.bf16.msrb.mxu3 %v4142_v9  ;;  %2957 = vmatpush.bf16.msra.mxu1 %v4150_v35 }
 0x4e7   :  { %2970 = vmatpush.bf16.msra.mxu2 %v4158_v15 }
 0x4e8   :  { %2983 = vmatpush.bf16.msrb.mxu0 %v4166_v26 }
 0x4ea   :  { %2945 = vmatpush.bf16.msrb.mxu3 %v4141_v7  ;;  %2958 = vmatpush.bf16.msra.mxu1 %v4149_v13 }
 0x4eb   :  { %2971 = vmatpush.bf16.msra.mxu2 %v4157_v44 }
 0x4ec   :  { %2984 = vmatpush.bf16.msrb.mxu0 %v4165_v19 }
 0x4ed   :  { %2946 = vmatmul.bf16.vlgmr.msrb.gmra.mxu3 %v2674_v37  ;;  %2959 = vmatmul.bf16.vlgmr.msra.gmra.mxu1 %v2675_v38 }
 0x4ee   :  { %2972 = vmatmul.bf16.vlgmr.msra.gmra.mxu2 %v2676_v41 }
 0x4ef   :  { %2985 = vmatmul.bf16.vlgmr.msrb.gmra.mxu0 %v2677_v32 }
 0x56a   :  { %v2960_v42 = vpop.f32.mrf.mxu1 }
 0x56c   :  { %v2986_v53 = vpop.f32.mrf.mxu0 }
 0x570   :  { %v2947_v54 = vpop.f32.mrf.mxu3 }
 0x571   :  { %v2948_v46 = vadd.f32 %v4187_v36, %v2947_v54  ;;  %v2973_v47 = vpop.f32.mrf.mxu2 }
 0x572   :  { %v2962_v48 = vpop.f32.mrf.mxu1 }
 0x573   :  { %v2961_v49 = vadd.f32 %v2960_v42, %v2948_v46 }
 0x574   :  { %v2988_v50 = vpop.f32.mrf.mxu0 }
 0x575   :  { %v2974_v51 = vadd.f32 %v2973_v47, %v2961_v49 }
 0x577   :  { %v2987_v52 = vadd.f32 %v2986_v53, %v2974_v51 }
 0x578   :  { %v2949_v55 = vpop.f32.mrf.mxu3 }
 0x579   :  { %v2975_v56 = vpop.f32.mrf.mxu2  ;;  %v2990_v59 = vsel %vm395_vm8, %v2987_v52, -inf }
 0x57a   :  { %2991 = vmax.xlane.f32.xlu0 %v2990_v59 }
 0x5ed   :  { %v2992_v2 = vpop.xlane.xlu0 %2991 }
 0x5ee   :  { %v2993_v60 = vsub.f32 %v2987_v52, %v2992_v2 }
 0x5f0   :  { %v2994_v0 = vmul.f32 1.442695, %v2993_v60 }
 0x5f2   :  { %4188 = vpow2.f32 %v2994_v0 }
 0x5f8   :  { %v4189_v57 = vpop.eup %4188 }
 0x5f9   :  { %v2996_v61 = vsel %vm395_vm8, %v4189_v57, 0.0 }
 0x5fa   :  { %2997 = vadd.xlane.f32.xlu0 %v2996_v61 }
 0x66d   :  { %v2998_v43 = vpop.xlane.xlu0 %2997 }
 0x66e   :  { %4190 = vrcp.f32 %v2998_v43 }
 0x674   :  { %v4191_v27 = vpop.eup %4190 }
 0x675   :  { %v3000_v21 = vmul.f32 %v4191_v27, %v4189_v57 }
 0x677   :  { %3001 = vst [vmem:[#allocation5] sm:$0x3] %v3000_v21 }
 0x678   :  { %3012 = dma.vmem_to_hbm [thread:$0]  %s3008_s0, 32, %s3010_s26, [#allocation6]  }
 0x679   :  { %4244 = dma.done.wait [#allocation6], 32  }
 0x67a   :  { %4245 = vsyncadd [#allocation6], 4294967264 }
 0x67b   :  { %3017 = vsyncpa [#allocation6], 1 }
 0x67c   :  { %3018 = vsyncmov [#allocation4] }
 0x67f   :  { %s3019_s27 = vpop.sfrf %3018 }
 0x680   :  { %p3947_p0 = scmp.ne.s32.totalorder %s3019_s27, 0 }
 0x682   :  { %3023 = shalt.err (%p3947_p0)  }
 0x683   :  { %3025 = vsyncmov [#allocation4 + $0x1] }
 0x686   :  { %s3026_s15 = vpop.sfrf %3025 }
 0x687   :  { %p3948_p1 = scmp.ne.s32.totalorder %s3026_s15, 0 }
 0x689   :  { %3030 = shalt.err (%p3948_p1)  }

</bundles_post_ra>
